<compile_context>
chip_gen: v6e
topology: v6e:2x2x1
jax: 0.10.0
libtpu: 0.0.40
codegen_flags: <defaults>
</compile_context>

<pallas_src>
import math

import jax
import jax.numpy as jnp
from jax.experimental import pallas as pl
from jax.experimental.pallas import tpu as pltpu

N_COMPONENTS = 3
HDIM = (64, 128, 64)
H1, H2, H3 = HDIM
L3_PAD = 128                       # lane-dense layer-3 output width (h3n | logits | 0)

_LB = math.sqrt(0.5)
_UB = math.sqrt(2.0)
_SCALE_MUL = (_UB - _LB) / 2.0
_SCALE_ADD = (_UB + _LB) / 2.0


def _relu(x):
    return jnp.maximum(x, 0.0)


def _round_up(n, m):
    return ((n + m - 1) // m) * m


# ----------------------------------------------------------------------------
# Kernel
# ----------------------------------------------------------------------------
def mdn_kernel(x_ref,
               w1_ref, b1_ref,      # fused layer-1 (both trunks)      (xd, 2*H1) / (1, 2*H1)
               w2_ref, b2_ref,      # block-diag layer-2               (2*H1, 2*H2) / (1, 2*H2)
               w3_ref, b3_ref,      # block-diag layer-3 + folded head (2*H2, 128)  / (1, 128)
               whd_ref, bhd_ref,    # fused loc|scale heads            (H3, 2K)     / (1, 2K)
               out_ref):            # (3K, tb) = rows [probs | loc | scale], batch on lanes
    K = N_COMPONENTS
    x = x_ref[...].astype(jnp.bfloat16)

    # Fused first layer of both trunks: (tb, xd) @ (xd, 128).
    h1 = _relu(jnp.dot(x, w1_ref[...], preferred_element_type=jnp.float32)
               + b1_ref[...])

    # Block-diagonal layer-2 of both trunks: (tb, 128) @ (128, 256).
    h2 = _relu(jnp.dot(h1.astype(jnp.bfloat16), w2_ref[...],
                       preferred_element_type=jnp.float32)
               + b2_ref[...])

    # Block-diagonal layer-3 (normal trunk layer-3 | pi layer-3 folded with the
    # logit head, zero-padded to 128 lanes): (tb, 256) @ (256, 128).
    r3 = (jnp.dot(h2.astype(jnp.bfloat16), w3_ref[...],
                  preferred_element_type=jnp.float32)
          + b3_ref[...])
    h3n = _relu(r3[:, :H3])             # normal trunk hidden (ReLU)
    logits = r3[:, H3:H3 + K]           # pi logits (no activation); pad lanes excluded

    # Exact softmax (rows sum to 1 up to f32 rounding).
    m = jnp.max(logits, axis=1, keepdims=True)
    e = jnp.exp(logits - m)
    probs = e / jnp.sum(e, axis=1, keepdims=True)

    # Fused loc|scale heads: (tb, 64) @ (64, 2K).
    head = (jnp.dot(h3n.astype(jnp.bfloat16), whd_ref[...],
                    preferred_element_type=jnp.float32)
            + bhd_ref[...])
    loc = head[:, :K]
    scale = jax.nn.sigmoid(head[:, K:]) * _SCALE_MUL + _SCALE_ADD

    # Lane-dense (transposed) output slab: lanes = batch, rows = 9 outputs.
    out_ref[...] = jnp.concatenate([probs, loc, scale], axis=1).T


# ----------------------------------------------------------------------------
# Parameters (PyTorch-equivalent layout: weights are (in, out), biases (1, out))
# ----------------------------------------------------------------------------
def init_mdn_params(key, x_dim, n_components=N_COMPONENTS, std=0.1):
    dims = (x_dim,) + HDIM

    def linear(k, fan_in, fan_out):
        kw, kb = jax.random.split(k)
        w = std * jax.random.normal(kw, (fan_in, fan_out), jnp.float32)
        b = std * jax.random.normal(kb, (1, fan_out), jnp.float32)
        return w, b

    keys = jax.random.split(key, 10)
    params = []
    for i in range(3):                                   # pi trunk: xd->64->128->64
        params.extend(linear(keys[i], dims[i], dims[i + 1]))
    params.extend(linear(keys[3], dims[-1], n_components))   # MixtureLogit: 64->K
    for i in range(3):                                   # normal trunk: xd->64->128->64
        params.extend(linear(keys[4 + i], dims[i], dims[i + 1]))
    params.extend(linear(keys[7], dims[-1], n_components))   # y_loc: 64->K
    params.extend(linear(keys[8], dims[-1], n_components))   # y_scale: 64->K
    return tuple(params)


def _fuse_params(params):
    """Fold/fuse parameters (fp32 algebra), cast matmul weight slabs to bf16."""
    (w1p, b1p, w2p, b2p, w3p, b3p, wlg, blg,
     w1n, b1n, w2n, b2n, w3n, b3n, wloc, bloc, wsc, bsc) = params
    K = wlg.shape[1]

    # Layer 1: fused (xd, 2*H1); lanes [0:H1]=pi trunk, [H1:2H1]=normal trunk.
    w1 = jnp.concatenate([w1p, w1n], axis=1)
    b1 = jnp.concatenate([b1p, b1n], axis=1)

    # Layer 2: block-diagonal (2*H1, 2*H2); output lanes [0:H2]=h2p, [H2:2H2]=h2n.
    w2 = jnp.zeros((2 * H1, 2 * H2), jnp.float32)
    w2 = w2.at[:H1, :H2].set(w2p).at[H1:, H2:].set(w2n)
    b2 = jnp.concatenate([b2p, b2n], axis=1)

    # Layer 3: pi layer-3 folded with the logit head (no activation in between),
    # block-diagonal with the normal trunk layer-3, zero-padded to 128 lanes:
    # output lanes [0:H3]=h3n (pre-ReLU), [H3:H3+K]=logits, rest zero (unused).
    w3f = w3p @ wlg                     # (H2, K)
    b3f = b3p @ wlg + blg               # (1, K)
    w3 = jnp.zeros((2 * H2, L3_PAD), jnp.float32)
    w3 = w3.at[H2:, :H3].set(w3n).at[:H2, H3:H3 + K].set(w3f)
    b3 = jnp.zeros((1, L3_PAD), jnp.float32)
    b3 = b3.at[:, :H3].set(b3n).at[:, H3:H3 + K].set(b3f)

    # Fused loc|scale head.
    whd = jnp.concatenate([wloc, wsc], axis=1)          # (H3, 2K)
    bhd = jnp.concatenate([bloc, bsc], axis=1)          # (1, 2K)

    bf16 = lambda w: w.astype(jnp.bfloat16)
    return (bf16(w1), b1, bf16(w2), b2, bf16(w3), b3, bf16(whd), bhd)


# ----------------------------------------------------------------------------
# Wrapper
# ----------------------------------------------------------------------------
def mdn_forward(x, params, tile_b=1024):
    """Returns (probs (B,K), loc (B,K,1), scale (B,K,1)).

    Accepts x in float32 or bfloat16 (no wrapper-side cast is added)."""
    K = N_COMPONENTS
    B, x_dim = x.shape
    fused = _fuse_params(params)

    # Batch tiles are multiples of 128 so the transposed (3K, tb) output blocks
    # store with full-width vst / contiguous HBM rows; keep >= 2 grid steps for
    # large batches so v7x's two TensorCores both get work.
    tb = min(_round_up(tile_b, 128), 2048)
    half = _round_up((B + 1) // 2, 128)
    tb = max(128, min(tb, half))
    Bp = _round_up(B, tb)
    if Bp != B:
        x = jnp.pad(x, ((0, Bp - B), (0, 0)))
    grid = (Bp // tb,)

    def resident(arr):  # parameters: full block, constant index -> stay in VMEM
        return pl.BlockSpec(arr.shape, lambda i: (0, 0))

    in_specs = [pl.BlockSpec((tb, x_dim), lambda i: (i, 0))]
    in_specs += [resident(a) for a in fused]
    out_spec = pl.BlockSpec((3 * K, tb), lambda i: (0, i))

    flops = 2 * Bp * (x_dim * 2 * H1 + (2 * H1) * (2 * H2)
                      + (2 * H2) * L3_PAD + H3 * 2 * K)
    bytes_accessed = (Bp * x_dim * x.dtype.itemsize + Bp * 3 * K * 4
                      + sum(int(a.size) * a.dtype.itemsize for a in fused))
    cost = pl.CostEstimate(flops=flops, transcendentals=2 * K * Bp,
                           bytes_accessed=bytes_accessed)

    out = pl.pallas_call(
        mdn_kernel,
        out_shape=jax.ShapeDtypeStruct((3 * K, Bp), jnp.float32),
        grid=grid,
        in_specs=in_specs,
        out_specs=out_spec,
        compiler_params=pltpu.CompilerParams(
            dimension_semantics=("parallel",)),
        cost_estimate=cost,
    )(x, *fused)

    out = out[:, :B]                       # (3K, B); padded batch columns dropped
    probs = out[:K, :].T                   # (B, K)
    loc = out[K:2 * K, :].T.reshape(B, K, 1)
    scale = out[2 * K:, :].T.reshape(B, K, 1)
    return probs, loc, scale


# ----------------------------------------------------------------------------
# Pure-JAX fp32 reference (mirrors the PyTorch forward exactly)
# ----------------------------------------------------------------------------
def mdn_reference(x, params):
    (w1p, b1p, w2p, b2p, w3p, b3p, wlg, blg,
     w1n, b1n, w2n, b2n, w3n, b3n, wloc, bloc, wsc, bsc) = params
    B = x.shape[0]
    K = N_COMPONENTS

    h = _relu(x @ w1p + b1p)
    h = _relu(h @ w2p + b2p)
    h = h @ w3p + b3p                    # last hidden layer of pi trunk: no activation
    probs = jax.nn.softmax(h @ wlg + blg, axis=1)

    g = _relu(x @ w1n + b1n)
    g = _relu(g @ w2n + b2n)
    g = _relu(g @ w3n + b3n)             # last hidden layer of normal trunk: ReLU
    loc = (g @ wloc + bloc).reshape(B, K, 1)
    scale = (jax.nn.sigmoid(g @ wsc + bsc) * _SCALE_MUL + _SCALE_ADD).reshape(B, K, 1)
    return probs, loc, scale


if __name__ == "__main__":
    key = jax.random.PRNGKey(0)
    kx, kp = jax.random.split(key)

    B, X_DIM = 512, 16
    x = jax.random.normal(kx, (B, X_DIM), jnp.float32)
    params = init_mdn_params(kp, X_DIM, N_COMPONENTS)

    # default tile_b gives tb=256 here -> a 2-step grid with VMEM-resident weights
    probs, loc, scale = jax.block_until_ready(mdn_forward(x, params))

    # sanity checks mirroring the PyTorch asserts
    assert probs.shape == (B, N_COMPONENTS)
    assert loc.shape == (B, N_COMPONENTS, 1)
    assert scale.shape == (B, N_COMPONENTS, 1)
    assert jnp.allclose(jnp.sum(probs, axis=1), jnp.ones((B,)), atol=1e-3)
    assert bool(jnp.all(scale >= 0))

    # compare against the fp32 pure-JAX reference (bf16 matmuls -> loose tol)
    rp, rl, rs = mdn_reference(x, params)
    assert jnp.allclose(probs, rp, atol=1e-2), float(jnp.max(jnp.abs(probs - rp)))
    assert jnp.allclose(loc, rl, atol=1e-2), float(jnp.max(jnp.abs(loc - rl)))
    assert jnp.allclose(scale, rs, atol=1e-2), float(jnp.max(jnp.abs(scale - rs)))

    print("KERNEL_OK")
</pallas_src>

<mosaic_0001>
module attributes {stable_mosaic.version = 11 : i64} {
  func.func @mdn_kernel(%arg0: i32, %arg1: memref<256x16xf32, #tpu.memory_space<vmem>>, %arg2: memref<16x128xbf16, #tpu.memory_space<vmem>>, %arg3: memref<1x128xf32, #tpu.memory_space<vmem>>, %arg4: memref<128x256xbf16, #tpu.memory_space<vmem>>, %arg5: memref<1x256xf32, #tpu.memory_space<vmem>>, %arg6: memref<256x128xbf16, #tpu.memory_space<vmem>>, %arg7: memref<1x128xf32, #tpu.memory_space<vmem>>, %arg8: memref<64x6xbf16, #tpu.memory_space<vmem>>, %arg9: memref<1x6xf32, #tpu.memory_space<vmem>>, %arg10: memref<9x256xf32, #tpu.memory_space<vmem>>) attributes {dimension_semantics = [#tpu.dimension_semantics<parallel>], iteration_bounds = array<i64: 2>, scalar_prefetch = 0 : i64, scratch_operands = 0 : i64, tpu.core_type = #tpu.core_type<tc>, window_params = [{transform_indices = @transform_0, window_bounds = array<i64: 256, 16>}, {pipeline_mode = #tpu.pipeline_mode<synchronous>, transform_indices = @transform_1, window_bounds = array<i64: 16, 128>}, {pipeline_mode = #tpu.pipeline_mode<synchronous>, transform_indices = @transform_2, window_bounds = array<i64: 1, 128>}, {pipeline_mode = #tpu.pipeline_mode<synchronous>, transform_indices = @transform_3, window_bounds = array<i64: 128, 256>}, {pipeline_mode = #tpu.pipeline_mode<synchronous>, transform_indices = @transform_4, window_bounds = array<i64: 1, 256>}, {pipeline_mode = #tpu.pipeline_mode<synchronous>, transform_indices = @transform_5, window_bounds = array<i64: 256, 128>}, {pipeline_mode = #tpu.pipeline_mode<synchronous>, transform_indices = @transform_6, window_bounds = array<i64: 1, 128>}, {pipeline_mode = #tpu.pipeline_mode<synchronous>, transform_indices = @transform_7, window_bounds = array<i64: 64, 6>}, {pipeline_mode = #tpu.pipeline_mode<synchronous>, transform_indices = @transform_8, window_bounds = array<i64: 1, 6>}, {transform_indices = @transform_9, window_bounds = array<i64: 9, 256>}]} {
    %c0 = arith.constant 0 : index
    %c0_0 = arith.constant 0 : index
    %0 = vector.load %arg1[%c0, %c0_0] : memref<256x16xf32, #tpu.memory_space<vmem>>, vector<256x16xf32>
    %1 = arith.truncf %0 : vector<256x16xf32> to vector<256x16xbf16>
    %c0_1 = arith.constant 0 : index
    %c0_2 = arith.constant 0 : index
    %2 = vector.load %arg2[%c0_1, %c0_2] : memref<16x128xbf16, #tpu.memory_space<vmem>>, vector<16x128xbf16>
    %cst = arith.constant dense<0.000000e+00> : vector<256x128xf32>
    %3 = tpu.matmul %1, %2, %cst {dimension_numbers = #tpu.dot_dimension_numbers<[1], [0], [0], [1], [0, 0, 1, 1], [], []>} : vector<256x16xbf16>, vector<16x128xbf16>, vector<256x128xf32> -> vector<256x128xf32>
    %c0_3 = arith.constant 0 : index
    %c0_4 = arith.constant 0 : index
    %4 = vector.load %arg3[%c0_3, %c0_4] : memref<1x128xf32, #tpu.memory_space<vmem>>, vector<1x128xf32>
    %5 = vector.broadcast %4 : vector<1x128xf32> to vector<256x128xf32>
    %6 = arith.addf %3, %5 : vector<256x128xf32>
    %cst_5 = arith.constant 0.000000e+00 : f32
    %7 = vector.broadcast %cst_5 : f32 to vector<256x128xf32>
    %8 = arith.maximumf %6, %7 : vector<256x128xf32>
    %9 = arith.truncf %8 : vector<256x128xf32> to vector<256x128xbf16>
    %c0_6 = arith.constant 0 : index
    %c0_7 = arith.constant 0 : index
    %10 = vector.load %arg4[%c0_6, %c0_7] : memref<128x256xbf16, #tpu.memory_space<vmem>>, vector<128x256xbf16>
    %cst_8 = arith.constant dense<0.000000e+00> : vector<256x256xf32>
    %11 = tpu.matmul %9, %10, %cst_8 {dimension_numbers = #tpu.dot_dimension_numbers<[1], [0], [0], [1], [0, 0, 1, 1], [], []>} : vector<256x128xbf16>, vector<128x256xbf16>, vector<256x256xf32> -> vector<256x256xf32>
    %c0_9 = arith.constant 0 : index
    %c0_10 = arith.constant 0 : index
    %12 = vector.load %arg5[%c0_9, %c0_10] : memref<1x256xf32, #tpu.memory_space<vmem>>, vector<1x256xf32>
    %13 = vector.broadcast %12 : vector<1x256xf32> to vector<256x256xf32>
    %14 = arith.addf %11, %13 : vector<256x256xf32>
    %cst_11 = arith.constant 0.000000e+00 : f32
    %15 = vector.broadcast %cst_11 : f32 to vector<256x256xf32>
    %16 = arith.maximumf %14, %15 : vector<256x256xf32>
    %17 = arith.truncf %16 : vector<256x256xf32> to vector<256x256xbf16>
    %c0_12 = arith.constant 0 : index
    %c0_13 = arith.constant 0 : index
    %18 = vector.load %arg6[%c0_12, %c0_13] : memref<256x128xbf16, #tpu.memory_space<vmem>>, vector<256x128xbf16>
    %cst_14 = arith.constant dense<0.000000e+00> : vector<256x128xf32>
    %19 = tpu.matmul %17, %18, %cst_14 {dimension_numbers = #tpu.dot_dimension_numbers<[1], [0], [0], [1], [0, 0, 1, 1], [], []>} : vector<256x256xbf16>, vector<256x128xbf16>, vector<256x128xf32> -> vector<256x128xf32>
    %c0_15 = arith.constant 0 : index
    %c0_16 = arith.constant 0 : index
    %20 = vector.load %arg7[%c0_15, %c0_16] : memref<1x128xf32, #tpu.memory_space<vmem>>, vector<1x128xf32>
    %21 = vector.broadcast %20 : vector<1x128xf32> to vector<256x128xf32>
    %22 = arith.addf %19, %21 : vector<256x128xf32>
    %23 = vector.extract_strided_slice %22 {offsets = [0, 0], sizes = [256, 64], strides = [1, 1]} : vector<256x128xf32> to vector<256x64xf32>
    %cst_17 = arith.constant 0.000000e+00 : f32
    %24 = vector.broadcast %cst_17 : f32 to vector<256x64xf32>
    %25 = arith.maximumf %23, %24 : vector<256x64xf32>
    %26 = vector.extract_strided_slice %22 {offsets = [0, 64], sizes = [256, 3], strides = [1, 1]} : vector<256x128xf32> to vector<256x3xf32>
    %cst_18 = arith.constant dense<0xFF800000> : vector<256xf32>
    %27 = vector.multi_reduction <maximumf>, %26, %cst_18 [1] : vector<256x3xf32> to vector<256xf32>
    %28 = vector.shape_cast %27 : vector<256xf32> to vector<256x1xf32>
    %29 = vector.broadcast %28 : vector<256x1xf32> to vector<256x3xf32>
    %30 = arith.subf %26, %29 : vector<256x3xf32>
    %31 = math.exp %30 : vector<256x3xf32>
    %cst_19 = arith.constant dense<0.000000e+00> : vector<256xf32>
    %32 = vector.multi_reduction <add>, %31, %cst_19 [1] : vector<256x3xf32> to vector<256xf32>
    %33 = vector.shape_cast %32 : vector<256xf32> to vector<256x1xf32>
    %34 = vector.broadcast %33 : vector<256x1xf32> to vector<256x3xf32>
    %35 = arith.divf %31, %34 : vector<256x3xf32>
    %36 = arith.truncf %25 : vector<256x64xf32> to vector<256x64xbf16>
    %c0_20 = arith.constant 0 : index
    %c0_21 = arith.constant 0 : index
    %37 = vector.load %arg8[%c0_20, %c0_21] : memref<64x6xbf16, #tpu.memory_space<vmem>>, vector<64x6xbf16>
    %cst_22 = arith.constant dense<0.000000e+00> : vector<256x6xf32>
    %38 = tpu.matmul %36, %37, %cst_22 {dimension_numbers = #tpu.dot_dimension_numbers<[1], [0], [0], [1], [0, 0, 1, 1], [], []>} : vector<256x64xbf16>, vector<64x6xbf16>, vector<256x6xf32> -> vector<256x6xf32>
    %c0_23 = arith.constant 0 : index
    %c0_24 = arith.constant 0 : index
    %39 = vector.load %arg9[%c0_23, %c0_24] : memref<1x6xf32, #tpu.memory_space<vmem>>, vector<1x6xf32>
    %40 = vector.broadcast %39 : vector<1x6xf32> to vector<256x6xf32>
    %41 = arith.addf %38, %40 : vector<256x6xf32>
    %42 = vector.extract_strided_slice %41 {offsets = [0, 0], sizes = [256, 3], strides = [1, 1]} : vector<256x6xf32> to vector<256x3xf32>
    %43 = vector.extract_strided_slice %41 {offsets = [0, 3], sizes = [256, 3], strides = [1, 1]} : vector<256x6xf32> to vector<256x3xf32>
    %44 = arith.negf %43 : vector<256x3xf32>
    %45 = math.exp %44 : vector<256x3xf32>
    %cst_25 = arith.constant 1.000000e+00 : f32
    %46 = vector.broadcast %cst_25 : f32 to vector<256x3xf32>
    %47 = arith.addf %46, %45 : vector<256x3xf32>
    %48 = arith.divf %46, %47 : vector<256x3xf32>
    %cst_26 = arith.constant 0.353553385 : f32
    %49 = vector.broadcast %cst_26 : f32 to vector<256x3xf32>
    %50 = arith.mulf %48, %49 : vector<256x3xf32>
    %cst_27 = arith.constant 1.06066012 : f32
    %51 = vector.broadcast %cst_27 : f32 to vector<256x3xf32>
    %52 = arith.addf %50, %51 : vector<256x3xf32>
    %53 = tpu.concatenate %35, %42, %52 in 1 : vector<256x3xf32>, vector<256x3xf32>, vector<256x3xf32> -> vector<256x9xf32>
    %54 = tpu.transpose %53, [1, 0] : vector<256x9xf32> -> vector<9x256xf32>
    %c0_28 = arith.constant 0 : index
    %c0_29 = arith.constant 0 : index
    %55 = vector.load %arg10[%c0_28, %c0_29] : memref<9x256xf32, #tpu.memory_space<vmem>>, vector<9x256xf32>
    tpu.vector_store %arg10[%c0_28, %c0_29], %54 {strides = array<i32>} : memref<9x256xf32, #tpu.memory_space<vmem>>, vector<9x256xf32>,
    return
  }
  func.func @transform_0(%arg0: i32) -> (i32, i32) {
    %c0_i32 = arith.constant 0 : i32
    %c0_i32_0 = arith.constant 0 : i32
    return %arg0, %c0_i32 : i32, i32
  }
  func.func @transform_1(%arg0: i32) -> (i32, i32) {
    %c0_i32 = arith.constant 0 : i32
    %c0_i32_0 = arith.constant 0 : i32
    %c0_i32_1 = arith.constant 0 : i32
    return %c0_i32, %c0_i32_0 : i32, i32
  }
  func.func @transform_2(%arg0: i32) -> (i32, i32) {
    %c0_i32 = arith.constant 0 : i32
    %c0_i32_0 = arith.constant 0 : i32
    %c0_i32_1 = arith.constant 0 : i32
    return %c0_i32, %c0_i32_0 : i32, i32
  }
  func.func @transform_3(%arg0: i32) -> (i32, i32) {
    %c0_i32 = arith.constant 0 : i32
    %c0_i32_0 = arith.constant 0 : i32
    %c0_i32_1 = arith.constant 0 : i32
    return %c0_i32, %c0_i32_0 : i32, i32
  }
  func.func @transform_4(%arg0: i32) -> (i32, i32) {
    %c0_i32 = arith.constant 0 : i32
    %c0_i32_0 = arith.constant 0 : i32
    %c0_i32_1 = arith.constant 0 : i32
    return %c0_i32, %c0_i32_0 : i32, i32
  }
  func.func @transform_5(%arg0: i32) -> (i32, i32) {
    %c0_i32 = arith.constant 0 : i32
    %c0_i32_0 = arith.constant 0 : i32
    %c0_i32_1 = arith.constant 0 : i32
    return %c0_i32, %c0_i32_0 : i32, i32
  }
  func.func @transform_6(%arg0: i32) -> (i32, i32) {
    %c0_i32 = arith.constant 0 : i32
    %c0_i32_0 = arith.constant 0 : i32
    %c0_i32_1 = arith.constant 0 : i32
    return %c0_i32, %c0_i32_0 : i32, i32
  }
  func.func @transform_7(%arg0: i32) -> (i32, i32) {
    %c0_i32 = arith.constant 0 : i32
    %c0_i32_0 = arith.constant 0 : i32
    %c0_i32_1 = arith.constant 0 : i32
    return %c0_i32, %c0_i32_0 : i32, i32
  }
  func.func @transform_8(%arg0: i32) -> (i32, i32) {
    %c0_i32 = arith.constant 0 : i32
    %c0_i32_0 = arith.constant 0 : i32
    %c0_i32_1 = arith.constant 0 : i32
    return %c0_i32, %c0_i32_0 : i32, i32
  }
  func.func @transform_9(%arg0: i32) -> (i32, i32) {
    %c0_i32 = arith.constant 0 : i32
    %c0_i32_0 = arith.constant 0 : i32
    return %c0_i32, %arg0 : i32, i32
  }
}

</mosaic_0001>

<bundles_post_ra>
// kernel: tpu_custom_call.1
= control target key start
LH: loop header
LB: loop body
LE: loop exit
PB: predicated region body
PF: predicated region fallthrough
CT: control target
= control target key end

     0   :  { %s5166_s0 = inlined_call_operand.vmem [shape: f32[512,16], index: 0, kind: input, shape index: {}]   ;;  %s5167_s1 = inlined_call_operand.vmem [shape: bf16[16,128], index: 1, kind: input, shape index: {}]   ;;  %s5168_s2 = inlined_call_operand.vmem [shape: f32[1,128], index: 2, kind: input, shape index: {}]   ;;  %s5169_s3 = inlined_call_operand.vmem [shape: bf16[128,256], index: 3, kind: input, shape index: {}]   ;;  %s5170_s4 = inlined_call_operand.vmem [shape: f32[1,256], index: 4, kind: input, shape index: {}]   ;;  %s5171_s5 = inlined_call_operand.vmem [shape: bf16[256,128], index: 5, kind: input, shape index: {}]   ;;  %s5172_s6 = inlined_call_operand.vmem [shape: f32[1,128], index: 6, kind: input, shape index: {}]   ;;  %s5173_s7 = inlined_call_operand.vmem [shape: bf16[64,6], index: 7, kind: input, shape index: {}]   ;;  %s5174_s8 = inlined_call_operand.vmem [shape: f32[1,6], index: 8, kind: input, shape index: {}]   ;;  %s5175_s9 = inlined_call_operand.hbm [shape: f32[9,512], index: 9, kind: output, shape index: {}]  }
   0x1   :  { %5178 = sst [smem:[#allocation43_spill]] %s5167_s1 }
   0x2   :  { %14 = vsyncpa [#allocation3], 0 }
   0x3   :  { %16 = vsyncpa [#allocation3 + $0x1], 0  ;;  %s3790_s30 = smov 0   ;;  %s3792_s10 = smov 0  }
   0x4   :  { %s3794_s11 = smov 0   ;;  %s3796_s12 = smov 0  }
   0x5 LB: > { %s3811_s13 = sadd.s32 4294967295, %s3731_s12   ;;  %s2977_s14 = sadd.s32 4294967294, %s3731_s12   ;;  %s3731_s12 = sphi %s3796_s12, %s5261_s12   ;;  %s3727_s11 = sphi %s3794_s11, %s5260_s11   ;;  %s3723_s10 = sphi %s3792_s10, %s5259_s10   ;;  %s3719_s30 = sphi %s3790_s30, %s5258_s30  }
   0x6   : > { %s3815_s15 = sadd.s32 1, %s3731_s12   ;;  %s223_s16 = sadd.s32 1, %s3727_s11 }
   0x7   : > { %s220_s17 = ssub.s32 %s3731_s12, %s3815_s15  ;;  %p233_p0 = scmp.ne.s32.totalorder %s3727_s11, %s3723_s10 }
   0x8   : > { %p221_p1 = scmp.eq.s32.totalorder %s220_s17, 0  ;;  %p234_p2 = scmp.eq.s32.totalorder %s3811_s13, 1 }
   0x9   : > { %p239_p3 = scmp.ne.s32.totalorder %s3723_s10, %s3719_s30  ;;  %p240_p4 = scmp.eq.s32.totalorder %s2977_s14, 1 }
   0xa   : > { %s3826_s18 = scalar_select %p221_p1, %s3727_s11, %s223_s16  }
   0xb   : > { %p3828_p5 = por %p234_p2, %p233_p0  ;;  %p3832_p6 = por %p240_p4, %p239_p3 }
   0xc   : > { %p2980_p7 = scmp.ge.s32.totalorder %s3731_s12, 1  ;;  %p291_p8 = scmp.lt.s32.totalorder %s3731_s12, 3 }
   0xe   : > { %p292_p9 = pnand %p2980_p7, %p291_p8 }
  0x10   : > { %295 = sbr.rel (%p292_p9) target bundleno = 1926 (0x786), region = 56 }
  0x15   : > { %s5181_s1 = sld [smem:[#allocation43_spill]]  ;;  %s2982_s23 = sshll.u32 %s3811_s13, 5  ;;  %v3371_v1 = vld [vmem:[%s5169_s3 + $0x74] ss:$8 sps:$4 sm:$0xff]   ;;  %v3373_v2 = vld [vmem:[%s5169_s3 + $0x70] ss:$8 sps:$4 sm:$0xff]  }
  0x16   : > { %p328_p10 = scmp.lt.s32.totalorder %s2982_s23, 63  ;;  %764 = vmatprep.subr.bf16.mxu1 %v3371_v1  ;;  %v3374_v3 = vld [vmem:[%s5169_s3 + $0x64] ss:$8 sps:$4 sm:$0xff]   ;;  %v3376_v4 = vld [vmem:[%s5169_s3 + $0x60] ss:$8 sps:$4 sm:$0xff]   ;;  %vm398_vm0 = vcmask 130048  }
  0x17   : > { %765 = vmatpush1.bf16.msra.mxu1 %v3373_v2  ;;  %v3377_v5 = vld [vmem:[%s5169_s3 + $0x54] ss:$8 sps:$4 sm:$0xff]   ;;  %v3379_v6 = vld [vmem:[%s5169_s3 + $0x50] ss:$8 sps:$4 sm:$0xff]   ;;  %v3380_v16 = vld [vmem:[%s5169_s3 + $0x44] ss:$8 sps:$4 sm:$0xff]  }
  0x18   : > { %s5263_s23 = smov (!%p328_p10, %s2982_s23), 63  ;;  %766 = vmatprep.subr.bf16.mxu1 %v3374_v3  ;;  %v3382_v19 = vld [vmem:[%s5169_s3 + $0x40] ss:$8 sps:$4 sm:$0xff]   ;;  %v3383_v24 = vld [vmem:[%s5169_s3 + $0x34] ss:$8 sps:$4 sm:$0xff]   ;;  %v3733_v1 = vmov 0  }
  0x19   : > { %s2983_s17 = sshll.u32 %s5263_s23, 3  ;;  %v3385_v27 = vld [vmem:[%s5169_s3 + $0x30] ss:$8 sps:$4 sm:$0xff]   ;;  %v3386_v59 = vld [vmem:[%s5169_s3 + $0x24] ss:$8 sps:$4 sm:$0xff]   ;;  %796 = vmatprep.mubr.bf16.mxu1 %v3733_v1  ;;  %vm1381_vm1 = vcmask 548352  }
  0x1a   : > { %s3860_s26 = scalar_lea.vmem %s5166_s0, %s2983_s17  ;;  %v3388_v60 = vld [vmem:[%s5169_s3 + $0x20] ss:$8 sps:$4 sm:$0xff]   ;;  %v3389_v61 = vld [vmem:[%s5169_s3 + $0x14] ss:$8 sps:$4 sm:$0xff]   ;;  %v3391_v62 = vld [vmem:[%s5169_s3 + $0x10] ss:$8 sps:$4 sm:$0xff]  }
  0x1b   : > { %v3370_v0 = vld [vmem:[%s5181_s1] sm:$0xff]   ;;  %v336_v8 = vld [vmem:[%s3860_s26 + $0x8] sm:$0xff]  ;;  %v337_v9 = vld [vmem:[%s3860_s26 + $0x10] sm:$0xff]  ;;  %767 = vmatpush1.bf16.msra.mxu1 %v3376_v4  ;;  %vm1918_vm2 = vcmask 523264   ;;  %s3734_s28 = smov 64   ;;  %s3735_s14 = smov 3  }
  0x1c   : > { %3243 = vmatprep.subr.bf16.mxu0 %v3370_v0  ;;  %v335_v7 = vld [vmem:[%s3860_s26] sm:$0xff]  ;;  %v338_v11 = vld [vmem:[%s3860_s26 + $0x18] sm:$0xff]  ;;  %v340_v13 = vld [vmem:[%s3860_s26 + $0x28] sm:$0xff]  ;;  %768 = vmatprep.subr.bf16.mxu1 %v3377_v5  ;;  %vm1702_vm3 = vcmask 23552   ;;  %vm2800_vm4 = vcmask 48128   ;;  %s324_s16 = sand.u32 1, %s3723_s10  }
  0x1d   : > { %3244 = vmatpush3.bf16.msra.mxu0 %v3370_v0  ;;  %v367_v10 = vpack.c.bf16 %v336_v8, %v335_v7  ;;  %v339_v12 = vld [vmem:[%s3860_s26 + $0x20] sm:$0xff]  ;;  %v368_v14 = vpack.c.bf16 %v338_v11, %v337_v9  ;;  %v341_v17 = vld [vmem:[%s3860_s26 + $0x30] sm:$0xff]  ;;  %v342_v18 = vld [vmem:[%s3860_s26 + $0x38] sm:$0xff]  ;;  %s2981_s17 = sshll.u32 %s324_s16, 5  ;;  %s3093_s24 = sshll.u32 %s3811_s13, 8 }
  0x1e   : > { %v369_v15 = vpack.c.bf16 %v340_v13, %v339_v12  ;;  %v343_v20 = vld [vmem:[%s3860_s26 + $0x40] sm:$0xff]  ;;  %v344_v21 = vld [vmem:[%s3860_s26 + $0x48] sm:$0xff]  ;;  %v370_v22 = vpack.c.bf16 %v342_v18, %v341_v17  ;;  %v345_v25 = vld [vmem:[%s3860_s26 + $0x50] sm:$0xff]  ;;  %s326_s21 = scalar_lea.vmem [#allocation2], %s2981_s17  ;;  %s5122_s1 = scalar_lea.hbm %s5175_s9, %s3093_s24 }
  0x1f   : > { %3245 = vmatprep.mubr.msk.bf16.mxu0 %vm398_vm0, %v367_v10  ;;  %769 = vmatpush1.bf16.msra.mxu1 %v3379_v6  ;;  %v371_v23 = vpack.c.bf16 %v344_v21, %v343_v20  ;;  %v346_v26 = vld [vmem:[%s3860_s26 + $0x58] sm:$0xff]  ;;  %v347_v28 = vld [vmem:[%s3860_s26 + $0x60] sm:$0xff]  ;;  %v348_v29 = vld [vmem:[%s3860_s26 + $0x68] sm:$0xff]  ;;  %s2915_s22 = sshll.u32 %s326_s21, 4  ;;  %s5126_s23 = scalar_lea.sflag [#allocation3], %s324_s16  ;;  %s5117_s22 = int_to_ptr.vmem [resolvable:$true] %s2915_s22 }
  0x20   : > { %3246 = vmatmul.mubr.msk.bf16.vlgmr.msra.gmra.mxu0 %vm398_vm0, %v368_v14  ;;  %770 = vmatprep.subr.bf16.mxu1 %v3380_v16  ;;  %v372_v30 = vpack.c.bf16 %v346_v26, %v345_v25  ;;  %v373_v31 = vpack.c.bf16 %v348_v29, %v347_v28  ;;  %v349_v32 = vld [vmem:[%s3860_s26 + $0x70] sm:$0xff]  ;;  %v350_v33 = vld [vmem:[%s3860_s26 + $0x78] sm:$0xff]  ;;  %v351_v34 = vld [vmem:[%s3860_s26 + $0x80] sm:$0xff]  ;;  %s3736_s13 = smov [#allocation2]  }
  0x21   : > { %3249 = vmatprep.mubr.msk.bf16.mxu0 %vm398_vm0, %v369_v15  ;;  %v352_v35 = vld [vmem:[%s3860_s26 + $0x88] sm:$0xff]  ;;  %v374_v36 = vpack.c.bf16 %v350_v33, %v349_v32  ;;  %v353_v38 = vld [vmem:[%s3860_s26 + $0x90] sm:$0xff]  ;;  %v354_v39 = vld [vmem:[%s3860_s26 + $0x98] sm:$0xff]  ;;  %s3675_s29 = sshll.u32 %s3736_s13, 4  ;;  %s3676_s29 = int_to_ptr.vmem [resolvable:$false] %s3675_s29 }
  0x22   : > { %v375_v37 = vpack.c.bf16 %v352_v35, %v351_v34  ;;  %v355_v40 = vld [vmem:[%s3860_s26 + $0xa0] sm:$0xff]  ;;  %v356_v41 = vld [vmem:[%s3860_s26 + $0xa8] sm:$0xff]  ;;  %v376_v42 = vpack.c.bf16 %v354_v39, %v353_v38  ;;  %v357_v44 = vld [vmem:[%s3860_s26 + $0xb0] sm:$0xff]  ;;  %p3678_p0 = scmp.lt.s32.totalorder %s5117_s22, %s3676_s29 }
  0x23   : > { %771 = vmatpush1.bf16.msra.mxu1 %v3382_v19  ;;  %v377_v43 = vpack.c.bf16 %v356_v41, %v355_v40  ;;  %v358_v45 = vld [vmem:[%s3860_s26 + $0xb8] sm:$0xff]  ;;  %v359_v46 = vld [vmem:[%s3860_s26 + $0xc0] sm:$0xff]  ;;  %v360_v47 = vld [vmem:[%s3860_s26 + $0xc8] sm:$0xff] }
  0x24   : > { %772 = vmatprep.subr.bf16.mxu1 %v3383_v24  ;;  %v378_v48 = vpack.c.bf16 %v358_v45, %v357_v44  ;;  %v379_v49 = vpack.c.bf16 %v360_v47, %v359_v46  ;;  %v361_v50 = vld [vmem:[%s3860_s26 + $0xd0] sm:$0xff]  ;;  %v362_v51 = vld [vmem:[%s3860_s26 + $0xd8] sm:$0xff]  ;;  %v363_v52 = vld [vmem:[%s3860_s26 + $0xe0] sm:$0xff] }
  0x25   : > { %v364_v53 = vld [vmem:[%s3860_s26 + $0xe8] sm:$0xff]  ;;  %v380_v54 = vpack.c.bf16 %v362_v51, %v361_v50  ;;  %v365_v56 = vld [vmem:[%s3860_s26 + $0xf0] sm:$0xff]  ;;  %v366_v57 = vld [vmem:[%s3860_s26 + $0xf8] sm:$0xff]  ;;  %s3677_s26 = scalar_lea.vmem %s3676_s29, 1024 }
  0x26   : > { %v381_v55 = vpack.c.bf16 %v364_v53, %v363_v52  ;;  %v382_v58 = vpack.c.bf16 %v366_v57, %v365_v56  ;;  %v3392_v63 = vld [vmem:[%s5169_s3 + $0x4] ss:$8 sps:$4 sm:$0xff]   ;;  %v3394_v0 = vld [vmem:[%s5169_s3] ss:$8 sps:$4 sm:$0xff]   ;;  %v3395_v7 = vld [vmem:[%s5171_s5 + $0x78] sm:$0xff]  }
  0x27   : > { %773 = vmatpush1.bf16.msra.mxu1 %v3385_v27  ;;  %v3947_v4 = vld [vmem:[%s5168_s2] ss:$0 sm:$0xff]  ;;  %v3396_v8 = vld [vmem:[%s5171_s5 + $0x38] sm:$0xff]   ;;  %v3397_v9 = vld [vmem:[%s5171_s5 + $0x70] sm:$0xff]   ;;  %3111 = vmatprep.subr.bf16.mxu0 %v3395_v7 }
  0x28   : > { %3250 = vmatmul.mubr.msk.bf16.gmra.mxu0 %vm398_vm0, %v370_v22  ;;  %774 = vmatprep.subr.bf16.mxu1 %v3386_v59  ;;  %v3398_v13 = vld [vmem:[%s5171_s5 + $0x30] sm:$0xff]   ;;  %v3399_v16 = vld [vmem:[%s5171_s5 + $0x68] sm:$0xff]   ;;  %v3402_v26 = vld [vmem:[%s5171_s5 + $0x20] sm:$0xff]  }
  0x29   : > { %3253 = vmatprep.mubr.msk.bf16.mxu0 %vm398_vm0, %v371_v23  ;;  %3112 = vmatpush3.bf16.msra.mxu0 %v3396_v8  ;;  %v3400_v21 = vld [vmem:[%s5171_s5 + $0x28] sm:$0xff]   ;;  %v3401_v23 = vld [vmem:[%s5171_s5 + $0x60] sm:$0xff]   ;;  %v3403_v28 = vld [vmem:[%s5171_s5 + $0x58] sm:$0xff]  }
  0x2a   : > { %3113 = vmatprep.subr.bf16.mxu0 %v3397_v9  ;;  %v3404_v33 = vld [vmem:[%s5171_s5 + $0x18] sm:$0xff]   ;;  %v3405_v34 = vld [vmem:[%s5171_s5 + $0x50] sm:$0xff]   ;;  %v3407_v39 = vld [vmem:[%s5171_s5 + $0x48] sm:$0xff]  }
  0x2b   : > { %775 = vmatpush1.bf16.msra.mxu1 %v3388_v60  ;;  %v3406_v38 = vld [vmem:[%s5171_s5 + $0x10] sm:$0xff]   ;;  %v3408_v44 = vld [vmem:[%s5171_s5 + $0x8] sm:$0xff]  }
  0x2c   : > { %776 = vmatprep.subr.bf16.mxu1 %v3389_v61 }
  0x2d   : > { %3114 = vmatpush3.bf16.msra.mxu0 %v3398_v13 }
  0x2e   : > { %3115 = vmatprep.subr.bf16.mxu0 %v3399_v16 }
  0x2f   : > { %777 = vmatpush1.bf16.msra.mxu1 %v3391_v62 }
  0x30   : > { %3254 = vmatmul.mubr.msk.bf16.gmra.mxu0 %vm398_vm0, %v372_v30  ;;  %778 = vmatprep.subr.bf16.mxu1 %v3392_v63 }
  0x31   : > { %3257 = vmatprep.mubr.msk.bf16.mxu0 %vm398_vm0, %v373_v31  ;;  %3116 = vmatpush3.bf16.msra.mxu0 %v3400_v21 }
  0x32   : > { %3117 = vmatprep.subr.bf16.mxu0 %v3401_v23 }
  0x33   : > { %779 = vmatpush1.bf16.msra.mxu1 %v3394_v0 }
  0x35   : > { %3118 = vmatpush3.bf16.msra.mxu0 %v3402_v26 }
  0x36   : > { %3119 = vmatprep.subr.bf16.mxu0 %v3403_v28 }
  0x38   : > { %3258 = vmatmul.mubr.msk.bf16.gmra.mxu0 %vm398_vm0, %v374_v36 }
  0x39   : > { %3261 = vmatprep.mubr.msk.bf16.mxu0 %vm398_vm0, %v375_v37  ;;  %3120 = vmatpush3.bf16.msra.mxu0 %v3404_v33 }
  0x3a   : > { %3121 = vmatprep.subr.bf16.mxu0 %v3405_v34  ;;  %v3410_v34 = vld [vmem:[%s5171_s5] sm:$0xff]  }
  0x3d   : > { %3122 = vmatpush3.bf16.msra.mxu0 %v3406_v38 }
  0x3e   : > { %3123 = vmatprep.subr.bf16.mxu0 %v3407_v39 }
  0x40   : > { %3262 = vmatmul.mubr.msk.bf16.gmra.mxu0 %vm398_vm0, %v376_v42 }
  0x41   : > { %3265 = vmatprep.mubr.msk.bf16.mxu0 %vm398_vm0, %v377_v43  ;;  %3124 = vmatpush3.bf16.msra.mxu0 %v3408_v44 }
  0x48   : > { %3266 = vmatmul.mubr.msk.bf16.gmra.mxu0 %vm398_vm0, %v378_v48 }
  0x49   : > { %3269 = vmatprep.mubr.msk.bf16.mxu0 %vm398_vm0, %v379_v49 }
  0x50   : > { %3270 = vmatmul.mubr.msk.bf16.gmra.mxu0 %vm398_vm0, %v380_v54 }
  0x51   : > { %3273 = vmatprep.mubr.msk.bf16.mxu0 %vm398_vm0, %v381_v55 }
  0x58   : > { %3274 = vmatmul.mubr.msk.bf16.gmra.mxu0 %vm398_vm0, %v382_v58 }
  0xe0   : > { %v3247_v2 = vpop.f32.mrf.mxu0 }
  0xe1   : > { %v490_v22 = vadd.f32 %v3247_v2, %v3947_v4 }
  0xe2   : > { %v481_v3 = vpop.f32.mrf.mxu0 }
  0xe3   : > { %v482_v6 = vadd.f32 %v3947_v4, %v481_v3  ;;  %v610_v27 = vmax.f32 %v490_v22, 0.0 }
  0xe4   : > { %v3248_v5 = vpop.f32.mrf.mxu0 }
  0xe5   : > { %v608_v14 = vmax.f32 %v482_v6, 0.0  ;;  %v493_v18 = vadd.f32 %v3248_v5, %v3947_v4 }
  0xe6   : > { %v484_v10 = vpop.f32.mrf.mxu0 }
  0xe7   : > { %v485_v11 = vadd.f32 %v3947_v4, %v484_v10  ;;  %v611_v24 = vmax.f32 %v493_v18, 0.0 }
  0xe8   : > { %v3251_v12 = vpop.f32.mrf.mxu0 }
  0xe9   : > { %v609_v15 = vmax.f32 %v485_v11, 0.0  ;;  %v641_v29 = vpack.c.bf16 %v611_v24, %v610_v27  ;;  %v506_v40 = vadd.f32 %v3251_v12, %v3947_v4 }
  0xea   : > { %v497_v17 = vpop.f32.mrf.mxu0 }
  0xeb   : > { %v640_v19 = vpack.c.bf16 %v609_v15, %v608_v14  ;;  %v498_v30 = vadd.f32 %v3947_v4, %v497_v17  ;;  %v614_v45 = vmax.f32 %v506_v40, 0.0 }
  0xec   : > { %v3252_v20 = vpop.f32.mrf.mxu0 }
  0xed   : > { %797 = vmatmul.mubr.bf16.vlgmr.msra.gmra.mxu1 %v640_v19  ;;  %v612_v35 = vmax.f32 %v498_v30, 0.0  ;;  %v509_v41 = vadd.f32 %v3252_v20, %v3947_v4 }
  0xee   : > { %806 = vmatprep.mubr.bf16.mxu1 %v3733_v1  ;;  %v500_v25 = vpop.f32.mrf.mxu0 }
  0xef   : > { %v501_v31 = vadd.f32 %v3947_v4, %v500_v25  ;;  %v615_v46 = vmax.f32 %v509_v41, 0.0 }
  0xf0   : > { %v3255_v32 = vpop.f32.mrf.mxu0 }
  0xf1   : > { %v613_v36 = vmax.f32 %v501_v31, 0.0  ;;  %v643_v48 = vpack.c.bf16 %v615_v46, %v614_v45  ;;  %v522_v55 = vadd.f32 %v3255_v32, %v3947_v4  ;;  %v3409_v32 = vld [vmem:[%s5171_s5 + $0x40] sm:$0xff]  }
  0xf2   : > { %v513_v37 = vpop.f32.mrf.mxu0  ;;  %3125 = vmatprep.subr.bf16.mxu0 %v3409_v32 }
  0xf3   : > { %v642_v42 = vpack.c.bf16 %v613_v36, %v612_v35  ;;  %v514_v49 = vadd.f32 %v3947_v4, %v513_v37  ;;  %v618_v59 = vmax.f32 %v522_v55, 0.0  ;;  %3126 = vmatpush3.bf16.msra.mxu0 %v3410_v34 }
  0xf4   : > { %v3256_v43 = vpop.f32.mrf.mxu0 }
  0xf5   : > { %807 = vmatmul.mubr.bf16.gmra.mxu1 %v641_v29  ;;  %v616_v52 = vmax.f32 %v514_v49, 0.0  ;;  %v525_v56 = vadd.f32 %v3256_v43, %v3947_v4 }
  0xf6   : > { %816 = vmatprep.mubr.bf16.mxu1 %v3733_v1  ;;  %v516_v47 = vpop.f32.mrf.mxu0 }
  0xf7   : > { %v517_v50 = vadd.f32 %v3947_v4, %v516_v47  ;;  %v619_v60 = vmax.f32 %v525_v56, 0.0 }
  0xf8   : > { %v3259_v51 = vpop.f32.mrf.mxu0 }
  0xf9   : > { %v617_v53 = vmax.f32 %v517_v50, 0.0  ;;  %v645_v62 = vpack.c.bf16 %v619_v60, %v618_v59  ;;  %v538_v7 = vadd.f32 %v3259_v51, %v3947_v4 }
  0xfa   : > { %v529_v54 = vpop.f32.mrf.mxu0 }
  0xfb   : > { %v644_v57 = vpack.c.bf16 %v617_v53, %v616_v52  ;;  %v530_v63 = vadd.f32 %v3947_v4, %v529_v54  ;;  %v622_v11 = vmax.f32 %v538_v7, 0.0  ;;  %v3411_v7 = vld [vmem:[%s5173_s7 + $0x18] sm:$0xff]  }
  0xfc   : > { %v3260_v58 = vpop.f32.mrf.mxu0  ;;  %3277 = vmatprep.subr.bf16.mxu0 %v3411_v7  ;;  %3317 = vmatprep.subr.bf16.mxu1 %v3411_v7 }
  0xfd   : > { %817 = vmatmul.mubr.bf16.gmra.mxu1 %v642_v42  ;;  %v620_v3 = vmax.f32 %v530_v63, 0.0  ;;  %v541_v8 = vadd.f32 %v3260_v58, %v3947_v4 }
  0xfe   : > { %826 = vmatprep.mubr.bf16.mxu1 %v3733_v1  ;;  %v532_v61 = vpop.f32.mrf.mxu0  ;;  %3321 = vmatpush3.bf16.msra.mxu1 %v3411_v7 }
  0xff   : > { %v533_v0 = vadd.f32 %v3947_v4, %v532_v61  ;;  %v623_v12 = vmax.f32 %v541_v8, 0.0  ;;  %v674_v8 = vlaneseq }
 0x100   : > { %v3263_v2 = vpop.f32.mrf.mxu0 }
 0x101   : > { %v621_v5 = vmax.f32 %v533_v0, 0.0  ;;  %v647_v14 = vpack.c.bf16 %v623_v12, %v622_v11  ;;  %v554_v21 = vadd.f32 %v3263_v2, %v3947_v4 }
 0x102   : > { %v545_v6 = vpop.f32.mrf.mxu0 }
 0x103   : > { %v646_v9 = vpack.c.bf16 %v621_v5, %v620_v3  ;;  %v546_v15 = vadd.f32 %v3947_v4, %v545_v6  ;;  %v626_v25 = vmax.f32 %v554_v21, 0.0  ;;  %v3413_v21 = vld [vmem:[%s5173_s7 + $0x8] sm:$0xff]  }
 0x104   : > { %v3264_v10 = vpop.f32.mrf.mxu0 }
 0x105   : > { %827 = vmatmul.mubr.bf16.gmra.mxu1 %v643_v48  ;;  %v624_v18 = vmax.f32 %v546_v15, 0.0  ;;  %v557_v22 = vadd.f32 %v3264_v10, %v3947_v4  ;;  %v3412_v15 = vld [vmem:[%s5173_s7 + $0x10] sm:$0xff]  }
 0x106   : > { %836 = vmatprep.mubr.bf16.mxu1 %v3733_v1  ;;  %v548_v13 = vpop.f32.mrf.mxu0  ;;  %3318 = vmatprep.subr.bf16.mxu1 %v3412_v15 }
 0x107   : > { %v549_v16 = vadd.f32 %v3947_v4, %v548_v13  ;;  %v627_v26 = vmax.f32 %v557_v22, 0.0  ;;  %3322 = vmatpush3.bf16.msra.mxu1 %v3412_v15 }
 0x108   : > { %v3267_v17 = vpop.f32.mrf.mxu0  ;;  %3319 = vmatprep.subr.bf16.mxu1 %v3413_v21 }
 0x109   : > { %v625_v19 = vmax.f32 %v549_v16, 0.0  ;;  %v649_v29 = vpack.c.bf16 %v627_v26, %v626_v25  ;;  %v570_v38 = vadd.f32 %v3267_v17, %v3947_v4 }
 0x10a   : > { %v561_v20 = vpop.f32.mrf.mxu0 }
 0x10b   : > { %v648_v23 = vpack.c.bf16 %v625_v19, %v624_v18  ;;  %v562_v30 = vadd.f32 %v3947_v4, %v561_v20  ;;  %v630_v42 = vmax.f32 %v570_v38, 0.0  ;;  %3323 = vmatpush3.bf16.msra.mxu1 %v3413_v21 }
 0x10c   : > { %v3268_v24 = vpop.f32.mrf.mxu0 }
 0x10d   : > { %837 = vmatmul.mubr.bf16.gmra.mxu1 %v644_v57  ;;  %v628_v35 = vmax.f32 %v562_v30, 0.0  ;;  %v573_v39 = vadd.f32 %v3268_v24, %v3947_v4 }
 0x10e   : > { %846 = vmatprep.mubr.bf16.mxu1 %v3733_v1  ;;  %v564_v27 = vpop.f32.mrf.mxu0 }
 0x10f   : > { %v565_v31 = vadd.f32 %v3947_v4, %v564_v27  ;;  %v631_v43 = vmax.f32 %v573_v39, 0.0  ;;  %v3414_v27 = vld [vmem:[%s5173_s7] sm:$0xff]  }
 0x110   : > { %v3271_v28 = vpop.f32.mrf.mxu0  ;;  %3320 = vmatprep.subr.bf16.mxu1 %v3414_v27 }
 0x111   : > { %v629_v36 = vmax.f32 %v565_v31, 0.0  ;;  %v651_v47 = vpack.c.bf16 %v631_v43, %v630_v42  ;;  %v586_v53 = vadd.f32 %v3271_v28, %v3947_v4  ;;  %3324 = vmatpush3.bf16.msra.mxu1 %v3414_v27 }
 0x112   : > { %v577_v33 = vpop.f32.mrf.mxu0 }
 0x113   : > { %v650_v40 = vpack.c.bf16 %v629_v36, %v628_v35  ;;  %v578_v44 = vadd.f32 %v3947_v4, %v577_v33  ;;  %v634_v56 = vmax.f32 %v586_v53, 0.0 }
 0x114   : > { %v3272_v37 = vpop.f32.mrf.mxu0 }
 0x115   : > { %847 = vmatmul.mubr.bf16.gmra.mxu1 %v645_v62  ;;  %v632_v48 = vmax.f32 %v578_v44, 0.0  ;;  %v589_v54 = vadd.f32 %v3272_v37, %v3947_v4 }
 0x116   : > { %856 = vmatprep.mubr.bf16.mxu1 %v3733_v1  ;;  %v580_v41 = vpop.f32.mrf.mxu0 }
 0x117   : > { %v581_v45 = vadd.f32 %v3947_v4, %v580_v41  ;;  %v635_v57 = vmax.f32 %v589_v54, 0.0 }
 0x118   : > { %v3275_v46 = vpop.f32.mrf.mxu0 }
 0x119   : > { %v633_v49 = vmax.f32 %v581_v45, 0.0  ;;  %v653_v60 = vpack.c.bf16 %v635_v57, %v634_v56  ;;  %v602_v63 = vadd.f32 %v3275_v46, %v3947_v4 }
 0x11a   : > { %v593_v50 = vpop.f32.mrf.mxu0 }
 0x11b   : > { %v652_v51 = vpack.c.bf16 %v633_v49, %v632_v48  ;;  %v594_v58 = vadd.f32 %v3947_v4, %v593_v50  ;;  %v638_v3 = vmax.f32 %v602_v63, 0.0 }
 0x11c   : > { %v3276_v52 = vpop.f32.mrf.mxu0 }
 0x11d   : > { %857 = vmatmul.mubr.bf16.gmra.mxu1 %v646_v9  ;;  %v636_v61 = vmax.f32 %v594_v58, 0.0  ;;  %v605_v0 = vadd.f32 %v3276_v52, %v3947_v4  ;;  %v675_v9 = vshrl.u32 %v674_v8, 7 }
 0x11e   : > { %866 = vmatprep.mubr.bf16.mxu1 %v3733_v1  ;;  %v596_v55 = vpop.f32.mrf.mxu0 }
 0x11f   : > { %v597_v59 = vadd.f32 %v3947_v4, %v596_v55  ;;  %v639_v5 = vmax.f32 %v605_v0, 0.0  ;;  %v680_v10 = vsub.s32 1, %v675_v9  ;;  %v676_v11 = vsub.s32 0, %v675_v9  ;;  %v672_v4 = vld [vmem:[%s5170_s4] sm:$0x3] }
 0x121   : > { %v637_v62 = vmax.f32 %v597_v59, 0.0  ;;  %v655_v6 = vpack.c.bf16 %v639_v5, %v638_v3  ;;  %v4050_v13 = vrot.slane %v672_v4, %v680_v10 }
 0x123   : > { %v654_v2 = vpack.c.bf16 %v637_v62, %v636_v61 }
 0x125   : > { %867 = vmatmul.mubr.bf16.gmra.mxu1 %v647_v14 }
 0x126   : > { %876 = vmatprep.mubr.bf16.mxu1 %v3733_v1 }
 0x12d   : > { %877 = vmatmul.mubr.bf16.gmra.mxu1 %v648_v23 }
 0x12e   : > { %886 = vmatprep.mubr.bf16.mxu1 %v3733_v1 }
 0x135   : > { %887 = vmatmul.mubr.bf16.gmra.mxu1 %v649_v29 }
 0x136   : > { %896 = vmatprep.mubr.bf16.mxu1 %v3733_v1 }
 0x13d   : > { %897 = vmatmul.mubr.bf16.gmra.mxu1 %v650_v40 }
 0x13e   : > { %906 = vmatprep.mubr.bf16.mxu1 %v3733_v1 }
 0x145   : > { %907 = vmatmul.mubr.bf16.gmra.mxu1 %v651_v47 }
 0x146   : > { %916 = vmatprep.mubr.bf16.mxu1 %v3733_v1 }
 0x14d   : > { %917 = vmatmul.mubr.bf16.gmra.mxu1 %v652_v51 }
 0x14e   : > { %926 = vmatprep.mubr.bf16.mxu1 %v3733_v1 }
 0x155   : > { %927 = vmatmul.mubr.bf16.gmra.mxu1 %v653_v60 }
 0x156   : > { %936 = vmatprep.mubr.bf16.mxu1 %v3733_v1 }
 0x15d   : > { %937 = vmatmul.mubr.bf16.gmra.mxu1 %v654_v2 }
 0x15e   : > { %946 = vmatprep.mubr.bf16.mxu1 %v3733_v1  ;;  %v4052_v1 = vrot.slane %v672_v4, %v676_v11 }
 0x165   : > { %947 = vmatmul.mubr.bf16.gmra.mxu1 %v655_v6 }
 0x1ad   : > { %v798_v12 = vpop.f32.mrf.mxu1 }
 0x1ae   : > { %v799_v19 = vadd.f32 %v798_v12, %v4052_v1 }
 0x1af   : > { %v800_v14 = vpop.f32.mrf.mxu1 }
 0x1b0   : > { %v801_v17 = vadd.f32 %v800_v14, %v4050_v13  ;;  %v957_v28 = vmax.f32 %v799_v19, 0.0 }
 0x1b1   : > { %v802_v16 = vpop.f32.mrf.mxu1 }
 0x1b2   : > { %v803_v18 = vadd.f32 %v802_v16, %v4052_v1  ;;  %v958_v25 = vmax.f32 %v801_v17, 0.0 }
 0x1b3   : > { %v804_v20 = vpop.f32.mrf.mxu1 }
 0x1b4   : > { %v805_v22 = vadd.f32 %v804_v20, %v4050_v13  ;;  %v959_v23 = vmax.f32 %v803_v18, 0.0 }
 0x1b5   : > { %v808_v24 = vpop.f32.mrf.mxu1 }
 0x1b6   : > { %v960_v26 = vmax.f32 %v805_v22, 0.0  ;;  %v1021_v31 = vpack.c.bf16 %v959_v23, %v957_v28  ;;  %v809_v35 = vadd.f32 %v808_v24, %v4052_v1 }
 0x1b7   : > { %v810_v29 = vpop.f32.mrf.mxu1 }
 0x1b8   : > { %v1022_v30 = vpack.c.bf16 %v960_v26, %v958_v25  ;;  %v811_v33 = vadd.f32 %v810_v29, %v4050_v13  ;;  %v961_v42 = vmax.f32 %v809_v35, 0.0 }
 0x1b9   : > { %v812_v32 = vpop.f32.mrf.mxu1 }
 0x1ba   : > { %v813_v34 = vadd.f32 %v812_v32, %v4052_v1  ;;  %1220 = vmatprep.mubr.bf16.mxu0 %v1022_v30  ;;  %v962_v40 = vmax.f32 %v811_v33, 0.0 }
 0x1bb   : > { %v814_v36 = vpop.f32.mrf.mxu1  ;;  %1221 = vmatmul.mubr.bf16.vlgmr.msra.gmra.mxu0 %v1021_v31 }
 0x1bc   : > { %v815_v37 = vadd.f32 %v814_v36, %v4050_v13  ;;  %3278 = vmatpush3.bf16.msra.mxu0 %v3411_v7  ;;  %v963_v38 = vmax.f32 %v813_v34, 0.0 }
 0x1bd   : > { %v818_v39 = vpop.f32.mrf.mxu1  ;;  %3279 = vmatprep.subr.bf16.mxu0 %v3412_v15 }
 0x1be   : > { %v964_v41 = vmax.f32 %v815_v37, 0.0  ;;  %v1023_v45 = vpack.c.bf16 %v963_v38, %v961_v42  ;;  %v819_v49 = vadd.f32 %v818_v39, %v4052_v1 }
 0x1bf   : > { %v820_v43 = vpop.f32.mrf.mxu1 }
 0x1c0   : > { %v1024_v44 = vpack.c.bf16 %v964_v41, %v962_v40  ;;  %3280 = vmatpush3.bf16.msra.mxu0 %v3412_v15  ;;  %v821_v47 = vadd.f32 %v820_v43, %v4050_v13  ;;  %v965_v56 = vmax.f32 %v819_v49, 0.0 }
 0x1c1   : > { %v822_v46 = vpop.f32.mrf.mxu1  ;;  %3281 = vmatprep.subr.bf16.mxu0 %v3413_v21 }
 0x1c2   : > { %v823_v48 = vadd.f32 %v822_v46, %v4052_v1  ;;  %1228 = vmatprep.mubr.bf16.mxu0 %v1024_v44  ;;  %v966_v54 = vmax.f32 %v821_v47, 0.0 }
 0x1c3   : > { %v824_v50 = vpop.f32.mrf.mxu1  ;;  %1229 = vmatmul.mubr.bf16.gmra.mxu0 %v1023_v45 }
 0x1c4   : > { %v825_v51 = vadd.f32 %v824_v50, %v4050_v13  ;;  %3282 = vmatpush3.bf16.msra.mxu0 %v3413_v21  ;;  %v967_v52 = vmax.f32 %v823_v48, 0.0 }
 0x1c5   : > { %v828_v53 = vpop.f32.mrf.mxu1  ;;  %3283 = vmatprep.subr.bf16.mxu0 %v3414_v27 }
 0x1c6   : > { %v968_v55 = vmax.f32 %v825_v51, 0.0  ;;  %v1025_v59 = vpack.c.bf16 %v967_v52, %v965_v56  ;;  %v829_v63 = vadd.f32 %v828_v53, %v4052_v1 }
 0x1c7   : > { %v830_v57 = vpop.f32.mrf.mxu1 }
 0x1c8   : > { %v1026_v58 = vpack.c.bf16 %v968_v55, %v966_v54  ;;  %3284 = vmatpush3.bf16.msra.mxu0 %v3414_v27  ;;  %v831_v61 = vadd.f32 %v830_v57, %v4050_v13  ;;  %v969_v8 = vmax.f32 %v829_v63, 0.0 }
 0x1c9   : > { %v832_v60 = vpop.f32.mrf.mxu1 }
 0x1ca   : > { %v833_v62 = vadd.f32 %v832_v60, %v4052_v1  ;;  %1236 = vmatprep.mubr.bf16.mxu0 %v1026_v58  ;;  %v970_v6 = vmax.f32 %v831_v61, 0.0 }
 0x1cb   : > { %v834_v0 = vpop.f32.mrf.mxu1  ;;  %1237 = vmatmul.mubr.bf16.gmra.mxu0 %v1025_v59 }
 0x1cc   : > { %v835_v2 = vadd.f32 %v834_v0, %v4050_v13  ;;  %v971_v3 = vmax.f32 %v833_v62, 0.0 }
 0x1cd   : > { %v838_v5 = vpop.f32.mrf.mxu1 }
 0x1ce   : > { %v972_v7 = vmax.f32 %v835_v2, 0.0  ;;  %v1027_v11 = vpack.c.bf16 %v971_v3, %v969_v8  ;;  %v839_v15 = vadd.f32 %v838_v5, %v4052_v1 }
 0x1cf   : > { %v840_v9 = vpop.f32.mrf.mxu1 }
 0x1d0   : > { %v1028_v10 = vpack.c.bf16 %v972_v7, %v970_v6  ;;  %v841_v12 = vadd.f32 %v840_v9, %v4050_v13  ;;  %v973_v22 = vmax.f32 %v839_v15, 0.0 }
 0x1d1   : > { %v842_v4 = vpop.f32.mrf.mxu1 }
 0x1d2   : > { %v843_v14 = vadd.f32 %v842_v4, %v4052_v1  ;;  %1244 = vmatprep.mubr.bf16.mxu0 %v1028_v10  ;;  %v974_v20 = vmax.f32 %v841_v12, 0.0 }
 0x1d3   : > { %v844_v16 = vpop.f32.mrf.mxu1  ;;  %1245 = vmatmul.mubr.bf16.gmra.mxu0 %v1027_v11 }
 0x1d4   : > { %v845_v17 = vadd.f32 %v844_v16, %v4050_v13  ;;  %v975_v18 = vmax.f32 %v843_v14, 0.0 }
 0x1d5   : > { %v848_v19 = vpop.f32.mrf.mxu1 }
 0x1d6   : > { %v976_v21 = vmax.f32 %v845_v17, 0.0  ;;  %v1029_v25 = vpack.c.bf16 %v975_v18, %v973_v22  ;;  %v849_v29 = vadd.f32 %v848_v19, %v4052_v1 }
 0x1d7   : > { %v850_v23 = vpop.f32.mrf.mxu1 }
 0x1d8   : > { %v1030_v24 = vpack.c.bf16 %v976_v21, %v974_v20  ;;  %v851_v27 = vadd.f32 %v850_v23, %v4050_v13  ;;  %v977_v36 = vmax.f32 %v849_v29, 0.0 }
 0x1d9   : > { %v852_v26 = vpop.f32.mrf.mxu1 }
 0x1da   : > { %v853_v28 = vadd.f32 %v852_v26, %v4052_v1  ;;  %1252 = vmatprep.mubr.bf16.mxu0 %v1030_v24  ;;  %v978_v34 = vmax.f32 %v851_v27, 0.0 }
 0x1db   : > { %v854_v30 = vpop.f32.mrf.mxu1  ;;  %1253 = vmatmul.mubr.bf16.gmra.mxu0 %v1029_v25 }
 0x1dc   : > { %v855_v31 = vadd.f32 %v854_v30, %v4050_v13  ;;  %v979_v32 = vmax.f32 %v853_v28, 0.0 }
 0x1dd   : > { %v858_v33 = vpop.f32.mrf.mxu1 }
 0x1de   : > { %v980_v35 = vmax.f32 %v855_v31, 0.0  ;;  %v1031_v39 = vpack.c.bf16 %v979_v32, %v977_v36  ;;  %v859_v43 = vadd.f32 %v858_v33, %v4052_v1 }
 0x1df   : > { %v860_v37 = vpop.f32.mrf.mxu1 }
 0x1e0   : > { %v1032_v38 = vpack.c.bf16 %v980_v35, %v978_v34  ;;  %v861_v41 = vadd.f32 %v860_v37, %v4050_v13  ;;  %v981_v50 = vmax.f32 %v859_v43, 0.0 }
 0x1e1   : > { %v862_v40 = vpop.f32.mrf.mxu1 }
 0x1e2   : > { %v863_v42 = vadd.f32 %v862_v40, %v4052_v1  ;;  %1260 = vmatprep.mubr.bf16.mxu0 %v1032_v38  ;;  %v982_v48 = vmax.f32 %v861_v41, 0.0 }
 0x1e3   : > { %v864_v44 = vpop.f32.mrf.mxu1  ;;  %1261 = vmatmul.mubr.bf16.gmra.mxu0 %v1031_v39 }
 0x1e4   : > { %v865_v45 = vadd.f32 %v864_v44, %v4050_v13  ;;  %v983_v46 = vmax.f32 %v863_v42, 0.0 }
 0x1e5   : > { %v868_v47 = vpop.f32.mrf.mxu1 }
 0x1e6   : > { %v984_v49 = vmax.f32 %v865_v45, 0.0  ;;  %v1033_v53 = vpack.c.bf16 %v983_v46, %v981_v50  ;;  %v869_v57 = vadd.f32 %v868_v47, %v4052_v1 }
 0x1e7   : > { %v870_v51 = vpop.f32.mrf.mxu1 }
 0x1e8   : > { %v1034_v52 = vpack.c.bf16 %v984_v49, %v982_v48  ;;  %v871_v55 = vadd.f32 %v870_v51, %v4050_v13  ;;  %v985_v0 = vmax.f32 %v869_v57, 0.0 }
 0x1e9   : > { %v872_v54 = vpop.f32.mrf.mxu1 }
 0x1ea   : > { %v873_v56 = vadd.f32 %v872_v54, %v4052_v1  ;;  %1268 = vmatprep.mubr.bf16.mxu0 %v1034_v52  ;;  %v986_v62 = vmax.f32 %v871_v55, 0.0 }
 0x1eb   : > { %v874_v58 = vpop.f32.mrf.mxu1  ;;  %1269 = vmatmul.mubr.bf16.gmra.mxu0 %v1033_v53 }
 0x1ec   : > { %v875_v59 = vadd.f32 %v874_v58, %v4050_v13  ;;  %v987_v60 = vmax.f32 %v873_v56, 0.0 }
 0x1ed   : > { %v878_v61 = vpop.f32.mrf.mxu1 }
 0x1ee   : > { %v988_v63 = vmax.f32 %v875_v59, 0.0  ;;  %v1035_v5 = vpack.c.bf16 %v987_v60, %v985_v0  ;;  %v879_v9 = vadd.f32 %v878_v61, %v4052_v1 }
 0x1ef   : > { %v880_v2 = vpop.f32.mrf.mxu1 }
 0x1f0   : > { %v1036_v3 = vpack.c.bf16 %v988_v63, %v986_v62  ;;  %v881_v7 = vadd.f32 %v880_v2, %v4050_v13  ;;  %v989_v16 = vmax.f32 %v879_v9, 0.0 }
 0x1f1   : > { %v882_v6 = vpop.f32.mrf.mxu1 }
 0x1f2   : > { %v883_v8 = vadd.f32 %v882_v6, %v4052_v1  ;;  %1276 = vmatprep.mubr.bf16.mxu0 %v1036_v3  ;;  %v990_v14 = vmax.f32 %v881_v7, 0.0 }
 0x1f3   : > { %v884_v10 = vpop.f32.mrf.mxu1  ;;  %1277 = vmatmul.mubr.bf16.gmra.mxu0 %v1035_v5 }
 0x1f4   : > { %v885_v11 = vadd.f32 %v884_v10, %v4050_v13  ;;  %v991_v4 = vmax.f32 %v883_v8, 0.0 }
 0x1f5   : > { %v888_v12 = vpop.f32.mrf.mxu1 }
 0x1f6   : > { %v992_v15 = vmax.f32 %v885_v11, 0.0  ;;  %v1037_v19 = vpack.c.bf16 %v991_v4, %v989_v16  ;;  %v889_v23 = vadd.f32 %v888_v12, %v4052_v1 }
 0x1f7   : > { %v890_v17 = vpop.f32.mrf.mxu1 }
 0x1f8   : > { %v1038_v18 = vpack.c.bf16 %v992_v15, %v990_v14  ;;  %v891_v21 = vadd.f32 %v890_v17, %v4050_v13  ;;  %v993_v30 = vmax.f32 %v889_v23, 0.0 }
 0x1f9   : > { %v892_v20 = vpop.f32.mrf.mxu1 }
 0x1fa   : > { %v893_v22 = vadd.f32 %v892_v20, %v4052_v1  ;;  %1284 = vmatprep.mubr.bf16.mxu0 %v1038_v18  ;;  %v994_v28 = vmax.f32 %v891_v21, 0.0 }
 0x1fb   : > { %v894_v24 = vpop.f32.mrf.mxu1  ;;  %1285 = vmatmul.mubr.bf16.gmra.mxu0 %v1037_v19 }
 0x1fc   : > { %v895_v25 = vadd.f32 %v894_v24, %v4050_v13  ;;  %v995_v26 = vmax.f32 %v893_v22, 0.0 }
 0x1fd   : > { %v898_v27 = vpop.f32.mrf.mxu1 }
 0x1fe   : > { %v996_v29 = vmax.f32 %v895_v25, 0.0  ;;  %v1039_v33 = vpack.c.bf16 %v995_v26, %v993_v30  ;;  %v899_v37 = vadd.f32 %v898_v27, %v4052_v1 }
 0x1ff   : > { %v900_v31 = vpop.f32.mrf.mxu1 }
 0x200   : > { %v1040_v32 = vpack.c.bf16 %v996_v29, %v994_v28  ;;  %v901_v35 = vadd.f32 %v900_v31, %v4050_v13  ;;  %v997_v44 = vmax.f32 %v899_v37, 0.0 }
 0x201   : > { %v902_v34 = vpop.f32.mrf.mxu1 }
 0x202   : > { %v903_v36 = vadd.f32 %v902_v34, %v4052_v1  ;;  %1292 = vmatprep.mubr.bf16.mxu0 %v1040_v32  ;;  %v998_v42 = vmax.f32 %v901_v35, 0.0 }
 0x203   : > { %v904_v38 = vpop.f32.mrf.mxu1  ;;  %1293 = vmatmul.mubr.bf16.gmra.mxu0 %v1039_v33 }
 0x204   : > { %v905_v39 = vadd.f32 %v904_v38, %v4050_v13  ;;  %v999_v40 = vmax.f32 %v903_v36, 0.0 }
 0x205   : > { %v908_v41 = vpop.f32.mrf.mxu1 }
 0x206   : > { %v1000_v43 = vmax.f32 %v905_v39, 0.0  ;;  %v1041_v47 = vpack.c.bf16 %v999_v40, %v997_v44  ;;  %v909_v51 = vadd.f32 %v908_v41, %v4052_v1 }
 0x207   : > { %v910_v45 = vpop.f32.mrf.mxu1 }
 0x208   : > { %v1042_v46 = vpack.c.bf16 %v1000_v43, %v998_v42  ;;  %v911_v49 = vadd.f32 %v910_v45, %v4050_v13  ;;  %v1001_v58 = vmax.f32 %v909_v51, 0.0 }
 0x209   : > { %v912_v48 = vpop.f32.mrf.mxu1 }
 0x20a   : > { %v913_v50 = vadd.f32 %v912_v48, %v4052_v1  ;;  %1300 = vmatprep.mubr.bf16.mxu0 %v1042_v46  ;;  %v1002_v56 = vmax.f32 %v911_v49, 0.0 }
 0x20b   : > { %v914_v52 = vpop.f32.mrf.mxu1  ;;  %1301 = vmatmul.mubr.bf16.gmra.mxu0 %v1041_v47 }
 0x20c   : > { %v915_v53 = vadd.f32 %v914_v52, %v4050_v13  ;;  %v1003_v54 = vmax.f32 %v913_v50, 0.0 }
 0x20d   : > { %v918_v55 = vpop.f32.mrf.mxu1 }
 0x20e   : > { %v1004_v57 = vmax.f32 %v915_v53, 0.0  ;;  %v1043_v61 = vpack.c.bf16 %v1003_v54, %v1001_v58  ;;  %v919_v62 = vadd.f32 %v918_v55, %v4052_v1  ;;  %v4130_v55 = vld [vmem:[%s5172_s6] ss:$0 sm:$0xff] }
 0x20f   : > { %v920_v59 = vpop.f32.mrf.mxu1 }
 0x210   : > { %v1044_v60 = vpack.c.bf16 %v1004_v57, %v1002_v56  ;;  %v921_v0 = vadd.f32 %v920_v59, %v4050_v13  ;;  %v1005_v6 = vmax.f32 %v919_v62, 0.0 }
 0x211   : > { %v922_v63 = vpop.f32.mrf.mxu1 }
 0x212   : > { %v923_v2 = vadd.f32 %v922_v63, %v4052_v1  ;;  %1308 = vmatprep.mubr.bf16.mxu0 %v1044_v60  ;;  %v1006_v9 = vmax.f32 %v921_v0, 0.0 }
 0x213   : > { %v924_v3 = vpop.f32.mrf.mxu1  ;;  %1309 = vmatmul.mubr.bf16.gmra.mxu0 %v1043_v61 }
 0x214   : > { %v925_v5 = vadd.f32 %v924_v3, %v4050_v13  ;;  %v1007_v7 = vmax.f32 %v923_v2, 0.0 }
 0x215   : > { %v928_v8 = vpop.f32.mrf.mxu1 }
 0x216   : > { %v1008_v10 = vmax.f32 %v925_v5, 0.0  ;;  %v1045_v12 = vpack.c.bf16 %v1007_v7, %v1005_v6  ;;  %v929_v17 = vadd.f32 %v928_v8, %v4052_v1 }
 0x217   : > { %v930_v11 = vpop.f32.mrf.mxu1 }
 0x218   : > { %v1046_v4 = vpack.c.bf16 %v1008_v10, %v1006_v9  ;;  %v931_v15 = vadd.f32 %v930_v11, %v4050_v13  ;;  %v1009_v24 = vmax.f32 %v929_v17, 0.0 }
 0x219   : > { %v932_v14 = vpop.f32.mrf.mxu1 }
 0x21a   : > { %v933_v16 = vadd.f32 %v932_v14, %v4052_v1  ;;  %1316 = vmatprep.mubr.bf16.mxu0 %v1046_v4  ;;  %v1010_v22 = vmax.f32 %v931_v15, 0.0 }
 0x21b   : > { %v934_v18 = vpop.f32.mrf.mxu1  ;;  %1317 = vmatmul.mubr.bf16.gmra.mxu0 %v1045_v12 }
 0x21c   : > { %v935_v19 = vadd.f32 %v934_v18, %v4050_v13  ;;  %v1011_v20 = vmax.f32 %v933_v16, 0.0 }
 0x21d   : > { %v938_v21 = vpop.f32.mrf.mxu1 }
 0x21e   : > { %v1012_v23 = vmax.f32 %v935_v19, 0.0  ;;  %v939_v25 = vadd.f32 %v938_v21, %v4052_v1  ;;  %v1047_v29 = vpack.c.bf16 %v1011_v20, %v1009_v24 }
 0x21f   : > { %v940_v26 = vpop.f32.mrf.mxu1 }
 0x220   : > { %v1048_v27 = vpack.c.bf16 %v1012_v23, %v1010_v22  ;;  %v941_v28 = vadd.f32 %v940_v26, %v4050_v13  ;;  %v1013_v32 = vmax.f32 %v939_v25, 0.0 }
 0x221   : > { %v942_v30 = vpop.f32.mrf.mxu1 }
 0x222   : > { %v943_v31 = vadd.f32 %v942_v30, %v4052_v1  ;;  %1324 = vmatprep.mubr.bf16.mxu0 %v1048_v27  ;;  %v1014_v34 = vmax.f32 %v941_v28, 0.0 }
 0x223   : > { %v944_v33 = vpop.f32.mrf.mxu1  ;;  %1325 = vmatmul.mubr.bf16.gmra.mxu0 %v1047_v29 }
 0x224   : > { %v1015_v35 = vmax.f32 %v943_v31, 0.0  ;;  %v945_v36 = vadd.f32 %v944_v33, %v4050_v13 }
 0x225   : > { %v948_v37 = vpop.f32.mrf.mxu1 }
 0x226   : > { %v1016_v38 = vmax.f32 %v945_v36, 0.0  ;;  %v1049_v39 = vpack.c.bf16 %v1015_v35, %v1013_v32  ;;  %v949_v42 = vadd.f32 %v948_v37, %v4052_v1 }
 0x227   : > { %v950_v40 = vpop.f32.mrf.mxu1 }
 0x228   : > { %v1050_v41 = vpack.c.bf16 %v1016_v38, %v1014_v34  ;;  %v951_v44 = vadd.f32 %v950_v40, %v4050_v13  ;;  %v1017_v48 = vmax.f32 %v949_v42, 0.0 }
 0x229   : > { %v952_v43 = vpop.f32.mrf.mxu1 }
 0x22a   : > { %v953_v45 = vadd.f32 %v952_v43, %v4052_v1  ;;  %1332 = vmatprep.mubr.bf16.mxu0 %v1050_v41  ;;  %v1018_v50 = vmax.f32 %v951_v44, 0.0 }
 0x22b   : > { %v954_v46 = vpop.f32.mrf.mxu1  ;;  %1333 = vmatmul.mubr.bf16.gmra.mxu0 %v1049_v39 }
 0x22c   : > { %v955_v47 = vadd.f32 %v954_v46, %v4050_v13  ;;  %v1019_v49 = vmax.f32 %v953_v45, 0.0 }
 0x22e   : > { %v1020_v51 = vmax.f32 %v955_v47, 0.0  ;;  %v1051_v53 = vpack.c.bf16 %v1019_v49, %v1017_v48 }
 0x230   : > { %v1052_v52 = vpack.c.bf16 %v1020_v51, %v1018_v50 }
 0x232   : > { %1340 = vmatprep.mubr.bf16.mxu0 %v1052_v52 }
 0x233   : > { %1341 = vmatmul.mubr.bf16.gmra.mxu0 %v1051_v53 }
 0x27b   : > { %v3127_v54 = vpop.f32.mrf.mxu0 }
 0x27d   : > { %v3128_v1 = vpop.f32.mrf.mxu0 }
 0x27e   : > { %v3129_v56 = vadd.f32 %v3128_v1, %v3127_v54 }
 0x27f   : > { %v3130_v57 = vpop.f32.mrf.mxu0 }
 0x280   : > { %v4133_v13 = vadd.f32 %v3129_v56, %v4130_v55 }
 0x281   : > { %v3131_v58 = vpop.f32.mrf.mxu0 }
 0x282   : > { %v3132_v59 = vadd.f32 %v3131_v58, %v3130_v57  ;;  %v1382_v60 = vsel %vm1381_vm1, %v4133_v13, -inf  ;;  %v1349_v0 = vmax.f32 %v4133_v13, 0.0 }
 0x283   : > { %v3133_v61 = vpop.f32.mrf.mxu0  ;;  %1383 = vmax.xlane.f32.xlu0 %v1382_v60 }
 0x284   : > { %v4138_v62 = vadd.f32 %v3132_v59, %v4130_v55 }
 0x285   : > { %v3134_v63 = vpop.f32.mrf.mxu0 }
 0x286   : > { %v1350_v2 = vmax.f32 %v4138_v62, 0.0  ;;  %v3135_v3 = vadd.f32 %v3134_v63, %v3133_v61  ;;  %v1385_v5 = vsel %vm1381_vm1, %v4138_v62, -inf }
 0x287   : > { %v3136_v6 = vpop.f32.mrf.mxu0  ;;  %1386 = vmax.xlane.f32.xlu0 %v1385_v5 }
 0x288   : > { %v4145_v7 = vadd.f32 %v3135_v3, %v4130_v55  ;;  %v1863_v8 = vpack.c.bf16 %v1350_v2, %v1349_v0 }
 0x289   : > { %v3137_v9 = vpop.f32.mrf.mxu0 }
 0x28a   : > { %v3138_v10 = vadd.f32 %v3137_v9, %v3136_v6  ;;  %3285 = vmatprep.mubr.msk.bf16.mxu0 %vm1918_vm2, %v1863_v8  ;;  %v1388_v11 = vsel %vm1381_vm1, %v4145_v7, -inf  ;;  %v1351_v15 = vmax.f32 %v4145_v7, 0.0 }
 0x28b   : > { %v3139_v4 = vpop.f32.mrf.mxu0  ;;  %1389 = vmax.xlane.f32.xlu1 %v1388_v11 }
 0x28c   : > { %v4151_v12 = vadd.f32 %v3138_v10, %v4130_v55 }
 0x28d   : > { %v3140_v14 = vpop.f32.mrf.mxu0 }
 0x28e   : > { %v1352_v16 = vmax.f32 %v4151_v12, 0.0  ;;  %v3141_v17 = vadd.f32 %v3140_v14, %v3139_v4  ;;  %v1391_v18 = vsel %vm1381_vm1, %v4151_v12, -inf }
 0x28f   : > { %v3142_v19 = vpop.f32.mrf.mxu0  ;;  %1392 = vmax.xlane.f32.xlu1 %v1391_v18 }
 0x290   : > { %v1864_v20 = vpack.c.bf16 %v1352_v16, %v1351_v15  ;;  %v4158_v21 = vadd.f32 %v3141_v17, %v4130_v55 }
 0x291   : > { %v3143_v22 = vpop.f32.mrf.mxu0 }
 0x292   : > { %v3144_v23 = vadd.f32 %v3143_v22, %v3142_v19  ;;  %3286 = vmatmul.mubr.msk.bf16.vlgmr.msra.gmra.mxu0 %vm1918_vm2, %v1864_v20  ;;  %v1394_v24 = vsel %vm1381_vm1, %v4158_v21, -inf  ;;  %v1353_v28 = vmax.f32 %v4158_v21, 0.0 }
 0x293   : > { %v3145_v25 = vpop.f32.mrf.mxu0  ;;  %1395 = vmax.xlane.f32.xlu0 %v1394_v24 }
 0x294   : > { %v4164_v26 = vadd.f32 %v3144_v23, %v4130_v55 }
 0x295   : > { %v3146_v27 = vpop.f32.mrf.mxu0 }
 0x296   : > { %v1354_v29 = vmax.f32 %v4164_v26, 0.0  ;;  %v3147_v30 = vadd.f32 %v3146_v27, %v3145_v25  ;;  %v1397_v31 = vsel %vm1381_vm1, %v4164_v26, -inf }
 0x297   : > { %v3148_v32 = vpop.f32.mrf.mxu0  ;;  %1398 = vmax.xlane.f32.xlu1 %v1397_v31 }
 0x298   : > { %v4171_v33 = vadd.f32 %v3147_v30, %v4130_v55  ;;  %v1865_v34 = vpack.c.bf16 %v1354_v29, %v1353_v28 }
 0x299   : > { %v3149_v35 = vpop.f32.mrf.mxu0 }
 0x29a   : > { %v3150_v36 = vadd.f32 %v3149_v35, %v3148_v32  ;;  %3289 = vmatprep.mubr.msk.bf16.mxu1 %vm1918_vm2, %v1865_v34  ;;  %v1400_v37 = vsel %vm1381_vm1, %v4171_v33, -inf  ;;  %v1355_v41 = vmax.f32 %v4171_v33, 0.0 }
 0x29b   : > { %v3151_v38 = vpop.f32.mrf.mxu0  ;;  %1401 = vmax.xlane.f32.xlu0 %v1400_v37 }
 0x29c   : > { %v4177_v39 = vadd.f32 %v3150_v36, %v4130_v55 }
 0x29d   : > { %v3152_v40 = vpop.f32.mrf.mxu0 }
 0x29e   : > { %v1356_v42 = vmax.f32 %v4177_v39, 0.0  ;;  %v3153_v43 = vadd.f32 %v3152_v40, %v3151_v38  ;;  %v1403_v44 = vsel %vm1381_vm1, %v4177_v39, -inf }
 0x29f   : > { %v3154_v45 = vpop.f32.mrf.mxu0  ;;  %1404 = vmax.xlane.f32.xlu1 %v1403_v44 }
 0x2a0   : > { %v1866_v46 = vpack.c.bf16 %v1356_v42, %v1355_v41  ;;  %v4184_v47 = vadd.f32 %v3153_v43, %v4130_v55 }
 0x2a1   : > { %v3155_v48 = vpop.f32.mrf.mxu0 }
 0x2a2   : > { %v3156_v49 = vadd.f32 %v3155_v48, %v3154_v45  ;;  %3290 = vmatmul.mubr.msk.bf16.vlgmr.msra.gmra.mxu1 %vm1918_vm2, %v1866_v46  ;;  %v1406_v50 = vsel %vm1381_vm1, %v4184_v47, -inf  ;;  %v1357_v54 = vmax.f32 %v4184_v47, 0.0 }
 0x2a3   : > { %v3157_v51 = vpop.f32.mrf.mxu0  ;;  %1407 = vmax.xlane.f32.xlu0 %v1406_v50 }
 0x2a4   : > { %v4190_v52 = vadd.f32 %v3156_v49, %v4130_v55 }
 0x2a5   : > { %v3158_v53 = vpop.f32.mrf.mxu0 }
 0x2a6   : > { %v1358_v1 = vmax.f32 %v4190_v52, 0.0  ;;  %v3159_v56 = vadd.f32 %v3158_v53, %v3157_v51  ;;  %v1409_v57 = vsel %vm1381_vm1, %v4190_v52, -inf }
 0x2a7   : > { %v3160_v58 = vpop.f32.mrf.mxu0  ;;  %1410 = vmax.xlane.f32.xlu1 %v1409_v57 }
 0x2a8   : > { %v4197_v59 = vadd.f32 %v3159_v56, %v4130_v55  ;;  %v1867_v60 = vpack.c.bf16 %v1358_v1, %v1357_v54 }
 0x2a9   : > { %v3161_v61 = vpop.f32.mrf.mxu0 }
 0x2aa   : > { %v3162_v63 = vadd.f32 %v3161_v61, %v3160_v58  ;;  %3293 = vmatprep.mubr.msk.bf16.mxu1 %vm1918_vm2, %v1867_v60  ;;  %v1412_v0 = vsel %vm1381_vm1, %v4197_v59, -inf  ;;  %v1359_v6 = vmax.f32 %v4197_v59, 0.0 }
 0x2ab   : > { %v3163_v2 = vpop.f32.mrf.mxu0  ;;  %1413 = vmax.xlane.f32.xlu0 %v1412_v0 }
 0x2ac   : > { %v4203_v3 = vadd.f32 %v3162_v63, %v4130_v55 }
 0x2ad   : > { %v3164_v5 = vpop.f32.mrf.mxu0 }
 0x2ae   : > { %v1360_v8 = vmax.f32 %v4203_v3, 0.0  ;;  %v3165_v9 = vadd.f32 %v3164_v5, %v3163_v2  ;;  %v1415_v10 = vsel %vm1381_vm1, %v4203_v3, -inf }
 0x2af   : > { %v3166_v11 = vpop.f32.mrf.mxu0  ;;  %1416 = vmax.xlane.f32.xlu1 %v1415_v10 }
 0x2b0   : > { %v4210_v4 = vadd.f32 %v3165_v9, %v4130_v55  ;;  %v1868_v14 = vpack.c.bf16 %v1360_v8, %v1359_v6 }
 0x2b1   : > { %v3167_v15 = vpop.f32.mrf.mxu0 }
 0x2b2   : > { %v3168_v16 = vadd.f32 %v3167_v15, %v3166_v11  ;;  %3294 = vmatmul.mubr.msk.bf16.gmra.mxu1 %vm1918_vm2, %v1868_v14  ;;  %v1418_v17 = vsel %vm1381_vm1, %v4210_v4, -inf  ;;  %v1361_v22 = vmax.f32 %v4210_v4, 0.0 }
 0x2b3   : > { %v3169_v18 = vpop.f32.mrf.mxu0  ;;  %1419 = vmax.xlane.f32.xlu0 %v1418_v17 }
 0x2b4   : > { %v4216_v19 = vadd.f32 %v3168_v16, %v4130_v55 }
 0x2b5   : > { %v3170_v20 = vpop.f32.mrf.mxu0 }
 0x2b6   : > { %v1362_v23 = vmax.f32 %v4216_v19, 0.0  ;;  %v3171_v24 = vadd.f32 %v3170_v20, %v3169_v18  ;;  %v1421_v25 = vsel %vm1381_vm1, %v4216_v19, -inf }
 0x2b7   : > { %v3172_v27 = vpop.f32.mrf.mxu0  ;;  %1422 = vmax.xlane.f32.xlu1 %v1421_v25 }
 0x2b8   : > { %v4223_v28 = vadd.f32 %v3171_v24, %v4130_v55  ;;  %v1869_v29 = vpack.c.bf16 %v1362_v23, %v1361_v22 }
 0x2b9   : > { %v3173_v30 = vpop.f32.mrf.mxu0 }
 0x2ba   : > { %v3174_v31 = vadd.f32 %v3173_v30, %v3172_v27  ;;  %3297 = vmatprep.mubr.msk.bf16.mxu1 %vm1918_vm2, %v1869_v29  ;;  %v1424_v32 = vsel %vm1381_vm1, %v4223_v28, -inf  ;;  %v1363_v37 = vmax.f32 %v4223_v28, 0.0 }
 0x2bb   : > { %v3175_v34 = vpop.f32.mrf.mxu0  ;;  %1425 = vmax.xlane.f32.xlu0 %v1424_v32 }
 0x2bc   : > { %v4229_v35 = vadd.f32 %v3174_v31, %v4130_v55 }
 0x2bd   : > { %v3176_v36 = vpop.f32.mrf.mxu0 }
 0x2be   : > { %v1364_v38 = vmax.f32 %v4229_v35, 0.0  ;;  %v3177_v40 = vadd.f32 %v3176_v36, %v3175_v34  ;;  %v1427_v41 = vsel %vm1381_vm1, %v4229_v35, -inf }
 0x2bf   : > { %v3178_v42 = vpop.f32.mrf.mxu0  ;;  %1428 = vmax.xlane.f32.xlu1 %v1427_v41 }
 0x2c0   : > { %v4236_v43 = vadd.f32 %v3177_v40, %v4130_v55  ;;  %v1870_v44 = vpack.c.bf16 %v1364_v38, %v1363_v37 }
 0x2c1   : > { %v3179_v45 = vpop.f32.mrf.mxu0 }
 0x2c2   : > { %v3180_v46 = vadd.f32 %v3179_v45, %v3178_v42  ;;  %3298 = vmatmul.mubr.msk.bf16.gmra.mxu1 %vm1918_vm2, %v1870_v44  ;;  %v1430_v48 = vsel %vm1381_vm1, %v4236_v43, -inf  ;;  %v1365_v53 = vmax.f32 %v4236_v43, 0.0 }
 0x2c3   : > { %v3181_v49 = vpop.f32.mrf.mxu0  ;;  %1431 = vmax.xlane.f32.xlu0 %v1430_v48 }
 0x2c4   : > { %v4242_v50 = vadd.f32 %v3180_v46, %v4130_v55 }
 0x2c5   : > { %v3182_v51 = vpop.f32.mrf.mxu0 }
 0x2c6   : > { %v1366_v54 = vmax.f32 %v4242_v50, 0.0  ;;  %v3183_v1 = vadd.f32 %v3182_v51, %v3181_v49  ;;  %v1433_v56 = vsel %vm1381_vm1, %v4242_v50, -inf }
 0x2c7   : > { %v3184_v57 = vpop.f32.mrf.mxu0  ;;  %1434 = vmax.xlane.f32.xlu1 %v1433_v56 }
 0x2c8   : > { %v4249_v58 = vadd.f32 %v3183_v1, %v4130_v55  ;;  %v1871_v60 = vpack.c.bf16 %v1366_v54, %v1365_v53 }
 0x2c9   : > { %v3185_v61 = vpop.f32.mrf.mxu0 }
 0x2ca   : > { %v3186_v63 = vadd.f32 %v3185_v61, %v3184_v57  ;;  %3301 = vmatprep.mubr.msk.bf16.mxu1 %vm1918_vm2, %v1871_v60  ;;  %v1436_v0 = vsel %vm1381_vm1, %v4249_v58, -inf  ;;  %v1367_v8 = vmax.f32 %v4249_v58, 0.0 }
 0x2cb   : > { %v3187_v2 = vpop.f32.mrf.mxu0  ;;  %1437 = vmax.xlane.f32.xlu0 %v1436_v0 }
 0x2cc   : > { %v4255_v5 = vadd.f32 %v3186_v63, %v4130_v55 }
 0x2cd   : > { %v3188_v6 = vpop.f32.mrf.mxu0 }
 0x2ce   : > { %v1368_v9 = vmax.f32 %v4255_v5, 0.0  ;;  %v3189_v10 = vadd.f32 %v3188_v6, %v3187_v2  ;;  %v1439_v11 = vsel %vm1381_vm1, %v4255_v5, -inf }
 0x2cf   : > { %v3190_v14 = vpop.f32.mrf.mxu0  ;;  %1440 = vmax.xlane.f32.xlu1 %v1439_v11 }
 0x2d0   : > { %v4262_v15 = vadd.f32 %v3189_v10, %v4130_v55  ;;  %v1872_v16 = vpack.c.bf16 %v1368_v9, %v1367_v8 }
 0x2d1   : > { %v3191_v17 = vpop.f32.mrf.mxu0 }
 0x2d2   : > { %v3192_v18 = vadd.f32 %v3191_v17, %v3190_v14  ;;  %3302 = vmatmul.mubr.msk.bf16.gmra.mxu1 %vm1918_vm2, %v1872_v16  ;;  %v1442_v20 = vsel %vm1381_vm1, %v4262_v15, -inf  ;;  %v1369_v25 = vmax.f32 %v4262_v15, 0.0 }
 0x2d3   : > { %v3193_v22 = vpop.f32.mrf.mxu0  ;;  %1443 = vmax.xlane.f32.xlu0 %v1442_v20 }
 0x2d4   : > { %v4268_v23 = vadd.f32 %v3192_v18, %v4130_v55 }
 0x2d5   : > { %v3194_v24 = vpop.f32.mrf.mxu0 }
 0x2d6   : > { %v1370_v27 = vmax.f32 %v4268_v23, 0.0  ;;  %v3195_v29 = vadd.f32 %v3194_v24, %v3193_v22  ;;  %v1445_v30 = vsel %vm1381_vm1, %v4268_v23, -inf }
 0x2d7   : > { %v3196_v31 = vpop.f32.mrf.mxu0  ;;  %1446 = vmax.xlane.f32.xlu1 %v1445_v30 }
 0x2d8   : > { %v4275_v32 = vadd.f32 %v3195_v29, %v4130_v55  ;;  %v1873_v34 = vpack.c.bf16 %v1370_v27, %v1369_v25 }
 0x2d9   : > { %v3197_v36 = vpop.f32.mrf.mxu0 }
 0x2da   : > { %v3198_v37 = vadd.f32 %v3197_v36, %v3196_v31  ;;  %3305 = vmatprep.mubr.msk.bf16.mxu1 %vm1918_vm2, %v1873_v34  ;;  %v1448_v38 = vsel %vm1381_vm1, %v4275_v32, -inf  ;;  %v1371_v44 = vmax.f32 %v4275_v32, 0.0 }
 0x2db   : > { %v3199_v40 = vpop.f32.mrf.mxu0  ;;  %1449 = vmax.xlane.f32.xlu0 %v1448_v38 }
 0x2dc   : > { %v4281_v41 = vadd.f32 %v3198_v37, %v4130_v55 }
 0x2dd   : > { %v3200_v42 = vpop.f32.mrf.mxu0 }
 0x2de   : > { %v1372_v45 = vmax.f32 %v4281_v41, 0.0  ;;  %v3201_v46 = vadd.f32 %v3200_v42, %v3199_v40  ;;  %v1451_v48 = vsel %vm1381_vm1, %v4281_v41, -inf }
 0x2df   : > { %v3202_v49 = vpop.f32.mrf.mxu0  ;;  %1452 = vmax.xlane.f32.xlu1 %v1451_v48 }
 0x2e0   : > { %v4288_v51 = vadd.f32 %v3201_v46, %v4130_v55  ;;  %v1874_v53 = vpack.c.bf16 %v1372_v45, %v1371_v44 }
 0x2e1   : > { %v3203_v54 = vpop.f32.mrf.mxu0 }
 0x2e2   : > { %v3204_v1 = vadd.f32 %v3203_v54, %v3202_v49  ;;  %3306 = vmatmul.mubr.msk.bf16.gmra.mxu1 %vm1918_vm2, %v1874_v53  ;;  %v1454_v56 = vsel %vm1381_vm1, %v4288_v51, -inf  ;;  %v1373_v63 = vmax.f32 %v4288_v51, 0.0 }
 0x2e3   : > { %v3205_v57 = vpop.f32.mrf.mxu0  ;;  %1455 = vmax.xlane.f32.xlu0 %v1454_v56 }
 0x2e4   : > { %v4294_v60 = vadd.f32 %v3204_v1, %v4130_v55 }
 0x2e5   : > { %v3206_v61 = vpop.f32.mrf.mxu0 }
 0x2e6   : > { %v1374_v0 = vmax.f32 %v4294_v60, 0.0  ;;  %v3207_v2 = vadd.f32 %v3206_v61, %v3205_v57  ;;  %v1457_v6 = vsel %vm1381_vm1, %v4294_v60, -inf }
 0x2e7   : > { %v3208_v8 = vpop.f32.mrf.mxu0  ;;  %1458 = vmax.xlane.f32.xlu1 %v1457_v6 }
 0x2e8   : > { %v4301_v9 = vadd.f32 %v3207_v2, %v4130_v55  ;;  %v1875_v10 = vpack.c.bf16 %v1374_v0, %v1373_v63 }
 0x2e9   : > { %v3209_v11 = vpop.f32.mrf.mxu0 }
 0x2ea   : > { %v3210_v14 = vadd.f32 %v3209_v11, %v3208_v8  ;;  %3309 = vmatprep.mubr.msk.bf16.mxu1 %vm1918_vm2, %v1875_v10  ;;  %v1460_v16 = vsel %vm1381_vm1, %v4301_v9, -inf  ;;  %v1375_v22 = vmax.f32 %v4301_v9, 0.0 }
 0x2eb   : > { %v3211_v17 = vpop.f32.mrf.mxu0  ;;  %1461 = vmax.xlane.f32.xlu0 %v1460_v16 }
 0x2ec   : > { %v4307_v18 = vadd.f32 %v3210_v14, %v4130_v55 }
 0x2ed   : > { %v3212_v20 = vpop.f32.mrf.mxu0 }
 0x2ee   : > { %v1376_v24 = vmax.f32 %v4307_v18, 0.0  ;;  %v3213_v25 = vadd.f32 %v3212_v20, %v3211_v17  ;;  %v1463_v27 = vsel %vm1381_vm1, %v4307_v18, -inf }
 0x2ef   : > { %v3214_v29 = vpop.f32.mrf.mxu0  ;;  %1464 = vmax.xlane.f32.xlu1 %v1463_v27 }
 0x2f0   : > { %v4314_v30 = vadd.f32 %v3213_v25, %v4130_v55  ;;  %v1876_v31 = vpack.c.bf16 %v1376_v24, %v1375_v22 }
 0x2f1   : > { %v3215_v34 = vpop.f32.mrf.mxu0 }
 0x2f2   : > { %v3216_v36 = vadd.f32 %v3215_v34, %v3214_v29  ;;  %3310 = vmatmul.mubr.msk.bf16.gmra.mxu1 %vm1918_vm2, %v1876_v31  ;;  %v1466_v37 = vsel %vm1381_vm1, %v4314_v30, -inf  ;;  %v1377_v40 = vmax.f32 %v4314_v30, 0.0 }
 0x2f3   : > { %v3217_v38 = vpop.f32.mrf.mxu0  ;;  %1467 = vmax.xlane.f32.xlu0 %v1466_v37 }
 0x2f4   : > { %v4321_v42 = vadd.f32 %v3216_v36, %v4130_v55 }
 0x2f5   : > { %v3218_v44 = vpop.f32.mrf.mxu0 }
 0x2f6   : > { %v1378_v45 = vmax.f32 %v4321_v42, 0.0  ;;  %v3219_v46 = vadd.f32 %v3218_v44, %v3217_v38  ;;  %v1469_v48 = vsel %vm1381_vm1, %v4321_v42, -inf }
 0x2f7   : > { %v3220_v49 = vpop.f32.mrf.mxu0  ;;  %1470 = vmax.xlane.f32.xlu1 %v1469_v48 }
 0x2f8   : > { %v4327_v53 = vadd.f32 %v3219_v46, %v4130_v55  ;;  %v1877_v54 = vpack.c.bf16 %v1378_v45, %v1377_v40 }
 0x2f9   : > { %v3221_v1 = vpop.f32.mrf.mxu0 }
 0x2fa   : > { %v3222_v56 = vadd.f32 %v3221_v1, %v3220_v49  ;;  %3313 = vmatprep.mubr.msk.bf16.mxu1 %vm1918_vm2, %v1877_v54  ;;  %v1472_v57 = vsel %vm1381_vm1, %v4327_v53, -inf  ;;  %v1379_v63 = vmax.f32 %v4327_v53, 0.0 }
 0x2fb   : > { %1473 = vmax.xlane.f32.xlu0 %v1472_v57 }
 0x2fc   : > { %v4333_v61 = vadd.f32 %v3222_v56, %v4130_v55 }
 0x2fe   : > { %v1380_v0 = vmax.f32 %v4333_v61, 0.0  ;;  %v1475_v2 = vsel %vm1381_vm1, %v4333_v61, -inf }
 0x2ff   : > { %1476 = vmax.xlane.f32.xlu1 %v1475_v2 }
 0x300   : > { %v1878_v6 = vpack.c.bf16 %v1380_v0, %v1379_v63 }
 0x302   : > { %3314 = vmatmul.mubr.msk.bf16.gmra.mxu1 %vm1918_vm2, %v1878_v6 }
 0x30c   : > { %v1384_v8 = vpop.xlane.xlu0 %1383 }
 0x30d   : > { %v1478_v10 = vsub.f32 %v4133_v13, %v1384_v8 }
 0x30f   : > { %v1510_v11 = vmul.f32 1.442695, %v1478_v10 }
 0x310   : > { %v1387_v14 = vpop.xlane.xlu0 %1386 }
 0x311   : > { %3415 = vpow2.f32 %v1510_v11  ;;  %v1479_v55 = vsub.f32 %v4138_v62, %v1387_v14 }
 0x313   : > { %v1512_v16 = vmul.f32 1.442695, %v1479_v55 }
 0x314   : > { %v1390_v17 = vpop.xlane.xlu1 %1389 }
 0x315   : > { %3417 = vpow2.f32 %v1512_v16  ;;  %v1480_v20 = vsub.f32 %v4145_v7, %v1390_v17 }
 0x317   : > { %v1514_v22 = vmul.f32 1.442695, %v1480_v20 }
 0x318   : > { %v1393_v24 = vpop.xlane.xlu1 %1392 }
 0x319   : > { %3419 = vpow2.f32 %v1514_v22  ;;  %v1481_v25 = vsub.f32 %v4151_v12, %v1393_v24 }
 0x31b   : > { %v1516_v27 = vmul.f32 1.442695, %v1481_v25 }
 0x31c   : > { %v1396_v29 = vpop.xlane.xlu0 %1395 }
 0x31d   : > { %3421 = vpow2.f32 %v1516_v27  ;;  %v1482_v13 = vsub.f32 %v4158_v21, %v1396_v29 }
 0x31e   : > { %v4345_v31 = vpop.eup %3415 }
 0x31f   : > { %v1518_v34 = vmul.f32 1.442695, %v1482_v13  ;;  %1606 = vrot.lane.b32.xlu0 %v4345_v31, %s3734_s28 }
 0x320   : > { %v1399_v62 = vpop.xlane.xlu1 %1398 }
 0x321   : > { %3423 = vpow2.f32 %v1518_v34  ;;  %v1483_v7 = vsub.f32 %v4164_v26, %v1399_v62 }
 0x322   : > { %v4350_v36 = vpop.eup %3417 }
 0x323   : > { %v1520_v37 = vmul.f32 1.442695, %v1483_v7  ;;  %1608 = vrot.lane.b32.xlu1 %v4350_v36, %s3734_s28 }
 0x324   : > { %v1402_v12 = vpop.xlane.xlu0 %1401 }
 0x325   : > { %3425 = vpow2.f32 %v1520_v37  ;;  %v1484_v21 = vsub.f32 %v4171_v33, %v1402_v12 }
 0x326   : > { %v4355_v38 = vpop.eup %3419 }
 0x327   : > { %v1522_v40 = vmul.f32 1.442695, %v1484_v21  ;;  %1610 = vrot.lane.b32.xlu1 %v4355_v38, %s3734_s28 }
 0x328   : > { %v1405_v44 = vpop.xlane.xlu1 %1404 }
 0x329   : > { %3427 = vpow2.f32 %v1522_v40  ;;  %v1485_v26 = vsub.f32 %v4177_v39, %v1405_v44 }
 0x32a   : > { %v4360_v45 = vpop.eup %3421 }
 0x32b   : > { %v1524_v46 = vmul.f32 1.442695, %v1485_v26  ;;  %1612 = vrot.lane.b32.xlu1 %v4360_v45, %s3734_s28 }
 0x32c   : > { %v1408_v48 = vpop.xlane.xlu0 %1407 }
 0x32d   : > { %3429 = vpow2.f32 %v1524_v46  ;;  %v1486_v33 = vsub.f32 %v4184_v47, %v1408_v48 }
 0x32e   : > { %v4365_v49 = vpop.eup %3423 }
 0x32f   : > { %v1526_v54 = vmul.f32 1.442695, %v1486_v33  ;;  %1614 = vrot.lane.b32.xlu0 %v4365_v49, %s3734_s28 }
 0x330   : > { %v1411_v1 = vpop.xlane.xlu1 %1410 }
 0x331   : > { %3431 = vpow2.f32 %v1526_v54  ;;  %v1487_v39 = vsub.f32 %v4190_v52, %v1411_v1 }
 0x332   : > { %v4370_v56 = vpop.eup %3425 }
 0x333   : > { %v1528_v57 = vmul.f32 1.442695, %v1487_v39  ;;  %1616 = vrot.lane.b32.xlu1 %v4370_v56, %s3734_s28 }
 0x334   : > { %v1414_v63 = vpop.xlane.xlu0 %1413 }
 0x335   : > { %3433 = vpow2.f32 %v1528_v57  ;;  %v1488_v47 = vsub.f32 %v4197_v59, %v1414_v63 }
 0x336   : > { %v4375_v0 = vpop.eup %3427 }
 0x337   : > { %v1530_v2 = vmul.f32 1.442695, %v1488_v47  ;;  %1618 = vrot.lane.b32.xlu0 %v4375_v0, %s3734_s28 }
 0x338   : > { %v1417_v6 = vpop.xlane.xlu1 %1416 }
 0x339   : > { %3435 = vpow2.f32 %v1530_v2  ;;  %v1489_v52 = vsub.f32 %v4203_v3, %v1417_v6 }
 0x33a   : > { %v4380_v8 = vpop.eup %3429 }
 0x33b   : > { %v1532_v10 = vmul.f32 1.442695, %v1489_v52  ;;  %1620 = vrot.lane.b32.xlu1 %v4380_v8, %s3734_s28 }
 0x33c   : > { %v1420_v11 = vpop.xlane.xlu0 %1419 }
 0x33d   : > { %3437 = vpow2.f32 %v1532_v10  ;;  %v1490_v59 = vsub.f32 %v4210_v4, %v1420_v11 }
 0x33e   : > { %v4385_v14 = vpop.eup %3431 }
 0x33f   : > { %v1534_v55 = vmul.f32 1.442695, %v1490_v59  ;;  %1622 = vrot.lane.b32.xlu0 %v4385_v14, %s3734_s28 }
 0x340   : > { %v1423_v16 = vpop.xlane.xlu1 %1422 }
 0x341   : > { %3439 = vpow2.f32 %v1534_v55  ;;  %v1491_v3 = vsub.f32 %v4216_v19, %v1423_v16 }
 0x342   : > { %v4390_v17 = vpop.eup %3433 }
 0x343   : > { %v1536_v20 = vmul.f32 1.442695, %v1491_v3  ;;  %1624 = vrot.lane.b32.xlu1 %v4390_v17, %s3734_s28 }
 0x344   : > { %v1426_v22 = vpop.xlane.xlu0 %1425 }
 0x345   : > { %3441 = vpow2.f32 %v1536_v20  ;;  %v1492_v4 = vsub.f32 %v4223_v28, %v1426_v22 }
 0x346   : > { %v4395_v24 = vpop.eup %3435 }
 0x347   : > { %v1538_v25 = vmul.f32 1.442695, %v1492_v4  ;;  %1626 = vrot.lane.b32.xlu0 %v4395_v24, %s3734_s28 }
 0x348   : > { %v1429_v27 = vpop.xlane.xlu1 %1428 }
 0x349   : > { %v1493_v29 = vsub.f32 %v4229_v35, %v1429_v27  ;;  %3443 = vpow2.f32 %v1538_v25  ;;  %v4412_v35 = vld [vmem:[%s5174_s8] ss:$0 sm:$0xff] }
 0x34a   : > { %v4400_v19 = vpop.eup %3437 }
 0x34b   : > { %v1540_v13 = vmul.f32 1.442695, %v1493_v29  ;;  %1628 = vrot.lane.b32.xlu1 %v4400_v19, %s3734_s28 }
 0x34c   : > { %v1432_v34 = vpop.xlane.xlu0 %1431 }
 0x34d   : > { %v1494_v62 = vsub.f32 %v4236_v43, %v1432_v34  ;;  %3445 = vpow2.f32 %v1540_v13 }
 0x34e   : > { %v4405_v28 = vpop.eup %3439 }
 0x34f   : > { %v1542_v7 = vmul.f32 1.442695, %v1494_v62  ;;  %1630 = vrot.lane.b32.xlu0 %v4405_v28, %s3734_s28 }
 0x350   : > { %v1435_v37 = vpop.xlane.xlu1 %1434 }
 0x351   : > { %v1495_v12 = vsub.f32 %v4242_v50, %v1435_v37  ;;  %3447 = vpow2.f32 %v1542_v7 }
 0x352   : > { %v4415_v21 = vpop.eup %3441  ;;  %v3287_v40 = vpop.f32.mrf.mxu0 }
 0x353   : > { %v1544_v43 = vmul.f32 1.442695, %v1495_v12  ;;  %v2010_v44 = vadd.f32 %v3287_v40, %v4412_v35  ;;  %1632 = vrot.lane.b32.xlu1 %v4415_v21, %s3734_s28 }
 0x354   : > { %v1438_v26 = vpop.xlane.xlu0 %1437  ;;  %v2001_v46 = vpop.f32.mrf.mxu0 }
 0x355   : > { %v3058_v48 = vmul.f32 -1.442695, %v2010_v44  ;;  %v1496_v33 = vsub.f32 %v4249_v58, %v1438_v26  ;;  %v2002_v54 = vadd.f32 %v4412_v35, %v2001_v46  ;;  %2548 = vrot.lane.b32.xlu0 %v2010_v44, %s3735_s14  ;;  %3449 = vpow2.f32 %v1544_v43 }
 0x356   : > { %v3288_v50 = vpop.f32.mrf.mxu0  ;;  %v4424_v63 = vpop.eup %3443 }
 0x357   : > { %3451 = vpow2.f32 %v3058_v48  ;;  %v1546_v1 = vmul.f32 1.442695, %v1496_v33  ;;  %v3056_v39 = vmul.f32 -1.442695, %v2002_v54  ;;  %v2013_v57 = vadd.f32 %v3288_v50, %v4412_v35 }
 0x358   : > { %v1441_v47 = vpop.xlane.xlu1 %1440  ;;  %v2004_v2 = vpop.f32.mrf.mxu0 }
 0x359   : > { %3453 = vpow2.f32 %v1546_v1  ;;  %v3059_v6 = vmul.f32 -1.442695, %v2013_v57  ;;  %v1497_v58 = vsub.f32 %v4255_v5, %v1441_v47  ;;  %v2005_v52 = vadd.f32 %v4412_v35, %v2004_v2  ;;  %1634 = vrot.lane.b32.xlu0 %v4424_v63, %s3734_s28  ;;  %2550 = vrot.lane.b32.xlu1 %v2013_v57, %s3735_s14 }
 0x35a   : > { %3455 = vpow2.f32 %v3056_v39  ;;  %v4431_v11 = vpop.eup %3445 }
 0x35b   : > { %3457 = vpow2.f32 %v3059_v6  ;;  %v1548_v10 = vmul.f32 1.442695, %v1497_v58  ;;  %v3057_v59 = vmul.f32 -1.442695, %v2005_v52 }
 0x35c   : > { %v1444_v55 = vpop.xlane.xlu0 %1443 }
 0x35d   : > { %v1498_v16 = vsub.f32 %v4262_v15, %v1444_v55  ;;  %1636 = vrot.lane.b32.xlu1 %v4431_v11, %s3734_s28  ;;  %2544 = vrot.lane.b32.xlu0 %v2002_v54, %s3735_s14  ;;  %3459 = vpow2.f32 %v1548_v10 }
 0x35e   : > { %v4437_v3 = vpop.eup %3447  ;;  %3461 = vpow2.f32 %v3057_v59 }
 0x35f   : > { %v1550_v5 = vmul.f32 1.442695, %v1498_v16 }
 0x360   : > { %v1447_v20 = vpop.xlane.xlu1 %1446 }
 0x361   : > { %v1499_v22 = vsub.f32 %v4268_v23, %v1447_v20  ;;  %2546 = vrot.lane.b32.xlu1 %v2005_v52, %s3735_s14  ;;  %1638 = vrot.lane.b32.xlu0 %v4437_v3, %s3734_s28  ;;  %3463 = vpow2.f32 %v1550_v5 }
 0x362   : > { %v3291_v4 = vpop.f32.mrf.mxu1  ;;  %v4443_v15 = vpop.eup %3449 }
 0x363   : > { %v1552_v25 = vmul.f32 1.442695, %v1499_v22  ;;  %v2026_v27 = vadd.f32 %v3291_v4, %v4412_v35 }
 0x364   : > { %v3452_v29 = vpop.eup %3451  ;;  %v2017_v13 = vpop.f32.mrf.mxu1 }
 0x365   : > { %v1450_v34 = vpop.xlane.xlu0 %1449  ;;  %1640 = vrot.lane.b32.xlu1 %v4443_v15, %s3734_s28  ;;  %2556 = vrot.lane.b32.xlu0 %v2026_v27, %s3735_s14  ;;  %v2226_v12 = vadd.f32 1.0, %v3452_v29  ;;  %3465 = vpow2.f32 %v1552_v25  ;;  %v3062_v46 = vmul.f32 -1.442695, %v2026_v27  ;;  %v2018_v33 = vadd.f32 %v4412_v35, %v2017_v13 }
 0x366   : > { %v4449_v23 = vpop.eup %3453  ;;  %v1500_v62 = vsub.f32 %v4275_v32, %v1450_v34  ;;  %v3292_v7 = vpop.f32.mrf.mxu1 }
 0x367   : > { %v3456_v37 = vpop.eup %3455  ;;  %v2029_v40 = vadd.f32 %v3292_v7, %v4412_v35  ;;  %3467 = vrcp.f32 %v2226_v12  ;;  %v3060_v47 = vmul.f32 -1.442695, %v2018_v33 }
 0x368   : > { %v3458_v43 = vpop.eup %3457  ;;  %v1554_v44 = vmul.f32 1.442695, %v1500_v62  ;;  %v1453_v26 = vpop.xlane.xlu1 %1452  ;;  %v2224_v48 = vadd.f32 1.0, %v3456_v37 }
 0x369   : > { %2558 = vrot.lane.b32.xlu1 %v2029_v40, %s3735_s14  ;;  %1642 = vrot.lane.b32.xlu0 %v4449_v23, %s3734_s28  ;;  %v1501_v32 = vsub.f32 %v4281_v41, %v1453_v26  ;;  %v2227_v54 = vadd.f32 1.0, %v3458_v43  ;;  %v2020_v1 = vpop.f32.mrf.mxu1  ;;  %v3063_v2 = vmul.f32 -1.442695, %v2029_v40 }
 0x36a   : > { %v4458_v50 = vpop.eup %3459  ;;  %3469 = vpow2.f32 %v1554_v44  ;;  %v2021_v41 = vadd.f32 %v4412_v35, %v2020_v1 }
 0x36b   : > { %v1556_v39 = vmul.f32 1.442695, %v1501_v32  ;;  %v3462_v57 = vpop.eup %3461  ;;  %3471 = vpow2.f32 %v3062_v46 }
 0x36c   : > { %3473 = vrcp.f32 %v2224_v48  ;;  %v2225_v58 = vadd.f32 1.0, %v3462_v57  ;;  %v1456_v52 = vpop.xlane.xlu0 %1455  ;;  %v3061_v16 = vmul.f32 -1.442695, %v2021_v41 }
 0x36d   : > { %1644 = vrot.lane.b32.xlu1 %v4458_v50, %s3734_s28  ;;  %2552 = vrot.lane.b32.xlu0 %v2018_v33, %s3735_s14  ;;  %3475 = vrcp.f32 %v2227_v54  ;;  %v1502_v5 = vsub.f32 %v4288_v51, %v1456_v52 }
 0x36e   : > { %v4464_v6 = vpop.eup %3463  ;;  %3477 = vpow2.f32 %v1556_v39 }
 0x36f   : > { %3479 = vpow2.f32 %v3060_v47  ;;  %v1558_v29 = vmul.f32 1.442695, %v1502_v5 }
 0x370   : > { %3481 = vpow2.f32 %v3063_v2  ;;  %v1459_v20 = vpop.xlane.xlu1 %1458 }
 0x371   : > { %2554 = vrot.lane.b32.xlu1 %v2021_v41, %s3735_s14  ;;  %1646 = vrot.lane.b32.xlu0 %v4464_v6, %s3734_s28  ;;  %3483 = vrcp.f32 %v2225_v58  ;;  %v1503_v25 = vsub.f32 %v4294_v60, %v1459_v20 }
 0x372   : > { %v3295_v10 = vpop.f32.mrf.mxu1  ;;  %v4472_v55 = vpop.eup %3465  ;;  %3485 = vpow2.f32 %v3061_v16 }
 0x373   : > { %v4470_v59 = vadd.f32 %v3295_v10, %v4412_v35  ;;  %v1560_v37 = vmul.f32 1.442695, %v1503_v25  ;;  %3487 = vpow2.f32 %v1558_v29 }
 0x374   : > { %v2033_v22 = vpop.f32.mrf.mxu1  ;;  %v3468_v27 = vpop.eup %3467 }
 0x375   : > { %1648 = vrot.lane.b32.xlu1 %v4472_v55, %s3734_s28  ;;  %2564 = vrot.lane.b32.xlu0 %v4470_v59, %s3735_s14  ;;  %v1462_v13 = vpop.xlane.xlu0 %1461  ;;  %v4491_v40 = vadd.f32 %v4412_v35, %v2033_v22  ;;  %v2322_v43 = vmul.f32 0.35355338, %v3468_v27  ;;  %3489 = vpow2.f32 %v1560_v37 }
 0x376   : > { %v3296_v4 = vpop.f32.mrf.mxu1  ;;  %v1504_v60 = vsub.f32 %v4301_v9, %v1462_v13 }
 0x377   : > { %v4481_v34 = vadd.f32 %v3296_v4, %v4412_v35  ;;  %v4483_v62 = vpop.eup %3469  ;;  %v2354_v57 = vadd.f32 1.0606601, %v2322_v43 }
 0x378   : > { %v3472_v51 = vpop.eup %3471  ;;  %v2036_v26 = vpop.f32.mrf.mxu1  ;;  %v1562_v9 = vmul.f32 1.442695, %v1504_v60 }
 0x379   : > { %2566 = vrot.lane.b32.xlu1 %v4481_v34, %s3735_s14  ;;  %1650 = vrot.lane.b32.xlu0 %v4483_v62, %s3734_s28  ;;  %v3474_v7 = vpop.eup %3473  ;;  %v1465_v46 = vpop.xlane.xlu1 %1464  ;;  %v2230_v33 = vadd.f32 1.0, %v3472_v51  ;;  %v4500_v1 = vadd.f32 %v4412_v35, %v2036_v26 }
 0x37a   : > { %v3476_v12 = vpop.eup %3475  ;;  %v2320_v32 = vmul.f32 0.35355338, %v3474_v7  ;;  %v1505_v39 = vsub.f32 %v4307_v18, %v1465_v46 }
 0x37b   : > { %v4493_v44 = vpop.eup %3477  ;;  %v2323_v47 = vmul.f32 0.35355338, %v3476_v12  ;;  %3491 = vrcp.f32 %v2230_v33 }
 0x37c   : > { %v3480_v48 = vpop.eup %3479  ;;  %v2352_v52 = vadd.f32 1.0606601, %v2320_v32  ;;  %3493 = vpow2.f32 %v1562_v9  ;;  %v1564_v10 = vmul.f32 1.442695, %v1505_v39  ;;  %v1468_v27 = vpop.xlane.xlu0 %1467 }
 0x37d   : > { %1652 = vrot.lane.b32.xlu1 %v4493_v44, %s3734_s28  ;;  %2560 = vrot.lane.b32.xlu0 %v4491_v40, %s3735_s14  ;;  %v3482_v54 = vpop.eup %3481  ;;  %v2228_v41 = vadd.f32 1.0, %v3480_v48  ;;  %v2355_v16 = vadd.f32 1.0606601, %v2323_v47  ;;  %v1506_v51 = vsub.f32 %v4314_v30, %v1468_v27 }
 0x37e   : > { %v3484_v2 = vpop.eup %3483  ;;  %v2231_v58 = vadd.f32 1.0, %v3482_v54 }
 0x37f   : > { %v2321_v5 = vmul.f32 0.35355338, %v3484_v2  ;;  %v3486_v20 = vpop.eup %3485  ;;  %3495 = vrcp.f32 %v2228_v41  ;;  %v1566_v26 = vmul.f32 1.442695, %v1506_v51 }
 0x380   : > { %3497 = vrcp.f32 %v2231_v58  ;;  %v2229_v18 = vadd.f32 1.0, %v3486_v20  ;;  %v4508_v25 = vpop.eup %3487  ;;  %v1471_v7 = vpop.xlane.xlu1 %1470 }
 0x381   : > { %2562 = vrot.lane.b32.xlu1 %v4500_v1, %s3735_s14  ;;  %2676 = vrot.lane.b32.xlu0 %v2354_v57, %s3735_s14  ;;  %3499 = vpow2.f32 %v1564_v10  ;;  %v2353_v4 = vadd.f32 1.0606601, %v2321_v5  ;;  %v1507_v12 = vsub.f32 %v4321_v42, %v1471_v7 }
 0x382   : > { %v3299_v22 = vpop.f32.mrf.mxu1  ;;  %v4513_v13 = vpop.eup %3489  ;;  %3501 = vrcp.f32 %v2229_v18  ;;  %v3066_v18 = vmul.f32 -1.442695, %v4470_v59 }
 0x383   : > { %v4517_v37 = vadd.f32 %v3299_v22, %v4412_v35  ;;  %v1568_v33 = vmul.f32 1.442695, %v1507_v12  ;;  %3503 = vpow2.f32 %v1566_v26 }
 0x384   : > { %v2049_v29 = vpop.f32.mrf.mxu1 }
 0x385   : > { %2678 = vrot.lane.b32.xlu1 %v2355_v16, %s3735_s14  ;;  %2672 = vrot.lane.b32.xlu0 %v2352_v52, %s3735_s14  ;;  %v4534_v32 = vadd.f32 %v4412_v35, %v2049_v29  ;;  %3505 = vpow2.f32 %v1568_v33 }
 0x386   : > { %v3300_v60 = vpop.f32.mrf.mxu1  ;;  %3507 = vpow2.f32 %v3066_v18  ;;  %v3064_v18 = vmul.f32 -1.442695, %v4491_v40 }
 0x387   : > { %v4525_v46 = vadd.f32 %v3300_v60, %v4412_v35 }
 0x388   : > { %v3492_v43 = vpop.eup %3491  ;;  %v2052_v39 = vpop.f32.mrf.mxu1 }
 0x389   : > { %2674 = vrot.lane.b32.xlu1 %v2353_v4, %s3735_s14  ;;  %1654 = vrot.lane.b32.xlu0 %v4508_v25, %s3734_s28  ;;  %v4527_v48 = vpop.eup %3493  ;;  %v2326_v42 = vmul.f32 0.35355338, %v3492_v43  ;;  %v4543_v57 = vadd.f32 %v4412_v35, %v2052_v39  ;;  %v1474_v4 = vpop.xlane.xlu0 %1473 }
 0x38a   : > { %v1477_v51 = vpop.xlane.xlu1 %1476  ;;  %v1508_v60 = vsub.f32 %v4327_v53, %v1474_v4  ;;  %v3067_v4 = vmul.f32 -1.442695, %v4481_v34 }
 0x38b   : > { %v2358_v47 = vadd.f32 1.0606601, %v2326_v42 }
 0x38c   : > { %v3496_v30 = vpop.eup %3495  ;;  %v1570_v26 = vmul.f32 1.442695, %v1508_v60 }
 0x38d   : > { %1656 = vrot.lane.b32.xlu1 %v4513_v13, %s3734_s28  ;;  %2572 = vrot.lane.b32.xlu0 %v4517_v37, %s3735_s14  ;;  %v3498_v9 = vpop.eup %3497  ;;  %v2324_v41 = vmul.f32 0.35355338, %v3496_v30  ;;  %v1509_v30 = vsub.f32 %v4333_v61, %v1477_v51 }
 0x38e   : > { %v4536_v54 = vpop.eup %3499  ;;  %v2327_v2 = vmul.f32 0.35355338, %v3498_v9 }
 0x38f   : > { %v3502_v58 = vpop.eup %3501  ;;  %v2356_v10 = vadd.f32 1.0606601, %v2324_v41  ;;  %v1572_v59 = vmul.f32 1.442695, %v1509_v30 }
 0x390   : > { %v2359_v52 = vadd.f32 1.0606601, %v2327_v2  ;;  %v2325_v16 = vmul.f32 0.35355338, %v3502_v58  ;;  %v4550_v20 = vpop.eup %3503 }
 0x391   : > { %2574 = vrot.lane.b32.xlu1 %v4525_v46, %s3735_s14  ;;  %1658 = vrot.lane.b32.xlu0 %v4527_v48, %s3734_s28  ;;  %v1607_v27 = vpop.permute.xlu0 %1606 }
 0x392   : > { %v2357_v5 = vadd.f32 1.0606601, %v2325_v16  ;;  %v4555_v22 = vpop.eup %3505  ;;  %v1703_v29 = vsel %vm1702_vm3, %v1607_v27, 0.0  ;;  %v3303_v9 = vpop.f32.mrf.mxu1 }
 0x393   : > { %5182 = vst [vmem:[#allocation5_spill] sm:$0xff] %v4555_v22  ;;  %v3508_v7 = vpop.eup %3507  ;;  %v4565_v39 = vadd.f32 %v3303_v9, %v4412_v35 }
 0x394   : > { %v2234_v43 = vadd.f32 1.0, %v3508_v7  ;;  %v2065_v42 = vpop.f32.mrf.mxu1 }
 0x395   : > { %1660 = vrot.lane.b32.xlu1 %v4536_v54, %s3734_s28  ;;  %2568 = vrot.lane.b32.xlu0 %v4534_v32, %s3735_s14  ;;  %v1609_v12 = vpop.permute.xlu1 %1608  ;;  %v4576_v41 = vadd.f32 %v4412_v35, %v2065_v42 }
 0x396   : > { %v1706_v33 = vsel %vm1702_vm3, %v1609_v12, 0.0  ;;  %3509 = vrcp.f32 %v2234_v43 }
 0x397   : > { %3511 = vpow2.f32 %v1570_v26 }
 0x398   : > { %3513 = vpow2.f32 %v1572_v59 }
 0x399   : > { %2570 = vrot.lane.b32.xlu1 %v4543_v57, %s3735_s14  ;;  %2684 = vrot.lane.b32.xlu0 %v2358_v47, %s3735_s14  ;;  %v3304_v47 = vpop.f32.mrf.mxu1  ;;  %3515 = vpow2.f32 %v3064_v18  ;;  %v1611_v27 = vpop.permute.xlu1 %1610 }
 0x39a   : > { %v2077_v2 = vadd.f32 %v3304_v47, %v4412_v35  ;;  %3517 = vpow2.f32 %v3067_v4  ;;  %v1709_v12 = vsel %vm1702_vm3, %v1611_v27, 0.0  ;;  %v3065_v4 = vmul.f32 -1.442695, %v4500_v1 }
 0x39c   : > { %v3075_v27 = vmul.f32 -1.442695, %v2077_v2 }
 0x39d   : > { %2686 = vrot.lane.b32.xlu1 %v2359_v52, %s3735_s14  ;;  %2680 = vrot.lane.b32.xlu0 %v2356_v10, %s3735_s14  ;;  %v2068_v10 = vpop.f32.mrf.mxu1  ;;  %v1613_v60 = vpop.permute.xlu1 %1612 }
 0x39e   : > { %v4585_v16 = vadd.f32 %v4412_v35, %v2068_v10 }
 0x3a1   : > { %2682 = vrot.lane.b32.xlu1 %v2357_v5, %s3735_s14  ;;  %1662 = vrot.lane.b32.xlu0 %v4550_v20, %s3734_s28 }
 0x3a2   : > { %v4594_v40 = vpop.f32.mrf.mxu1 }
 0x3a3   : > { %v3510_v53 = vpop.eup %3509 }
 0x3a4   : > { %v4570_v61 = vpop.eup %3511  ;;  %v2330_v58 = vmul.f32 0.35355338, %v3510_v53  ;;  %v4596_v34 = vpop.f32.mrf.mxu1 }
 0x3a5   : > { %1664 = vrot.lane.b32.xlu1 %v4555_v22, %s3734_s28  ;;  %v4578_v52 = vpop.eup %3513  ;;  %v1617_v26 = vpop.permute.xlu1 %1616 }
 0x3a6   : > { %5183 = vst [vmem:[#allocation6_spill] sm:$0xff] %v4578_v52  ;;  %v2362_v5 = vadd.f32 1.0606601, %v2330_v58  ;;  %v1718_v30 = vsel %vm1702_vm3, %v1617_v26, 0.0  ;;  %v3308_v42 = vpop.f32.mrf.mxu1 }
 0x3a7   : > { %v4599_v47 = vadd.f32 %v3308_v42, %v4412_v35 }
 0x3a8   : > { %v2084_v10 = vpop.f32.mrf.mxu1 }
 0x3c0   : > { %1704 = vadd.xlane.f32.xlu0 %v1703_v29  ;;  %v3516_v29 = vpop.eup %3515 }
 0x3c1   : > { %v2232_v51 = vadd.f32 1.0, %v3516_v29  ;;  %v3518_v7 = vpop.eup %3517 }
 0x3c2   : > { %v2235_v43 = vadd.f32 1.0, %v3518_v7  ;;  %v1712_v7 = vsel %vm1702_vm3, %v1613_v60, 0.0 }
 0x3c3   : > { %3519 = vrcp.f32 %v2232_v51 }
 0x3c4   : > { %3521 = vrcp.f32 %v2235_v43 }
 0x3c5   : > { %3523 = vpow2.f32 %v3065_v4 }
 0x3c6   : > { %3525 = vpow2.f32 %v3075_v27 }
 0x3c9   : > { %1707 = vadd.xlane.f32.xlu1 %v1706_v33 }
 0x3d0   : > { %v3520_v33 = vpop.eup %3519 }
 0x3d1   : > { %v2328_v59 = vmul.f32 0.35355338, %v3520_v33  ;;  %v3522_v9 = vpop.eup %3521 }
 0x3d2   : > { %v2331_v58 = vmul.f32 0.35355338, %v3522_v9  ;;  %v3524_v29 = vpop.eup %3523 }
 0x3d3   : > { %v2360_v53 = vadd.f32 1.0606601, %v2328_v59  ;;  %v2233_v51 = vadd.f32 1.0, %v3524_v29  ;;  %v3526_v26 = vpop.eup %3525 }
 0x3d4   : > { %v2363_v18 = vadd.f32 1.0606601, %v2331_v58  ;;  %v2243_v33 = vadd.f32 1.0, %v3526_v26 }
 0x3d5   : > { %3527 = vrcp.f32 %v2233_v51  ;;  %v3070_v51 = vmul.f32 -1.442695, %v4517_v37  ;;  %v4636_v37 = vadd.f32 %v4594_v40, %v4412_v35  ;;  %v3068_v40 = vmul.f32 -1.442695, %v4534_v32 }
 0x3d6   : > { %2580 = vrot.lane.b32.xlu0 %v4565_v39, %s3735_s14  ;;  %3529 = vrcp.f32 %v2243_v33 }
 0x3d7   : > { %3531 = vpow2.f32 %v3070_v51  ;;  %v3071_v51 = vmul.f32 -1.442695, %v4525_v46 }
 0x3da   : > { %2582 = vrot.lane.b32.xlu1 %v2077_v2, %s3735_s14  ;;  %1666 = vrot.lane.b32.xlu0 %v4570_v61, %s3734_s28  ;;  %v4614_v2 = vpop.f32.mrf.mxu1 }
 0x3dc   : > { %v4616_v42 = vpop.f32.mrf.mxu1 }
 0x3de   : > { %1668 = vrot.lane.b32.xlu1 %v4578_v52, %s3734_s28  ;;  %2576 = vrot.lane.b32.xlu0 %v4576_v41, %s3735_s14 }
 0x3e2   : > { %2578 = vrot.lane.b32.xlu1 %v4585_v16, %s3735_s14  ;;  %2692 = vrot.lane.b32.xlu0 %v2362_v5, %s3735_s14  ;;  %v4605_v5 = vadd.f32 %v4412_v35, %v2084_v10  ;;  %v3528_v1 = vpop.eup %3527 }
 0x3e3   : > { %v2329_v9 = vmul.f32 0.35355338, %v3528_v1  ;;  %v3530_v10 = vpop.eup %3529 }
 0x3e4   : > { %v2339_v27 = vmul.f32 0.35355338, %v3530_v10  ;;  %v3532_v26 = vpop.eup %3531 }
 0x3e5   : > { %v2361_v60 = vadd.f32 1.0606601, %v2329_v9 }
 0x3e6   : > { %v2371_v29 = vadd.f32 1.0606601, %v2339_v27 }
 0x401   : > { %1710 = vadd.xlane.f32.xlu0 %v1709_v12  ;;  %v1621_v12 = vpop.permute.xlu1 %1620 }
 0x402   : > { %v1724_v43 = vsel %vm1702_vm3, %v1621_v12, 0.0  ;;  %v1615_v12 = vpop.permute.xlu0 %1614 }
 0x406   : > { %1719 = vadd.xlane.f32.xlu1 %v1718_v30  ;;  %v1625_v30 = vpop.permute.xlu1 %1624 }
 0x407   : > { %v1730_v59 = vsel %vm1702_vm3, %v1625_v30, 0.0  ;;  %v2238_v30 = vadd.f32 1.0, %v3532_v26  ;;  %v1619_v26 = vpop.permute.xlu0 %1618 }
 0x40a   : > { %v1629_v1 = vpop.permute.xlu1 %1628 }
 0x40b   : > { %v1736_v9 = vsel %vm1702_vm3, %v1629_v1, 0.0 }
 0x417   : > { %2590 = vrot.lane.b32.xlu1 %v4599_v47, %s3735_s14  ;;  %2688 = vrot.lane.b32.xlu0 %v2360_v53, %s3735_s14  ;;  %v3312_v53 = vpop.f32.mrf.mxu1 }
 0x418   : > { %v4620_v58 = vadd.f32 %v3312_v53, %v4412_v35 }
 0x41b   : > { %2586 = vrot.lane.b32.xlu1 %v4605_v5, %s3735_s14  ;;  %2694 = vrot.lane.b32.xlu0 %v2363_v18, %s3735_s14  ;;  %v2100_v18 = vpop.f32.mrf.mxu1 }
 0x41c   : > { %v4625_v4 = vadd.f32 %v4412_v35, %v2100_v18 }
 0x43a   : > { %1713 = vadd.xlane.f32.xlu0 %v1712_v7  ;;  %v3073_v7 = vmul.f32 -1.442695, %v4585_v16 }
 0x43c   : > { %3533 = vpow2.f32 %v3073_v7  ;;  %v3079_v7 = vmul.f32 -1.442695, %v4599_v47 }
 0x43d   : > { %3535 = vrcp.f32 %v2238_v30 }
 0x43f   : > { %1725 = vadd.xlane.f32.xlu1 %v1724_v43  ;;  %v1715_v43 = vsel %vm1702_vm3, %v1615_v12, 0.0 }
 0x443   : > { %1731 = vadd.xlane.f32.xlu1 %v1730_v59 }
 0x449   : > { %v3534_v33 = vpop.eup %3533 }
 0x44a   : > { %v2241_v59 = vadd.f32 1.0, %v3534_v33  ;;  %v3536_v16 = vpop.eup %3535  ;;  %v1721_v33 = vsel %vm1702_vm3, %v1619_v26, 0.0 }
 0x44b   : > { %v2334_v53 = vmul.f32 0.35355338, %v3536_v16 }
 0x44c   : > { %3537 = vrcp.f32 %v2241_v59 }
 0x44d   : > { %v2366_v18 = vadd.f32 1.0606601, %v2334_v53  ;;  %3539 = vpow2.f32 %v3068_v40  ;;  %v4654_v53 = vpop.f32.mrf.mxu1 }
 0x44e   : > { %3541 = vpow2.f32 %v3071_v51 }
 0x450   : > { %2690 = vrot.lane.b32.xlu0 %v2361_v60, %s3735_s14  ;;  %v4642_v60 = vadd.f32 %v4412_v35, %v4596_v34  ;;  %v3069_v34 = vmul.f32 -1.442695, %v4543_v57 }
 0x452   : > { %3543 = vpow2.f32 %v3069_v34 }
 0x453   : > { %3545 = vpow2.f32 %v3079_v7 }
 0x454   : > { %2598 = vrot.lane.b32.xlu1 %v4620_v58, %s3735_s14 }
 0x458   : > { %2594 = vrot.lane.b32.xlu1 %v4625_v4, %s3735_s14 }
 0x459   : > { %v3538_v10 = vpop.eup %3537 }
 0x45a   : > { %v2337_v27 = vmul.f32 0.35355338, %v3538_v10  ;;  %v3540_v12 = vpop.eup %3539 }
 0x45b   : > { %v3542_v30 = vpop.eup %3541 }
 0x45c   : > { %2710 = vrot.lane.b32.xlu1 %v2371_v29, %s3735_s14  ;;  %v2369_v29 = vadd.f32 1.0606601, %v2337_v27  ;;  %v2239_v59 = vadd.f32 1.0, %v3542_v30  ;;  %v4656_v27 = vpop.f32.mrf.mxu1 }
 0x45e   : > { %v3316_v34 = vpop.f32.mrf.mxu1 }
 0x45f   : > { %v3544_v32 = vpop.eup %3543  ;;  %v4660_v7 = vadd.f32 %v3316_v34, %v4412_v35 }
 0x460   : > { %v2237_v1 = vadd.f32 1.0, %v3544_v32  ;;  %v3546_v46 = vpop.eup %3545  ;;  %v2116_v30 = vpop.f32.mrf.mxu1 }
 0x461   : > { %v2247_v57 = vadd.f32 1.0, %v3546_v46  ;;  %v3077_v46 = vmul.f32 -1.442695, %v4605_v5 }
 0x46f   : > { %1716 = vadd.xlane.f32.xlu0 %v1715_v43  ;;  %v2236_v43 = vadd.f32 1.0, %v3540_v12 }
 0x471   : > { %3547 = vrcp.f32 %v2236_v43 }
 0x472   : > { %3549 = vrcp.f32 %v2239_v59 }
 0x473   : > { %3551 = vrcp.f32 %v2237_v1 }
 0x474   : > { %3553 = vrcp.f32 %v2247_v57  ;;  %v1623_v57 = vpop.permute.xlu0 %1622 }
 0x475   : > { %3555 = vpow2.f32 %v3077_v46 }
 0x47e   : > { %v3548_v47 = vpop.eup %3547 }
 0x47f   : > { %v2332_v10 = vmul.f32 0.35355338, %v3548_v47 }
 0x480   : > { %1737 = vadd.xlane.f32.xlu1 %v1736_v9  ;;  %v1633_v9 = vpop.permute.xlu1 %1632 }
 0x481   : > { %v1742_v16 = vsel %vm1702_vm3, %v1633_v9, 0.0  ;;  %v3074_v9 = vmul.f32 -1.442695, %v4565_v39  ;;  %v2106_v39 = vadd.f32 %v4614_v2, %v4412_v35 }
 0x483   : > { %3557 = vpow2.f32 %v3074_v9  ;;  %v3082_v2 = vmul.f32 -1.442695, %v2106_v39 }
 0x484   : > { %v4674_v47 = vpop.permute.xlu1 %2550 }
 0x485   : > { %2588 = vrot.lane.b32.xlu0 %v4636_v37, %s3735_s14  ;;  %5184 = vst [vmem:[#allocation7_spill] sm:$0xff] %v4674_v47 }
 0x489   : > { %2584 = vrot.lane.b32.xlu0 %v4642_v60, %s3735_s14 }
 0x48d   : > { %2700 = vrot.lane.b32.xlu0 %v2366_v18, %s3735_s14  ;;  %v3550_v18 = vpop.eup %3549 }
 0x48e   : > { %v2335_v40 = vmul.f32 0.35355338, %v3550_v18  ;;  %v3552_v51 = vpop.eup %3551 }
 0x48f   : > { %v2333_v43 = vmul.f32 0.35355338, %v3552_v51  ;;  %v3554_v26 = vpop.eup %3553  ;;  %v1637_v51 = vpop.permute.xlu1 %1636 }
 0x490   : > { %v2367_v12 = vadd.f32 1.0606601, %v2335_v40  ;;  %v2343_v32 = vmul.f32 0.35355338, %v3554_v26  ;;  %v1748_v34 = vsel %vm1702_vm3, %v1637_v51, 0.0  ;;  %v1627_v26 = vpop.permute.xlu0 %1626 }
 0x491   : > { %2706 = vrot.lane.b32.xlu1 %v2369_v29, %s3735_s14  ;;  %v2364_v29 = vadd.f32 1.0606601, %v2332_v10  ;;  %v2365_v59 = vadd.f32 1.0606601, %v2333_v43  ;;  %v1727_v10 = vsel %vm1702_vm3, %v1623_v57, 0.0 }
 0x492   : > { %v2375_v1 = vadd.f32 1.0606601, %v2343_v32 }
 0x493   : > { %v4698_v51 = vpop.permute.xlu1 %2546 }
 0x4ac   : > { %1722 = vadd.xlane.f32.xlu0 %v1721_v33  ;;  %v4666_v33 = vadd.f32 %v4412_v35, %v2116_v30  ;;  %v2098_v30 = vadd.f32 %v4412_v35, %v4616_v42 }
 0x4ae   : > { %v3080_v42 = vmul.f32 -1.442695, %v2098_v30 }
 0x4b5   : > { %1743 = vadd.xlane.f32.xlu1 %v1742_v16  ;;  %v3556_v16 = vpop.eup %3555 }
 0x4b6   : > { %v2245_v18 = vadd.f32 1.0, %v3556_v16  ;;  %v3072_v16 = vmul.f32 -1.442695, %v4576_v41 }
 0x4b8   : > { %3559 = vrcp.f32 %v2245_v18 }
 0x4c2   : > { %2696 = vrot.lane.b32.xlu0 %v2364_v29, %s3735_s14  ;;  %v3558_v29 = vpop.eup %3557 }
 0x4c3   : > { %v2242_v40 = vadd.f32 1.0, %v3558_v29 }
 0x4c5   : > { %3561 = vrcp.f32 %v2242_v40  ;;  %v3560_v5 = vpop.eup %3559 }
 0x4c6   : > { %2606 = vrot.lane.b32.xlu1 %v4660_v7, %s3735_s14  ;;  %2702 = vrot.lane.b32.xlu0 %v2367_v12, %s3735_s14  ;;  %v2341_v12 = vmul.f32 0.35355338, %v3560_v5  ;;  %3563 = vpow2.f32 %v3082_v2 }
 0x4c7   : > { %3565 = vpow2.f32 %v3072_v16 }
 0x4c8   : > { %3567 = vpow2.f32 %v3080_v42 }
 0x4ca   : > { %2602 = vrot.lane.b32.xlu1 %v4666_v33, %s3735_s14  ;;  %2698 = vrot.lane.b32.xlu0 %v2365_v59, %s3735_s14  ;;  %v2373_v59 = vadd.f32 1.0606601, %v2341_v12 }
 0x4ce   : > { %2718 = vrot.lane.b32.xlu1 %v2375_v1, %s3735_s14  ;;  %v4683_v1 = vpop.permute.xlu0 %1630 }
 0x4d2   : > { %v3562_v43 = vpop.eup %3561  ;;  %v4687_v9 = vpop.permute.xlu0 %2548 }
 0x4d3   : > { %v2338_v32 = vmul.f32 0.35355338, %v3562_v43  ;;  %5185 = vst [vmem:[#allocation8_spill] sm:$0xff] %v4687_v9  ;;  %v3564_v40 = vpop.eup %3563 }
 0x4d4   : > { %v2250_v5 = vadd.f32 1.0, %v3564_v40 }
 0x4d5   : > { %v2370_v46 = vadd.f32 1.0606601, %v2338_v32 }
 0x4d6   : > { %v4690_v57 = vpop.permute.xlu0 %1634 }
 0x4da   : > { %v4694_v18 = vpop.permute.xlu0 %2544 }
 0x4de   : > { %v4696_v29 = vpop.permute.xlu0 %1638 }
 0x4e9   : > { %1728 = vadd.xlane.f32.xlu0 %v1727_v10  ;;  %v3083_v10 = vmul.f32 -1.442695, %v4620_v58  ;;  %v1733_v58 = vsel %vm1702_vm3, %v1627_v26, 0.0 }
 0x4eb   : > { %3569 = vpow2.f32 %v3083_v10 }
 0x4ec   : > { %3571 = vrcp.f32 %v2250_v5 }
 0x4f2   : > { %1749 = vadd.xlane.f32.xlu1 %v1748_v34  ;;  %v3566_v34 = vpop.eup %3565 }
 0x4f3   : > { %v3568_v12 = vpop.eup %3567  ;;  %v2240_v41 = vadd.f32 1.0, %v3566_v34 }
 0x4f4   : > { %v2248_v43 = vadd.f32 1.0, %v3568_v12 }
 0x4f5   : > { %3573 = vrcp.f32 %v2240_v41 }
 0x4f6   : > { %3575 = vrcp.f32 %v2248_v43 }
 0x4ff   : > { %2596 = vrot.lane.b32.xlu0 %v2106_v39, %s3735_s14  ;;  %v4700_v39 = vpop.permute.xlu0 %2556 }
 0x500   : > { %5186 = vst [vmem:[#allocation9_spill] sm:$0xff] %v4700_v39 }
 0x503   : > { %2714 = vrot.lane.b32.xlu1 %v2373_v59, %s3735_s14  ;;  %2592 = vrot.lane.b32.xlu0 %v2098_v30, %s3735_s14  ;;  %v3570_v30 = vpop.eup %3569  ;;  %v1641_v59 = vpop.permute.xlu1 %1640 }
 0x504   : > { %v4702_v32 = vpop.permute.xlu0 %1642  ;;  %v1754_v2 = vsel %vm1702_vm3, %v1641_v59, 0.0  ;;  %v3572_v42 = vpop.eup %3571 }
 0x505   : > { %v3574_v40 = vpop.eup %3573  ;;  %v2346_v34 = vmul.f32 0.35355338, %v3572_v42 }
 0x506   : > { %v3576_v5 = vpop.eup %3575  ;;  %v2336_v26 = vmul.f32 0.35355338, %v3574_v40 }
 0x507   : > { %2708 = vrot.lane.b32.xlu0 %v2370_v46, %s3735_s14  ;;  %v2251_v46 = vadd.f32 1.0, %v3570_v30  ;;  %v2378_v41 = vadd.f32 1.0606601, %v2346_v34  ;;  %v2344_v39 = vmul.f32 0.35355338, %v3576_v5 }
 0x508   : > { %v4706_v16 = vpop.permute.xlu0 %2552  ;;  %v2368_v59 = vadd.f32 1.0606601, %v2336_v26  ;;  %v3081_v34 = vmul.f32 -1.442695, %v4625_v4  ;;  %v3078_v5 = vmul.f32 -1.442695, %v4636_v37  ;;  %v4728_v26 = vpop.permute.xlu1 %2558 }
 0x509   : > { %3577 = vrcp.f32 %v2251_v46  ;;  %5187 = vst [vmem:[#allocation10_spill] sm:$0xff] %v4706_v16  ;;  %v2376_v30 = vadd.f32 1.0606601, %v2344_v39  ;;  %5191 = vst [vmem:[#allocation14_spill] sm:$0xff] %v4728_v26 }
 0x50a   : > { %3579 = vpow2.f32 %v3081_v34 }
 0x50b   : > { %3581 = vpow2.f32 %v3078_v5 }
 0x50c   : > { %v4708_v10 = vpop.permute.xlu0 %1646  ;;  %v1645_v4 = vpop.permute.xlu1 %1644 }
 0x50d   : > { %v1760_v5 = vsel %vm1702_vm3, %v1645_v4, 0.0 }
 0x510   : > { %v4710_v12 = vpop.permute.xlu0 %2564  ;;  %v4736_v34 = vpop.permute.xlu1 %2554 }
 0x511   : > { %5188 = vst [vmem:[#allocation11_spill] sm:$0xff] %v4710_v12  ;;  %5193 = vst [vmem:[#allocation16_spill] sm:$0xff] %v4736_v34 }
 0x514   : > { %v4713_v46 = vpop.permute.xlu0 %1650 }
 0x516   : > { %v3578_v43 = vpop.eup %3577 }
 0x518   : > { %v4718_v42 = vpop.permute.xlu0 %2560 }
 0x519   : > { %5189 = vst [vmem:[#allocation12_spill] sm:$0xff] %v4718_v42 }
 0x51c   : > { %v4721_v40 = vpop.permute.xlu0 %2676 }
 0x51d   : > { %5190 = vst [vmem:[#allocation13_spill] sm:$0xff] %v4721_v40 }
 0x520   : > { %v4724_v39 = vpop.permute.xlu0 %2672 }
 0x526   : > { %1734 = vadd.xlane.f32.xlu0 %v1733_v58  ;;  %v2347_v58 = vmul.f32 0.35355338, %v3578_v43  ;;  %v3580_v43 = vpop.eup %3579 }
 0x527   : > { %1755 = vadd.xlane.f32.xlu1 %v1754_v2 }
 0x528   : > { %v2379_v2 = vadd.f32 1.0606601, %v2347_v58  ;;  %v2249_v58 = vadd.f32 1.0, %v3580_v43  ;;  %v2122_v43 = vadd.f32 %v4654_v53, %v4412_v35 }
 0x52a   : > { %3583 = vrcp.f32 %v2249_v58 }
 0x538   : > { %2724 = vrot.lane.b32.xlu1 %v2378_v41, %s3735_s14  ;;  %v4726_v41 = vpop.permute.xlu0 %1654 }
 0x53c   : > { %2720 = vrot.lane.b32.xlu1 %v2376_v30, %s3735_s14  ;;  %2704 = vrot.lane.b32.xlu0 %v2368_v59, %s3735_s14  ;;  %v4730_v30 = vpop.permute.xlu0 %2572  ;;  %v1739_v59 = vsel %vm1702_vm3, %v4683_v1, 0.0 }
 0x53d   : > { %5192 = vst [vmem:[#allocation15_spill] sm:$0xff] %v4730_v30  ;;  %v1649_v30 = vpop.permute.xlu1 %1648 }
 0x540   : > { %2726 = vrot.lane.b32.xlu1 %v2379_v2, %s3735_s14  ;;  %v3582_v2 = vpop.eup %3581  ;;  %v4734_v37 = vpop.permute.xlu0 %1658 }
 0x541   : > { %v2246_v12 = vadd.f32 1.0, %v3582_v2  ;;  %v3584_v26 = vpop.eup %3583  ;;  %v4743_v1 = vpop.permute.xlu1 %2566 }
 0x542   : > { %5196 = vst [vmem:[#allocation19_spill] sm:$0xff] %v4743_v1 }
 0x543   : > { %3585 = vrcp.f32 %v2246_v12  ;;  %v2114_v12 = vadd.f32 %v4412_v35, %v4656_v27  ;;  %v3076_v35 = vmul.f32 -1.442695, %v4642_v60 }
 0x544   : > { %v4739_v42 = vpop.permute.xlu0 %2568 }
 0x545   : > { %5194 = vst [vmem:[#allocation17_spill] sm:$0xff] %v4739_v42  ;;  %v4752_v4 = vpop.permute.xlu1 %1652 }
 0x548   : > { %v4741_v52 = vpop.permute.xlu0 %2684 }
 0x549   : > { %5195 = vst [vmem:[#allocation18_spill] sm:$0xff] %v4741_v52  ;;  %v4758_v53 = vpop.permute.xlu1 %2562 }
 0x54a   : > { %5198 = vst [vmem:[#allocation21_spill] sm:$0xff] %v4758_v53 }
 0x54c   : > { %v4748_v2 = vpop.permute.xlu0 %2680 }
 0x54d   : > { %5197 = vst [vmem:[#allocation20_spill] sm:$0xff] %v4748_v2  ;;  %v4764_v27 = vpop.permute.xlu1 %2678 }
 0x54e   : > { %5199 = vst [vmem:[#allocation22_spill] sm:$0xff] %v4764_v27  ;;  %v1745_v27 = vsel %vm1702_vm3, %v4690_v57, 0.0 }
 0x550   : > { %v3586_v58 = vpop.eup %3585  ;;  %v4756_v52 = vpop.permute.xlu0 %1662 }
 0x551   : > { %v2342_v42 = vmul.f32 0.35355338, %v3586_v58 }
 0x553   : > { %v2374_v1 = vadd.f32 1.0606601, %v2342_v42  ;;  %v3087_v42 = vmul.f32 -1.442695, %v4660_v7 }
 0x554   : > { %v4761_v34 = vpop.xlane.xlu0 %1704 }
 0x558   : > { %v4766_v58 = vpop.permute.xlu0 %2580 }
 0x559   : > { %5200 = vst [vmem:[#allocation23_spill] sm:$0xff] %v4766_v58 }
 0x55b   : > { %1740 = vadd.xlane.f32.xlu0 %v1739_v59  ;;  %v2345_v59 = vmul.f32 0.35355338, %v3584_v26  ;;  %v3086_v26 = vmul.f32 -1.442695, %v2122_v43 }
 0x55c   : > { %v4771_v53 = vpop.permute.xlu0 %1666 }
 0x55d   : > { %3587 = vpow2.f32 %v3086_v26 }
 0x55e   : > { %3589 = vpow2.f32 %v3076_v35 }
 0x560   : > { %v4775_v2 = vpop.permute.xlu0 %2576 }
 0x561   : > { %5201 = vst [vmem:[#allocation24_spill] sm:$0xff] %v4775_v2 }
 0x564   : > { %1761 = vadd.xlane.f32.xlu1 %v1760_v5  ;;  %v2377_v5 = vadd.f32 1.0606601, %v2345_v59  ;;  %v3084_v59 = vmul.f32 -1.442695, %v2114_v12 }
 0x566   : > { %3591 = vpow2.f32 %v3084_v59  ;;  %v4779_v59 = vpop.permute.xlu0 %2692 }
 0x567   : > { %3593 = vpow2.f32 %v3087_v42  ;;  %5203 = vst [vmem:[#allocation26_spill] sm:$0xff] %v4779_v59 }
 0x56a   : > { %v4785_v2 = vpop.xlane.xlu0 %1710 }
 0x571   : > { %2604 = vrot.lane.b32.xlu0 %v2122_v43, %s3735_s14  ;;  %v3588_v43 = vpop.eup %3587 }
 0x572   : > { %v3590_v60 = vpop.eup %3589  ;;  %v2254_v16 = vadd.f32 1.0, %v3588_v43  ;;  %v1766_v43 = vsel %vm1702_vm3, %v1649_v30, 0.0 }
 0x573   : > { %v3592_v26 = vpop.eup %3591  ;;  %v2244_v58 = vadd.f32 1.0, %v3590_v60  ;;  %v4790_v60 = vpop.permute.xlu0 %2688 }
 0x574   : > { %3595 = vrcp.f32 %v2254_v16  ;;  %v2252_v35 = vadd.f32 1.0, %v3592_v26  ;;  %v3594_v7 = vpop.eup %3593  ;;  %5205 = vst [vmem:[#allocation28_spill] sm:$0xff] %v4790_v60 }
 0x575   : > { %2722 = vrot.lane.b32.xlu1 %v2377_v5, %s3735_s14  ;;  %2600 = vrot.lane.b32.xlu0 %v2114_v12, %s3735_s14  ;;  %v4769_v5 = vpop.permute.xlu1 %2674  ;;  %3597 = vrcp.f32 %v2244_v58  ;;  %v2255_v47 = vadd.f32 1.0, %v3594_v7 }
 0x576   : > { %3599 = vrcp.f32 %v2252_v35 }
 0x577   : > { %3601 = vrcp.f32 %v2255_v47  ;;  %v4794_v59 = vpop.permute.xlu0 %2694 }
 0x578   : > { %5207 = vst [vmem:[#allocation30_spill] sm:$0xff] %v4794_v59 }
 0x579   : > { %2716 = vrot.lane.b32.xlu0 %v2374_v1, %s3735_s14  ;;  %v4773_v1 = vpop.permute.xlu1 %1656 }
 0x57b   : > { %v4796_v7 = vpop.xlane.xlu0 %1713 }
 0x57d   : > { %v4777_v12 = vpop.permute.xlu1 %2574 }
 0x57e   : > { %5202 = vst [vmem:[#allocation25_spill] sm:$0xff] %v4777_v12 }
 0x57f   : > { %v4801_v9 = vpop.permute.xlu0 %2690 }
 0x580   : > { %5208 = vst [vmem:[#allocation31_spill] sm:$0xff] %v4801_v9 }
 0x581   : > { %v4781_v42 = vpop.permute.xlu1 %1660  ;;  %v3596_v26 = vpop.eup %3595 }
 0x582   : > { %v3598_v12 = vpop.eup %3597  ;;  %v2350_v57 = vmul.f32 0.35355338, %v3596_v26 }
 0x583   : > { %v3600_v35 = vpop.eup %3599  ;;  %v2340_v40 = vmul.f32 0.35355338, %v3598_v12 }
 0x584   : > { %v2382_v22 = vadd.f32 1.0606601, %v2350_v57  ;;  %v3602_v30 = vpop.eup %3601  ;;  %v1717_v57 = vpop.xlane.xlu0 %1716 }
 0x585   : > { %v4788_v16 = vpop.permute.xlu1 %2570  ;;  %v2351_v60 = vmul.f32 0.35355338, %v3602_v30 }
 0x586   : > { %5204 = vst [vmem:[#allocation27_spill] sm:$0xff] %v4788_v16  ;;  %v2372_v16 = vadd.f32 1.0606601, %v2340_v40 }
 0x587   : > { %v2383_v59 = vadd.f32 1.0606601, %v2351_v60 }
 0x589   : > { %v4792_v58 = vpop.permute.xlu1 %2686 }
 0x58a   : > { %5206 = vst [vmem:[#allocation29_spill] sm:$0xff] %v4792_v58 }
 0x598   : > { %1746 = vadd.xlane.f32.xlu0 %v1745_v27  ;;  %v2348_v27 = vmul.f32 0.35355338, %v3600_v35  ;;  %v4810_v35 = vpop.permute.xlu0 %2588 }
 0x599   : > { %1767 = vadd.xlane.f32.xlu1 %v1766_v43  ;;  %v4798_v43 = vpop.permute.xlu1 %2682  ;;  %5209 = vst [vmem:[#allocation32_spill] sm:$0xff] %v4810_v35  ;;  %v1751_v35 = vsel %vm1702_vm3, %v4696_v29, 0.0  ;;  %v1772_v29 = vsel %vm1702_vm3, %v4752_v4, 0.0  ;;  %v1781_v4 = vsel %vm1702_vm3, %v4734_v37, 0.0 }
 0x59a   : > { %v2380_v47 = vadd.f32 1.0606601, %v2348_v27 }
 0x59c   : > { %v4815_v27 = vpop.permute.xlu0 %2584 }
 0x59d   : > { %v4805_v26 = vpop.permute.xlu1 %1664  ;;  %5211 = vst [vmem:[#allocation34_spill] sm:$0xff] %v4815_v27  ;;  %v1757_v27 = vsel %vm1702_vm3, %v4702_v32, 0.0 }
 0x5a1   : > { %v4808_v12 = vpop.xlane.xlu1 %1707 }
 0x5a5   : > { %v4813_v40 = vpop.permute.xlu1 %2582 }
 0x5a6   : > { %5210 = vst [vmem:[#allocation33_spill] sm:$0xff] %v4813_v40 }
 0x5a9   : > { %v4817_v30 = vpop.permute.xlu1 %1668 }
 0x5aa   : > { %2732 = vrot.lane.b32.xlu1 %v2382_v22, %s3735_s14  ;;  %v3085_v22 = vmul.f32 -1.442695, %v4666_v33 }
 0x5ac   : > { %3603 = vpow2.f32 %v3085_v22 }
 0x5ae   : > { %2728 = vrot.lane.b32.xlu1 %v2380_v47, %s3735_s14  ;;  %2712 = vrot.lane.b32.xlu0 %v2372_v16, %s3735_s14  ;;  %v4819_v16 = vpop.permute.xlu0 %2700  ;;  %v4821_v47 = vpop.permute.xlu1 %2578 }
 0x5af   : > { %5212 = vst [vmem:[#allocation35_spill] sm:$0xff] %v4819_v16  ;;  %5213 = vst [vmem:[#allocation36_spill] sm:$0xff] %v4821_v47  ;;  %v1763_v47 = vsel %vm1702_vm3, %v4708_v10, 0.0 }
 0x5b2   : > { %2734 = vrot.lane.b32.xlu1 %v2383_v59, %s3735_s14  ;;  %v1723_v60 = vpop.xlane.xlu0 %1722  ;;  %v4823_v9 = vpop.xlane.xlu1 %1719 }
 0x5b6   : > { %v4827_v33 = vpop.permute.xlu0 %2696  ;;  %v4829_v22 = vpop.permute.xlu1 %2590 }
 0x5b7   : > { %5214 = vst [vmem:[#allocation37_spill] sm:$0xff] %v4829_v22 }
 0x5b9   : > { %v3604_v59 = vpop.eup %3603 }
 0x5ba   : > { %v2253_v58 = vadd.f32 1.0, %v3604_v59  ;;  %v4833_v40 = vpop.permute.xlu0 %2702  ;;  %v4837_v16 = vpop.permute.xlu1 %2586 }
 0x5bb   : > { %5215 = vst [vmem:[#allocation38_spill] sm:$0xff] %v4837_v16 }
 0x5bc   : > { %3605 = vrcp.f32 %v2253_v58  ;;  %v1775_v58 = vsel %vm1702_vm3, %v4726_v41, 0.0  ;;  %v1793_v41 = vsel %vm1702_vm3, %v4771_v53, 0.0 }
 0x5bd   : > { %3607 = vrcp.f32 %v4761_v34 }
 0x5be   : > { %v4843_v59 = vpop.xlane.xlu1 %1725  ;;  %v4845_v32 = vpop.permute.xlu0 %2698  ;;  %3609 = vrcp.f32 %v1717_v57 }
 0x5bf   : > { %3611 = vrcp.f32 %v1723_v60 }
 0x5c2   : > { %v4849_v22 = vpop.xlane.xlu1 %1731 }
 0x5c9   : > { %v3606_v10 = vpop.eup %3605 }
 0x5cd   : > { %1752 = vadd.xlane.f32.xlu0 %v1751_v35  ;;  %v1769_v35 = vsel %vm1702_vm3, %v4713_v46, 0.0  ;;  %v1787_v46 = vsel %vm1702_vm3, %v4756_v52, 0.0 }
 0x5d1   : > { %1758 = vadd.xlane.f32.xlu0 %v1757_v27  ;;  %v1729_v27 = vpop.xlane.xlu0 %1728 }
 0x5d2   : > { %3613 = vrcp.f32 %v1729_v27 }
 0x5d5   : > { %1764 = vadd.xlane.f32.xlu0 %v1763_v47  ;;  %v2349_v47 = vmul.f32 0.35355338, %v3606_v10 }
 0x5d6   : > { %1773 = vadd.xlane.f32.xlu1 %v1772_v29  ;;  %v4853_v29 = vpop.permute.xlu0 %2596 }
 0x5d7   : > { %5216 = vst [vmem:[#allocation39_spill] sm:$0xff] %v4853_v29  ;;  %v2381_v16 = vadd.f32 1.0606601, %v2349_v47 }
 0x5d9   : > { %1770 = vadd.xlane.f32.xlu0 %v1769_v35  ;;  %v4857_v35 = vpop.permute.xlu1 %2598 }
 0x5da   : > { %5217 = vst [vmem:[#allocation40_spill] sm:$0xff] %v4857_v35 }
 0x5dd   : > { %1776 = vadd.xlane.f32.xlu0 %v1775_v58  ;;  %v4862_v58 = vpop.permute.xlu0 %2592  ;;  %v4864_v37 = vpop.permute.xlu1 %2594 }
 0x5de   : > { %5218 = vst [vmem:[#allocation41_spill] sm:$0xff] %v4862_v58  ;;  %5219 = vst [vmem:[#allocation42_spill] sm:$0xff] %v4864_v37 }
 0x5e1   : > { %1782 = vadd.xlane.f32.xlu0 %v1781_v4  ;;  %v4867_v10 = vpop.permute.xlu0 %2708  ;;  %v4869_v4 = vpop.permute.xlu1 %2710 }
 0x5e5   : > { %1788 = vadd.xlane.f32.xlu0 %v1787_v46  ;;  %v1735_v52 = vpop.xlane.xlu0 %1734  ;;  %v1738_v46 = vpop.xlane.xlu1 %1737 }
 0x5e6   : > { %3615 = vrcp.f32 %v1735_v52 }
 0x5e7   : > { %2730 = vrot.lane.b32.xlu1 %v2381_v16, %s3735_s14  ;;  %v3608_v16 = vpop.eup %3607 }
 0x5e8   : > { %v3610_v35 = vpop.eup %3609 }
 0x5e9   : > { %1794 = vadd.xlane.f32.xlu0 %v1793_v41  ;;  %v4871_v47 = vpop.permute.xlu0 %2704  ;;  %v4873_v53 = vpop.permute.xlu1 %2706  ;;  %v1800_v41 = vmul.f32 %v3608_v16, %v4345_v31  ;;  %v1808_v57 = vmul.f32 %v3610_v35, %v4365_v49  ;;  %v1778_v16 = vsel %vm1702_vm3, %v4773_v1, 0.0 }
 0x5ea   : > { %v3612_v37 = vpop.eup %3611 }
 0x5eb   : > { %v1812_v27 = vmul.f32 %v3612_v37, %v4375_v0  ;;  %v3614_v58 = vpop.eup %3613  ;;  %v1784_v0 = vsel %vm1702_vm3, %v4781_v42, 0.0  ;;  %v1796_v42 = vsel %vm1702_vm3, %v4817_v30, 0.0 }
 0x5ec   : > { %v1816_v31 = vmul.f32 %v3614_v58, %v4385_v14  ;;  %v1790_v58 = vsel %vm1702_vm3, %v4805_v26, 0.0 }
 0x5ed   : > { %v1741_v29 = vpop.xlane.xlu0 %1740  ;;  %v1744_v34 = vpop.xlane.xlu1 %1743 }
 0x5ee   : > { %3617 = vrcp.f32 %v1741_v29 }
 0x5ef   : > { %3619 = vrcp.f32 %v4808_v12 }
 0x5f0   : > { %3621 = vrcp.f32 %v4785_v2 }
 0x5f1   : > { %v4879_v60 = vpop.permute.xlu1 %2606  ;;  %v4895_v14 = vpop.permute.xlu0 %2604  ;;  %3623 = vrcp.f32 %v4796_v7 }
 0x5f2   : > { %3625 = vrcp.f32 %v4823_v9 }
 0x5f3   : > { %v3616_v52 = vpop.eup %3615 }
 0x5f4   : > { %v1820_v49 = vmul.f32 %v3616_v52, %v4395_v24 }
 0x5f5   : > { %v4904_v37 = vpop.permute.xlu0 %2600 }
 0x5fb   : > { %v3618_v29 = vpop.eup %3617 }
 0x5fc   : > { %v1824_v1 = vmul.f32 %v3618_v29, %v4405_v28  ;;  %v4909_v28 = vpop.permute.xlu0 %2716  ;;  %v3620_v12 = vpop.eup %3619 }
 0x5fd   : > { %v1802_v30 = vmul.f32 %v3620_v12, %v4350_v36  ;;  %v3622_v52 = vpop.eup %3621 }
 0x5fe   : > { %v1804_v2 = vmul.f32 %v3622_v52, %v4355_v38  ;;  %v3624_v7 = vpop.eup %3623 }
 0x5ff   : > { %2416 = vrot.lane.b32.xlu0 %v1800_v41, %s3734_s28  ;;  %v4886_v41 = vpop.permute.xlu1 %2602  ;;  %v3626_v9 = vpop.eup %3625 }
 0x600   : > { %v1810_v38 = vmul.f32 %v3626_v9, %v4370_v56 }
 0x603   : > { %2424 = vrot.lane.b32.xlu0 %v1808_v57, %s3734_s28  ;;  %v4893_v35 = vpop.permute.xlu1 %2718 }
 0x607   : > { %2428 = vrot.lane.b32.xlu0 %v1812_v27, %s3734_s28  ;;  %v1750_v24 = vpop.xlane.xlu1 %1749 }
 0x60b   : > { %1779 = vadd.xlane.f32.xlu1 %v1778_v16  ;;  %2432 = vrot.lane.b32.xlu0 %v1816_v31, %s3734_s28  ;;  %v4907_v57 = vpop.permute.xlu1 %2714 }
 0x60f   : > { %1785 = vadd.xlane.f32.xlu1 %v1784_v0  ;;  %2436 = vrot.lane.b32.xlu0 %v1820_v49, %s3734_s28  ;;  %v1756_v26 = vpop.xlane.xlu1 %1755  ;;  %v1806_v49 = vmul.f32 %v3624_v7, %v4360_v45 }
 0x613   : > { %1791 = vadd.xlane.f32.xlu1 %v1790_v58  ;;  %2440 = vrot.lane.b32.xlu0 %v1824_v1, %s3734_s28  ;;  %v4913_v31 = vpop.permute.xlu1 %2724 }
 0x617   : > { %1797 = vadd.xlane.f32.xlu1 %v1796_v42  ;;  %v4920_v16 = vpop.permute.xlu1 %2720 }
 0x621   : > { %v1747_v27 = vpop.xlane.xlu0 %1746 }
 0x622   : > { %3627 = vrcp.f32 %v1747_v27 }
 0x623   : > { %3629 = vrcp.f32 %v4843_v59  ;;  %v4926_v59 = vpop.permute.xlu1 %2726 }
 0x624   : > { %3631 = vrcp.f32 %v4849_v22 }
 0x625   : > { %3633 = vrcp.f32 %v1738_v46 }
 0x626   : > { %3635 = vrcp.f32 %v1744_v34 }
 0x627   : > { %v1762_v0 = vpop.xlane.xlu1 %1761  ;;  %3637 = vrcp.f32 %v1750_v24 }
 0x628   : > { %2418 = vrot.lane.b32.xlu1 %v1802_v30, %s3734_s28  ;;  %3639 = vrcp.f32 %v1756_v26 }
 0x629   : > { %3641 = vrcp.f32 %v1762_v0 }
 0x62b   : > { %v4934_v58 = vpop.permute.xlu1 %2722 }
 0x62c   : > { %2420 = vrot.lane.b32.xlu1 %v1804_v2, %s3734_s28 }
 0x62f   : > { %v3628_v29 = vpop.eup %3627  ;;  %v1768_v42 = vpop.xlane.xlu1 %1767 }
 0x630   : > { %2422 = vrot.lane.b32.xlu1 %v1806_v49, %s3734_s28  ;;  %v1828_v36 = vmul.f32 %v3628_v29, %v4424_v63  ;;  %v3630_v22 = vpop.eup %3629  ;;  %3643 = vrcp.f32 %v1768_v42 }
 0x631   : > { %v1814_v46 = vmul.f32 %v3630_v22, %v4380_v8  ;;  %v3632_v45 = vpop.eup %3631 }
 0x632   : > { %2444 = vrot.lane.b32.xlu0 %v1828_v36, %s3734_s28  ;;  %v1818_v63 = vmul.f32 %v3632_v45, %v4390_v17  ;;  %v3634_v1 = vpop.eup %3633 }
 0x633   : > { %v1822_v56 = vmul.f32 %v3634_v1, %v4400_v19  ;;  %v3636_v34 = vpop.eup %3635  ;;  %v4946_v52 = vpop.permute.xlu1 %2732 }
 0x634   : > { %2426 = vrot.lane.b32.xlu1 %v1810_v38, %s3734_s28  ;;  %v1826_v8 = vmul.f32 %v3636_v34, %v4415_v21  ;;  %v3638_v24 = vpop.eup %3637  ;;  %v4949_v21 = vpop.permute.xlu0 %2712 }
 0x635   : > { %v1830_v17 = vmul.f32 %v3638_v24, %v4431_v11  ;;  %v3640_v26 = vpop.eup %3639 }
 0x636   : > { %v1834_v27 = vmul.f32 %v3640_v26, %v4443_v15  ;;  %v3642_v12 = vpop.eup %3641 }
 0x637   : > { %v1838_v19 = vmul.f32 %v3642_v12, %v4458_v50  ;;  %v4953_v11 = vpop.permute.xlu1 %2728 }
 0x638   : > { %2430 = vrot.lane.b32.xlu1 %v1814_v46, %s3734_s28 }
 0x63b   : > { %v4955_v9 = vpop.permute.xlu1 %2734 }
 0x63c   : > { %2434 = vrot.lane.b32.xlu1 %v1818_v63, %s3734_s28 }
 0x63d   : > { %v3644_v30 = vpop.eup %3643 }
 0x63e   : > { %v1842_v2 = vmul.f32 %v3644_v30, %v4472_v55 }
 0x640   : > { %2438 = vrot.lane.b32.xlu1 %v1822_v56, %s3734_s28 }
 0x644   : > { %2442 = vrot.lane.b32.xlu1 %v1826_v8, %s3734_s28 }
 0x648   : > { %2446 = vrot.lane.b32.xlu1 %v1830_v17, %s3734_s28 }
 0x64c   : > { %2450 = vrot.lane.b32.xlu1 %v1834_v27, %s3734_s28 }
 0x650   : > { %2454 = vrot.lane.b32.xlu1 %v1838_v19, %s3734_s28 }
 0x654   : > { %2458 = vrot.lane.b32.xlu1 %v1842_v2, %s3734_s28 }
 0x656   : > { %v1753_v7 = vpop.xlane.xlu0 %1752 }
 0x657   : > { %3645 = vrcp.f32 %v1753_v7 }
 0x65a   : > { %v1759_v15 = vpop.xlane.xlu0 %1758 }
 0x65b   : > { %3647 = vrcp.f32 %v1759_v15 }
 0x65e   : > { %v1765_v50 = vpop.xlane.xlu0 %1764 }
 0x65f   : > { %3649 = vrcp.f32 %v1765_v50  ;;  %v1774_v49 = vpop.xlane.xlu1 %1773 }
 0x660   : > { %3651 = vrcp.f32 %v1774_v49 }
 0x662   : > { %v1771_v29 = vpop.xlane.xlu0 %1770 }
 0x663   : > { %3653 = vrcp.f32 %v1771_v29  ;;  %v4975_v12 = vpop.permute.xlu1 %2730 }
 0x664   : > { %v3646_v36 = vpop.eup %3645 }
 0x665   : > { %v1832_v38 = vmul.f32 %v3646_v36, %v4437_v3 }
 0x666   : > { %v1777_v55 = vpop.xlane.xlu0 %1776 }
 0x667   : > { %3655 = vrcp.f32 %v1777_v55  ;;  %2448 = vrot.lane.b32.xlu0 %v1832_v38, %s3734_s28 }
 0x668   : > { %v3648_v22 = vpop.eup %3647 }
 0x669   : > { %v1836_v0 = vmul.f32 %v3648_v22, %v4449_v23  ;;  %v5221_v22 = vld [vmem:[#allocation13_spill] sm:$0xff] }
 0x66a   : > { %v1783_v46 = vpop.xlane.xlu0 %1782 }
 0x66b   : > { %3657 = vrcp.f32 %v1783_v46  ;;  %2452 = vrot.lane.b32.xlu0 %v1836_v0, %s3734_s28 }
 0x66c   : > { %v3650_v45 = vpop.eup %3649 }
 0x66d   : > { %v3652_v63 = vpop.eup %3651  ;;  %v1840_v1 = vmul.f32 %v3650_v45, %v4464_v6 }
 0x66e   : > { %v1789_v56 = vpop.xlane.xlu0 %1788  ;;  %v1846_v34 = vmul.f32 %v3652_v63, %v4493_v44 }
 0x66f   : > { %3659 = vrcp.f32 %v1789_v56  ;;  %2456 = vrot.lane.b32.xlu0 %v1840_v1, %s3734_s28  ;;  %v5223_v1 = vld [vmem:[#allocation7_spill] sm:$0xff]  ;;  %v5224_v56 = vld [vmem:[#allocation22_spill] sm:$0xff] }
 0x670   : > { %v3654_v3 = vpop.eup %3653  ;;  %2462 = vrot.lane.b32.xlu1 %v1846_v34, %s3734_s28 }
 0x671   : > { %v1844_v42 = vmul.f32 %v3654_v3, %v4483_v62  ;;  %v5225_v3 = vld [vmem:[#allocation10_spill] sm:$0xff] }
 0x672   : > { %v1795_v23 = vpop.xlane.xlu0 %1794 }
 0x673   : > { %3661 = vrcp.f32 %v1795_v23  ;;  %2460 = vrot.lane.b32.xlu0 %v1844_v42, %s3734_s28  ;;  %v5226_v23 = vld [vmem:[#allocation6_spill] sm:$0xff] }
 0x674   : > { %v3656_v8 = vpop.eup %3655 }
 0x675   : > { %v1848_v24 = vmul.f32 %v3656_v8, %v4508_v25 }
 0x676   : > { %v2417_v30 = vpop.permute.xlu0 %2416 }
 0x677   : > { %2464 = vrot.lane.b32.xlu0 %v1848_v24, %s3734_s28  ;;  %v2768_v2 = vsel %vm1702_vm3, %v2417_v30, %v4694_v18 }
 0x678   : > { %v3658_v6 = vpop.eup %3657  ;;  %v2801_v7 = vsel %vm2800_vm4, %v2768_v2, %v4724_v39  ;;  %v5220_v39 = vld [vmem:[#allocation8_spill] sm:$0xff] }
 0x679   : > { %v1852_v44 = vmul.f32 %v3658_v6, %v4527_v48  ;;  %v5227_v6 = vld [vmem:[#allocation20_spill] sm:$0xff] }
 0x67a   : > { %v2425_v45 = vpop.permute.xlu0 %2424 }
 0x67b   : > { %2468 = vrot.lane.b32.xlu0 %v1852_v44, %s3734_s28  ;;  %v2772_v42 = vsel %vm1702_vm3, %v2425_v45, %v5225_v3  ;;  %v5238_v45 = vld [vmem:[#allocation26_spill] sm:$0xff] }
 0x67c   : > { %v3660_v17 = vpop.eup %3659  ;;  %v2805_v44 = vsel %vm2800_vm4, %v2772_v42, %v5227_v6  ;;  %v5241_v42 = vld [vmem:[#allocation17_spill] sm:$0xff] }
 0x67d   : > { %v1856_v26 = vmul.f32 %v3660_v17, %v4550_v20  ;;  %v5228_v17 = vld [vmem:[#allocation16_spill] sm:$0xff] }
 0x67f   : > { %2472 = vrot.lane.b32.xlu0 %v1856_v26, %s3734_s28 }
 0x680   : > { %v3662_v62 = vpop.eup %3661 }
 0x681   : > { %v1860_v27 = vmul.f32 %v3662_v62, %v4570_v61  ;;  %v2429_v62 = vpop.permute.xlu0 %2428 }
 0x683   : > { %2476 = vrot.lane.b32.xlu0 %v1860_v27, %s3734_s28 }
 0x694   : > { %v1780_v25 = vpop.xlane.xlu1 %1779 }
 0x695   : > { %3663 = vrcp.f32 %v1780_v25  ;;  %v5229_v25 = vld [vmem:[#allocation9_spill] sm:$0xff] }
 0x698   : > { %v1786_v19 = vpop.xlane.xlu1 %1785 }
 0x699   : > { %3665 = vrcp.f32 %v1786_v19  ;;  %v2774_v19 = vsel %vm1702_vm3, %v2429_v62, %v5229_v25  ;;  %v5243_v62 = vld [vmem:[#allocation15_spill] sm:$0xff] }
 0x69c   : > { %v1792_v48 = vpop.xlane.xlu1 %1791 }
 0x69d   : > { %3667 = vrcp.f32 %v1792_v48  ;;  %v5230_v48 = vld [vmem:[#allocation18_spill] sm:$0xff] }
 0x69e   : > { %v2807_v2 = vsel %vm2800_vm4, %v2774_v19, %v5230_v48 }
 0x6a0   : > { %v1798_v20 = vpop.xlane.xlu1 %1797 }
 0x6a1   : > { %3669 = vrcp.f32 %v1798_v20  ;;  %2833 = vxpose.xlu0.b32.start [1/16] (narrow) %v2801_v7, 16  ;;  %v5231_v20 = vld [vmem:[#allocation14_spill] sm:$0xff] }
 0x6a2   : > { %v3664_v61 = vpop.eup %3663 }
 0x6a3   : > { %v1850_v15 = vmul.f32 %v3664_v61, %v4513_v13  ;;  %v2433_v61 = vpop.permute.xlu0 %2432 }
 0x6a4   : > { %v2419_v50 = vpop.permute.xlu1 %2418 }
 0x6a5   : > { %v2769_v49 = vsel %vm1702_vm3, %v2419_v50, %v4698_v51  ;;  %2466 = vrot.lane.b32.xlu1 %v1850_v15, %s3734_s28  ;;  %v5222_v51 = vld [vmem:[#allocation5_spill] sm:$0xff] }
 0x6a6   : > { %v3666_v29 = vpop.eup %3665  ;;  %v2802_v18 = vsel %vm2800_vm4, %v2769_v49, %v4769_v5  ;;  %v5232_v15 = vld [vmem:[#allocation29_spill] sm:$0xff]  ;;  %v5233_v49 = vld [vmem:[#allocation12_spill] sm:$0xff] }
 0x6a7   : > { %2834 = vxpose.xlu0.b32.cont [2/16] (narrow) %v2802_v18, 16  ;;  %v1854_v36 = vmul.f32 %v3666_v29, %v4536_v54  ;;  %v2776_v29 = vsel %vm1702_vm3, %v2433_v61, %v5233_v49  ;;  %v5234_v18 = vld [vmem:[#allocation28_spill] sm:$0xff] }
 0x6a8   : > { %v2421_v38 = vpop.permute.xlu1 %2420 }
 0x6a9   : > { %v2770_v55 = vsel %vm1702_vm3, %v2421_v38, %v5220_v39  ;;  %2470 = vrot.lane.b32.xlu1 %v1854_v36, %s3734_s28  ;;  %v2809_v36 = vsel %vm2800_vm4, %v2776_v29, %v5234_v18  ;;  %v5235_v38 = vld [vmem:[#allocation21_spill] sm:$0xff] }
 0x6aa   : > { %v3668_v13 = vpop.eup %3667  ;;  %v2803_v0 = vsel %vm2800_vm4, %v2770_v55, %v5221_v22  ;;  %v2437_v55 = vpop.permute.xlu0 %2436 }
 0x6ab   : > { %2835 = vxpose.xlu0.b32.cont [3/16] (narrow) %v2803_v0, 16  ;;  %v1858_v46 = vmul.f32 %v3668_v13, %v5222_v51  ;;  %v5236_v13 = vld [vmem:[#allocation31_spill] sm:$0xff] }
 0x6ac   : > { %v2423_v63 = vpop.permute.xlu1 %2422  ;;  %v5237_v0 = vld [vmem:[#allocation11_spill] sm:$0xff] }
 0x6ad   : > { %v2771_v5 = vsel %vm1702_vm3, %v2423_v63, %v5223_v1  ;;  %2474 = vrot.lane.b32.xlu1 %v1858_v46, %s3734_s28  ;;  %v2778_v51 = vsel %vm1702_vm3, %v2437_v55, %v5237_v0  ;;  %v5239_v1 = vld [vmem:[#allocation19_spill] sm:$0xff] }
 0x6ae   : > { %v3670_v54 = vpop.eup %3669  ;;  %v2804_v34 = vsel %vm2800_vm4, %v2771_v5, %v5224_v56  ;;  %v2811_v63 = vsel %vm2800_vm4, %v2778_v51, %v5238_v45  ;;  %v5251_v51 = vld [vmem:[#allocation38_spill] sm:$0xff] }
 0x6af   : > { %2836 = vxpose.xlu0.b32.cont [4/16] (narrow) %v2804_v34, 16  ;;  %v1862_v8 = vmul.f32 %v3670_v54, %v5226_v23  ;;  %v2441_v54 = vpop.permute.xlu0 %2440  ;;  %v5240_v34 = vld [vmem:[#allocation30_spill] sm:$0xff] }
 0x6b0   : > { %v2427_v24 = vpop.permute.xlu1 %2426  ;;  %v2780_v23 = vsel %vm1702_vm3, %v2441_v54, %v5241_v42  ;;  %v5253_v54 = vld [vmem:[#allocation37_spill] sm:$0xff] }
 0x6b1   : > { %2478 = vrot.lane.b32.xlu1 %v1862_v8, %s3734_s28  ;;  %v2773_v26 = vsel %vm1702_vm3, %v2427_v24, %v5228_v17  ;;  %v2813_v8 = vsel %vm2800_vm4, %v2780_v23, %v4827_v33  ;;  %v5242_v24 = vld [vmem:[#allocation27_spill] sm:$0xff]  ;;  %s3671_s28 = scalar_lea.vmem %s5117_s22, 512 }
 0x6b2   : > { %v2806_v27 = vsel %vm2800_vm4, %v2773_v26, %v4798_v43  ;;  %p3672_p11 = scmp.ne.s32.totalorder %s5117_s22, %s3671_s28  ;;  %p3679_p1 = scmp.lt.s32.totalorder %s3677_s26, %s3671_s28 }
 0x6b3   : > { %2837 = vxpose.xlu0.b32.cont [5/16] (narrow) %v2805_v44, 16  ;;  %v2445_v17 = vpop.permute.xlu0 %2444 }
 0x6b4   : > { %v2431_v30 = vpop.permute.xlu1 %2430  ;;  %p3673_p12 = pnand %p3672_p11, %p3828_p5  ;;  %p3680_p2 = por %p3679_p1, %p3678_p0 }
 0x6b5   : > { %v2775_v7 = vsel %vm1702_vm3, %v2431_v30, %v5231_v20  ;;  %v5244_v30 = vld [vmem:[#allocation24_spill] sm:$0xff]  ;;  %v5246_v20 = vld [vmem:[#allocation25_spill] sm:$0xff] }
 0x6b6   : > { %v2808_v50 = vsel %vm2800_vm4, %v2775_v7, %v5232_v15  ;;  %p3674_p13 = pneg %p3673_p12 }
 0x6b7   : > { %2838 = vxpose.xlu0.b32.cont [6/16] (narrow) %v2806_v27, 16  ;;  %v2782_v27 = vsel %vm1702_vm3, %v2445_v17, %v5243_v62  ;;  %v5256_v17 = vld [vmem:[#allocation39_spill] sm:$0xff] }
 0x6b8   : > { %v2435_v43 = vpop.permute.xlu1 %2434  ;;  %p3681_p3 = pnand %p3680_p2, %p3674_p13 }
 0x6b9   : > { %v2777_v39 = vsel %vm1702_vm3, %v2435_v43, %v5235_v38  ;;  %v5248_v43 = vld [vmem:[#allocation23_spill] sm:$0xff]  ;;  %v5249_v38 = vld [vmem:[#allocation33_spill] sm:$0xff] }
 0x6ba   : > { %v2810_v22 = vsel %vm2800_vm4, %v2777_v39, %v5236_v13  ;;  %v5250_v13 = vld [vmem:[#allocation34_spill] sm:$0xff] }
 0x6bb   : > { %2839 = vxpose.xlu0.b32.cont [7/16] (narrow) %v2807_v2, 16  ;;  %v5245_v2 = vld [vmem:[#allocation35_spill] sm:$0xff] }
 0x6bc   : > { %v2439_v46 = vpop.permute.xlu1 %2438  ;;  %v2815_v33 = vsel %vm2800_vm4, %v2782_v27, %v5245_v2  ;;  %v5257_v27 = vld [vmem:[#allocation40_spill] sm:$0xff] }
 0x6bd   : > { %v2779_v5 = vsel %vm1702_vm3, %v2439_v46, %v5239_v1 }
 0x6be   : > { %v2812_v3 = vsel %vm2800_vm4, %v2779_v5, %v5240_v34 }
 0x6bf   : > { %2840 = vxpose.xlu0.b32.cont [8/16] (narrow) %v2808_v50, 16 }
 0x6c0   : > { %v2443_v56 = vpop.permute.xlu1 %2442 }
 0x6c1   : > { %v2781_v6 = vsel %vm1702_vm3, %v2443_v56, %v5242_v24  ;;  %v5255_v24 = vld [vmem:[#allocation42_spill] sm:$0xff] }
 0x6c2   : > { %v2814_v26 = vsel %vm2800_vm4, %v2781_v6, %v4845_v32  ;;  %v5247_v32 = vld [vmem:[#allocation36_spill] sm:$0xff] }
 0x6c3   : > { %2841 = vxpose.xlu0.b32.cont [9/16] (narrow) %v2809_v36, 16 }
 0x6c4   : > { %v2447_v44 = vpop.permute.xlu1 %2446 }
 0x6c5   : > { %v2783_v7 = vsel %vm1702_vm3, %v2447_v44, %v5246_v20 }
 0x6c6   : > { %v2816_v49 = vsel %vm2800_vm4, %v2783_v7, %v4833_v40 }
 0x6c7   : > { %2842 = vxpose.xlu0.b32.cont [10/16] (narrow) %v2810_v22, 16 }
 0x6c8   : > { %v2451_v25 = vpop.permute.xlu1 %2450 }
 0x6c9   : > { %v2785_v15 = vsel %vm1702_vm3, %v2451_v25, %v5247_v32 }
 0x6ca   : > { %v2818_v29 = vsel %vm2800_vm4, %v2785_v15, %v4873_v53 }
 0x6cb   : > { %2843 = vxpose.xlu0.b32.cont [11/16] (narrow) %v2811_v63, 16  ;;  %v5252_v63 = vld [vmem:[#allocation32_spill] sm:$0xff] }
 0x6cc   : > { %v2455_v36 = vpop.permute.xlu1 %2454 }
 0x6cd   : > { %v2787_v39 = vsel %vm1702_vm3, %v2455_v36, %v5249_v38 }
 0x6ce   : > { %v2820_v40 = vsel %vm2800_vm4, %v2787_v39, %v4869_v4 }
 0x6cf   : > { %2844 = vxpose.xlu0.b32.cont [12/16] (narrow) %v2812_v3, 16  ;;  %v5254_v3 = vld [vmem:[#allocation41_spill] sm:$0xff] }
 0x6d0   : > { %v2459_v53 = vpop.permute.xlu1 %2458 }
 0x6d1   : > { %v2789_v46 = vsel %vm1702_vm3, %v2459_v53, %v5251_v51 }
 0x6d2   : > { %v2822_v45 = vsel %vm2800_vm4, %v2789_v46, %v4907_v57 }
 0x6d3   : > { %2845 = vxpose.xlu0.b32.cont [13/16] (narrow) %v2813_v8, 16 }
 0x6d7   : > { %2846 = vxpose.xlu0.b32.cont [14/16] (narrow) %v2814_v26, 16 }
 0x6d9   : > { %v2449_v19 = vpop.permute.xlu0 %2448 }
 0x6da   : > { %v2784_v48 = vsel %vm1702_vm3, %v2449_v19, %v5244_v30 }
 0x6db   : > { %2847 = vxpose.xlu0.b32.cont [15/16] (narrow) %v2815_v33, 16  ;;  %v2817_v61 = vsel %vm2800_vm4, %v2784_v48, %v4871_v47 }
 0x6dc   : > { %2865 = vxpose.xlu1.b32.start [1/16] (narrow) %v2817_v61, 16 }
 0x6dd   : > { %v2453_v50 = vpop.permute.xlu0 %2452 }
 0x6de   : > { %v2786_v18 = vsel %vm1702_vm3, %v2453_v50, %v5248_v43 }
 0x6df   : > { %2848 = vxpose.xlu0.b32.end [16/16] (narrow) %v2816_v49, 16  ;;  %v2819_v47 = vsel %vm2800_vm4, %v2786_v18, %v4867_v10 }
 0x6e0   : > { %2866 = vxpose.xlu1.b32.cont [2/16] (narrow) %v2818_v29, 16 }
 0x6e1   : > { %v2457_v55 = vpop.permute.xlu0 %2456 }
 0x6e2   : > { %v2788_v22 = vsel %vm1702_vm3, %v2457_v55, %v5250_v13  ;;  %v2463_v1 = vpop.permute.xlu1 %2462 }
 0x6e3   : > { %v2821_v0 = vsel %vm2800_vm4, %v2788_v22, %v4949_v21  ;;  %v2791_v21 = vsel %vm1702_vm3, %v2463_v1, %v5253_v54 }
 0x6e4   : > { %2867 = vxpose.xlu1.b32.cont [3/16] (narrow) %v2819_v47, 16  ;;  %v2824_v34 = vsel %vm2800_vm4, %v2791_v21, %v4893_v35 }
 0x6e5   : > { %v2461_v10 = vpop.permute.xlu0 %2460 }
 0x6e6   : > { %v2790_v4 = vsel %vm1702_vm3, %v2461_v10, %v5252_v63 }
 0x6e7   : > { %v2823_v5 = vsel %vm2800_vm4, %v2790_v4, %v4909_v28 }
 0x6e8   : > { %2868 = vxpose.xlu1.b32.cont [4/16] (narrow) %v2820_v40, 16 }
 0x6e9   : > { %v2465_v56 = vpop.permute.xlu0 %2464 }
 0x6ea   : > { %v2792_v57 = vsel %vm1702_vm3, %v2465_v56, %v5254_v3 }
 0x6eb   : > { %v2825_v42 = vsel %vm2800_vm4, %v2792_v57, %v4920_v16 }
 0x6ec   : > { %2869 = vxpose.xlu1.b32.cont [5/16] (narrow) %v2821_v0, 16 }
 0x6ed   : > { %v2469_v23 = vpop.permute.xlu0 %2468 }
 0x6ee   : > { %v2794_v35 = vsel %vm1702_vm3, %v2469_v23, %v5256_v17 }
 0x6ef   : > { %v2827_v16 = vsel %vm2800_vm4, %v2794_v35, %v4913_v31 }
 0x6f0   : > { %2870 = vxpose.xlu1.b32.cont [6/16] (narrow) %v2822_v45, 16 }
 0x6f1   : > { %v2473_v8 = vpop.permute.xlu0 %2472 }
 0x6f2   : > { %v2796_v30 = vsel %vm1702_vm3, %v2473_v8, %v4904_v37 }
 0x6f3   : > { %v2829_v31 = vsel %vm2800_vm4, %v2796_v30, %v4953_v11 }
 0x6f4   : > { %2871 = vxpose.xlu1.b32.cont [7/16] (narrow) %v2823_v5, 16 }
 0x6f5   : > { %v2477_v26 = vpop.permute.xlu0 %2476 }
 0x6f8   : > { %2872 = vxpose.xlu1.b32.cont [8/16] (narrow) %v2824_v34, 16 }
 0x6fc   : > { %2873 = vxpose.xlu1.b32.cont [9/16] (narrow) %v2825_v42, 16 }
 0x717   : > { %v2467_v28 = vpop.permute.xlu1 %2466 }
 0x718   : > { %v2793_v6 = vsel %vm1702_vm3, %v2467_v28, %v5255_v24 }
 0x719   : > { %v2826_v44 = vsel %vm2800_vm4, %v2793_v6, %v4934_v58 }
 0x71a   : > { %2874 = vxpose.xlu1.b32.cont [10/16] (narrow) %v2826_v44, 16 }
 0x71b   : > { %v2471_v62 = vpop.permute.xlu1 %2470 }
 0x71c   : > { %v2795_v25 = vsel %vm1702_vm3, %v2471_v62, %v5257_v27 }
 0x71d   : > { %v2828_v58 = vsel %vm2800_vm4, %v2795_v25, %v4926_v59  ;;  %v2798_v59 = vsel %vm1702_vm3, %v2477_v26, %v4895_v14 }
 0x71e   : > { %2875 = vxpose.xlu1.b32.cont [11/16] (narrow) %v2827_v16, 16  ;;  %v2831_v7 = vsel %vm2800_vm4, %v2798_v59, %v4946_v52 }
 0x71f   : > { %v2849_v19 = vpop.trf.xlu0  ;;  %v2475_v48 = vpop.permute.xlu1 %2474 }
 0x720   : > { %2897 = vst [vmem:[%s326_s21] sm:$0xff] %v2849_v19  ;;  %v2797_v33 = vsel %vm1702_vm3, %v2475_v48, %v4886_v41 }
 0x721   : > { %v2830_v20 = vsel %vm2800_vm4, %v2797_v33, %v4975_v12 }
 0x722   : > { %2876 = vxpose.xlu1.b32.cont [12/16] (narrow) %v2828_v58, 16 }
 0x723   : > { %v2850_v2 = vpop.trf.xlu0  ;;  %v2479_v37 = vpop.permute.xlu1 %2478 }
 0x724   : > { %2899 = vst [vmem:[%s326_s21 + $0x10] sm:$0x1] %v2850_v2  ;;  %v2799_v11 = vsel %vm1702_vm3, %v2479_v37, %v4879_v60 }
 0x725   : > { %v2832_v41 = vsel %vm2800_vm4, %v2799_v11, %v4955_v9 }
 0x726   : > { %2877 = vxpose.xlu1.b32.cont [13/16] (narrow) %v2829_v31, 16 }
 0x72a   : > { %2878 = vxpose.xlu1.b32.cont [14/16] (narrow) %v2830_v20, 16 }
 0x72e   : > { %2879 = vxpose.xlu1.b32.cont [15/16] (narrow) %v2831_v7, 16 }
 0x732   : > { %2880 = vxpose.xlu1.b32.end [16/16] (narrow) %v2832_v41, 16 }
 0x772   : > { %v2881_v12 = vpop.trf.xlu1 }
 0x773   : > { %2898 = vst [vmem:[%s326_s21 + $0x8] sm:$0xff] %v2881_v12 }
 0x776   : > { %v2882_v60 = vpop.trf.xlu1 }
 0x777   : > { %2900 = vst [vmem:[%s326_s21 + $0x18] sm:$0x1] %v2882_v60 }
 0x778   : > { %3684 = shalt.err (!%p3681_p3)
}
 0x779   : > { %s3685_s14 = scalar_lea.hbm %s5122_s1, 512  ;;  %s3689_s21 = scalar_lea.hbm %s5175_s9, 1024 }
 0x77a   : > { %p3686_p4 = scmp.ne.s32.totalorder %s5122_s1, %s3685_s14  ;;  %p3690_p9 = scmp.lt.s32.totalorder %s5122_s1, %s5175_s9 }
 0x77b   : > { %p3691_p10 = scmp.lt.s32.totalorder %s3689_s21, %s3685_s14 }
 0x77c   : > { %p3687_p7 = pnand %p3686_p4, %p3828_p5 }
 0x77d   : > { %p3692_p11 = por %p3691_p10, %p3690_p9 }
 0x77e   : > { %p3688_p8 = pneg %p3687_p7 }
 0x780   : > { %p3693_p12 = pnand %p3692_p11, %p3688_p8 }
 0x782   : > { %3696 = shalt.err (!%p3693_p12)
}
 0x783   : > { %s3737_s27 = smov 256   ;;  %s3738_s28 = smov 512  }
 0x784   : > { %s3739_s13 = smov 16  }
 0x785   : > { %3325 = dma.vmem_to_hbm [thread:$0]  (%p3828_p5), %s5117_s22, 512, %s5122_s1, %s5126_s23, %s3737_s27, %s3738_s28, %s3739_s13  }
 0x786 PF: > { %p3331_p13 = scmp.ge.s32.totalorder %s3731_s12, 2  ;;  %s2930_s29 = sand.u32 1, %s3719_s30  }
 0x787   : > { %s2931_s26 = scalar_lea.sflag [#allocation3], %s2930_s29 }
 0x788   : > { %p3328_p0 = pnand %p3331_p13, %p3832_p6 }
 0x78a   : > { %p3329_p1 = pneg %p3328_p0 }
 0x78c   : > { %3714 = dma.done.wait (%p3329_p1), %s2931_s26, 512  }
 0x78d   : > { %3716 = vsyncadd (%p3329_p1), %s2931_s26, 4294966784  ;;  %p19_p2 = scmp.ge.s32.totalorder %s3815_s15, 4   ;;  %s5258_s30 = smov %s3723_s10 }
 0x78e   : > { %s5259_s10 = smov %s3727_s11  ;;  %s5260_s11 = smov %s3826_s18 }
 0x78f   : > { %s5261_s12 = smov %s3815_s15  ;;  %21 = sbr.rel (!%p19_p2) target bundleno = 5 (0x5), region = 91 }
 0x794   :  { %2936 = vsyncpa [#allocation3], 1 }
 0x795   :  { %2938 = vsyncpa [#allocation3 + $0x1], 1 }

</bundles_post_ra>
